<compile_context>
chip_gen: v7x
topology: tpu7x:2x2x1
jax: 0.10.0
libtpu: 0.0.40
codegen_flags: <defaults>
</compile_context>

<pallas_src>
import jax
import jax.numpy as jnp
from jax.experimental import pallas as pl
from jax.experimental.pallas import tpu as pltpu
import numpy as np

IN_FEATURES = 64 * 64 * 3   # 12288
H1 = 256
H2 = 128


def _mlp_kernel(x_ref, w1_ref, b1_ref, w2_ref, b2_ref, w3_ref, b3_ref,
                o_ref, acc_ref):
    k = pl.program_id(0)

    @pl.when(k == 0)
    def _():
        acc_ref[...] = jnp.zeros_like(acc_ref)

    # Partial fc1: bf16 x bf16 -> f32 accumulate (MXU-native on v5e/v6e/v7x).
    acc_ref[...] += jnp.dot(x_ref[...], w1_ref[...],
                            preferred_element_type=jnp.float32)

    @pl.when(k == pl.num_programs(0) - 1)
    def _():
        # Epilogue stays f32 on the VPU (bias + ReLU); the tiny fc2/fc3 matmuls
        # feed bf16 activations into the MXU with f32 accumulation.
        h1 = jnp.maximum(acc_ref[...] + b1_ref[...], 0.0)               # ReLU(fc1)
        h2 = jnp.maximum(
            jnp.dot(h1.astype(jnp.bfloat16), w2_ref[...],
                    preferred_element_type=jnp.float32) + b2_ref[...],
            0.0)                                                        # ReLU(fc2)
        o_ref[...] = (jnp.dot(h2.astype(jnp.bfloat16), w3_ref[...],
                              preferred_element_type=jnp.float32)
                      + b3_ref[...])                                    # fc3 logits


def ann_model_forward(x_nchw, params, *, tk=6144):
    """x_nchw: (B, 3, 64, 64) -> logits (B, num_classes) in float32."""
    w1, b1, w2, b2, w3, b3 = params
    B = x_nchw.shape[0]
    num_classes = w3.shape[1]

    # Flatten exactly like nn.Flatten on an NCHW tensor (row-major reshape).
    # Activations are streamed as bf16 to match the bf16 weight path; accumulation
    # inside the kernel is f32.
    x2d = x_nchw.reshape(B, IN_FEATURES).astype(jnp.bfloat16)

    assert IN_FEATURES % tk == 0 and tk % 128 == 0
    grid = (IN_FEATURES // tk,)   # 2 steps at tk=6144

    out = pl.pallas_call(
        _mlp_kernel,
        out_shape=jax.ShapeDtypeStruct((B, num_classes), jnp.float32),
        grid_spec=pltpu.PrefetchScalarGridSpec(
            num_scalar_prefetch=0,
            grid=grid,
            in_specs=[
                pl.BlockSpec((B, tk), lambda k: (0, k)),            # x tile   (bf16)
                pl.BlockSpec((tk, H1), lambda k: (k, 0)),           # W1 tile  (bf16)
                pl.BlockSpec((1, H1), lambda k: (0, 0)),            # b1       (f32)
                pl.BlockSpec((H1, H2), lambda k: (0, 0)),           # W2       (bf16)
                pl.BlockSpec((1, H2), lambda k: (0, 0)),            # b2       (f32)
                pl.BlockSpec((H2, num_classes), lambda k: (0, 0)),  # W3       (bf16)
                pl.BlockSpec((1, num_classes), lambda k: (0, 0)),   # b3       (f32)
            ],
            out_specs=pl.BlockSpec((B, num_classes), lambda k: (0, 0)),
            scratch_shapes=[pltpu.VMEM((B, H1), jnp.float32)],       # f32 fc1 accumulator
        ),
        compiler_params=pltpu.CompilerParams(
            dimension_semantics=("arbitrary",),          # K is a reduction axis
            vmem_limit_bytes=32 * 1024 * 1024,
        ),
    )(x2d, w1, b1, w2, b2, w3, b3)
    return out


def init_params(key, num_classes):
    """Deterministic synthetic init (PyTorch-Linear-like uniform bounds).

    Weights are stored pre-transposed as (in, out) and cast to bf16 (deployment
    storage format); biases stay f32.
    """
    ks = jax.random.split(key, 6)

    def lin(kw, kb, fan_in, fan_out):
        bound = 1.0 / np.sqrt(fan_in)
        w = jax.random.uniform(kw, (fan_in, fan_out), jnp.float32, -bound, bound)
        b = jax.random.uniform(kb, (1, fan_out), jnp.float32, -bound, bound)
        return w.astype(jnp.bfloat16), b

    w1, b1 = lin(ks[0], ks[1], IN_FEATURES, H1)
    w2, b2 = lin(ks[2], ks[3], H1, H2)
    w3, b3 = lin(ks[4], ks[5], H2, num_classes)
    return (w1, b1, w2, b2, w3, b3)


def _reference_forward(x_nchw, params):
    """Pure-JAX reference using the same bf16 weights / bf16 activation feed,
    f32 accumulation — matches the kernel up to f32 accumulation order."""
    w1, b1, w2, b2, w3, b3 = params
    x = x_nchw.reshape(x_nchw.shape[0], -1).astype(jnp.bfloat16)
    h1 = jnp.maximum(
        jnp.dot(x, w1, preferred_element_type=jnp.float32) + b1, 0.0)
    h2 = jnp.maximum(
        jnp.dot(h1.astype(jnp.bfloat16), w2,
                preferred_element_type=jnp.float32) + b2, 0.0)
    return jnp.dot(h2.astype(jnp.bfloat16), w3,
                   preferred_element_type=jnp.float32) + b3


if __name__ == "__main__":
    num_classes = 8
    B = 2

    key = jax.random.PRNGKey(0)
    k_x, k_p = jax.random.split(key)

    # NCHW input, exactly what the PyTorch module expects: (B, 3, 64, 64)
    x = jax.random.normal(k_x, (B, 3, 64, 64), dtype=jnp.float32)
    params = init_params(k_p, num_classes)

    logits = ann_model_forward(x, params)
    logits = jax.block_until_ready(logits)

    ref = _reference_forward(x, params)
    np.testing.assert_allclose(np.asarray(logits), np.asarray(ref),
                               rtol=1e-3, atol=1e-3)

    print("KERNEL_OK")
</pallas_src>

<mosaic_0001>
module attributes {stable_mosaic.version = 11 : i64} {
  func.func @_mlp_kernel(%arg0: i32, %arg1: memref<2x6144xbf16, #tpu.memory_space<vmem>>, %arg2: memref<6144x256xbf16, #tpu.memory_space<vmem>>, %arg3: memref<1x256xf32, #tpu.memory_space<vmem>>, %arg4: memref<256x128xbf16, #tpu.memory_space<vmem>>, %arg5: memref<1x128xf32, #tpu.memory_space<vmem>>, %arg6: memref<128x8xbf16, #tpu.memory_space<vmem>>, %arg7: memref<1x8xf32, #tpu.memory_space<vmem>>, %arg8: memref<2x8xf32, #tpu.memory_space<vmem>>, %arg9: memref<2x256xf32, #tpu.memory_space<vmem>>) attributes {dimension_semantics = [#tpu.dimension_semantics<arbitrary>], iteration_bounds = array<i64: 2>, scalar_prefetch = 0 : i64, scratch_operands = 1 : i64, tpu.core_type = #tpu.core_type<tc>, window_params = [{transform_indices = @transform_0, window_bounds = array<i64: 2, 6144>}, {transform_indices = @transform_1, window_bounds = array<i64: 6144, 256>}, {pipeline_mode = #tpu.pipeline_mode<synchronous>, transform_indices = @transform_2, window_bounds = array<i64: 1, 256>}, {pipeline_mode = #tpu.pipeline_mode<synchronous>, transform_indices = @transform_3, window_bounds = array<i64: 256, 128>}, {pipeline_mode = #tpu.pipeline_mode<synchronous>, transform_indices = @transform_4, window_bounds = array<i64: 1, 128>}, {pipeline_mode = #tpu.pipeline_mode<synchronous>, transform_indices = @transform_5, window_bounds = array<i64: 128, 8>}, {pipeline_mode = #tpu.pipeline_mode<synchronous>, transform_indices = @transform_6, window_bounds = array<i64: 1, 8>}, {pipeline_mode = #tpu.pipeline_mode<synchronous>, transform_indices = @transform_7, window_bounds = array<i64: 2, 8>}]} {
    %c0_i32 = arith.constant 0 : i32
    %0 = arith.cmpi eq, %arg0, %c0_i32 : i32
    %1 = arith.extui %0 : i1 to i32
    %c0_i32_0 = arith.constant 0 : i32
    %2 = arith.cmpi ne, %1, %c0_i32_0 : i32
    scf.if %2 {
      %cst_9 = arith.constant 0.000000e+00 : f32
      %12 = vector.broadcast %cst_9 : f32 to vector<2x256xf32>
      %c0_10 = arith.constant 0 : index
      %c0_11 = arith.constant 0 : index
      %13 = vector.load %arg9[%c0_10, %c0_11] : memref<2x256xf32, #tpu.memory_space<vmem>>, vector<2x256xf32>
      tpu.vector_store %arg9[%c0_10, %c0_11], %12 {strides = array<i32>} : memref<2x256xf32, #tpu.memory_space<vmem>>, vector<2x256xf32>,
    } else {
    }
    %c0 = arith.constant 0 : index
    %c0_1 = arith.constant 0 : index
    %3 = vector.load %arg9[%c0, %c0_1] : memref<2x256xf32, #tpu.memory_space<vmem>>, vector<2x256xf32>
    %c0_2 = arith.constant 0 : index
    %c0_3 = arith.constant 0 : index
    %4 = vector.load %arg1[%c0_2, %c0_3] : memref<2x6144xbf16, #tpu.memory_space<vmem>>, vector<2x6144xbf16>
    %c0_4 = arith.constant 0 : index
    %c0_5 = arith.constant 0 : index
    %5 = vector.load %arg2[%c0_4, %c0_5] : memref<6144x256xbf16, #tpu.memory_space<vmem>>, vector<6144x256xbf16>
    %cst = arith.constant dense<0.000000e+00> : vector<2x256xf32>
    %6 = tpu.matmul %4, %5, %cst {dimension_numbers = #tpu.dot_dimension_numbers<[1], [0], [0], [1], [0, 0, 1, 1], [], []>} : vector<2x6144xbf16>, vector<6144x256xbf16>, vector<2x256xf32> -> vector<2x256xf32>
    %7 = arith.addf %3, %6 : vector<2x256xf32>
    %c0_6 = arith.constant 0 : index
    %c0_7 = arith.constant 0 : index
    %8 = vector.load %arg9[%c0_6, %c0_7] : memref<2x256xf32, #tpu.memory_space<vmem>>, vector<2x256xf32>
    tpu.vector_store %arg9[%c0_6, %c0_7], %7 {strides = array<i32>} : memref<2x256xf32, #tpu.memory_space<vmem>>, vector<2x256xf32>,
    %c1_i32 = arith.constant 1 : i32
    %9 = arith.cmpi eq, %arg0, %c1_i32 : i32
    %10 = arith.extui %9 : i1 to i32
    %c0_i32_8 = arith.constant 0 : i32
    %11 = arith.cmpi ne, %10, %c0_i32_8 : i32
    scf.if %11 {
      %c0_9 = arith.constant 0 : index
      %c0_10 = arith.constant 0 : index
      %12 = vector.load %arg9[%c0_9, %c0_10] : memref<2x256xf32, #tpu.memory_space<vmem>>, vector<2x256xf32>
      %c0_11 = arith.constant 0 : index
      %c0_12 = arith.constant 0 : index
      %13 = vector.load %arg3[%c0_11, %c0_12] : memref<1x256xf32, #tpu.memory_space<vmem>>, vector<1x256xf32>
      %14 = vector.broadcast %13 : vector<1x256xf32> to vector<2x256xf32>
      %15 = arith.addf %12, %14 : vector<2x256xf32>
      %cst_13 = arith.constant 0.000000e+00 : f32
      %16 = vector.broadcast %cst_13 : f32 to vector<2x256xf32>
      %17 = arith.maximumf %15, %16 : vector<2x256xf32>
      %18 = arith.truncf %17 : vector<2x256xf32> to vector<2x256xbf16>
      %c0_14 = arith.constant 0 : index
      %c0_15 = arith.constant 0 : index
      %19 = vector.load %arg4[%c0_14, %c0_15] : memref<256x128xbf16, #tpu.memory_space<vmem>>, vector<256x128xbf16>
      %cst_16 = arith.constant dense<0.000000e+00> : vector<2x128xf32>
      %20 = tpu.matmul %18, %19, %cst_16 {dimension_numbers = #tpu.dot_dimension_numbers<[1], [0], [0], [1], [0, 0, 1, 1], [], []>} : vector<2x256xbf16>, vector<256x128xbf16>, vector<2x128xf32> -> vector<2x128xf32>
      %c0_17 = arith.constant 0 : index
      %c0_18 = arith.constant 0 : index
      %21 = vector.load %arg5[%c0_17, %c0_18] : memref<1x128xf32, #tpu.memory_space<vmem>>, vector<1x128xf32>
      %22 = vector.broadcast %21 : vector<1x128xf32> to vector<2x128xf32>
      %23 = arith.addf %20, %22 : vector<2x128xf32>
      %cst_19 = arith.constant 0.000000e+00 : f32
      %24 = vector.broadcast %cst_19 : f32 to vector<2x128xf32>
      %25 = arith.maximumf %23, %24 : vector<2x128xf32>
      %26 = arith.truncf %25 : vector<2x128xf32> to vector<2x128xbf16>
      %c0_20 = arith.constant 0 : index
      %c0_21 = arith.constant 0 : index
      %27 = vector.load %arg6[%c0_20, %c0_21] : memref<128x8xbf16, #tpu.memory_space<vmem>>, vector<128x8xbf16>
      %cst_22 = arith.constant dense<0.000000e+00> : vector<2x8xf32>
      %28 = tpu.matmul %26, %27, %cst_22 {dimension_numbers = #tpu.dot_dimension_numbers<[1], [0], [0], [1], [0, 0, 1, 1], [], []>} : vector<2x128xbf16>, vector<128x8xbf16>, vector<2x8xf32> -> vector<2x8xf32>
      %c0_23 = arith.constant 0 : index
      %c0_24 = arith.constant 0 : index
      %29 = vector.load %arg7[%c0_23, %c0_24] : memref<1x8xf32, #tpu.memory_space<vmem>>, vector<1x8xf32>
      %30 = vector.broadcast %29 : vector<1x8xf32> to vector<2x8xf32>
      %31 = arith.addf %28, %30 : vector<2x8xf32>
      %c0_25 = arith.constant 0 : index
      %c0_26 = arith.constant 0 : index
      %32 = vector.load %arg8[%c0_25, %c0_26] : memref<2x8xf32, #tpu.memory_space<vmem>>, vector<2x8xf32>
      tpu.vector_store %arg8[%c0_25, %c0_26], %31 {strides = array<i32>} : memref<2x8xf32, #tpu.memory_space<vmem>>, vector<2x8xf32>,
    } else {
    }
    return
  }
  func.func @transform_0(%arg0: i32) -> (i32, i32) {
    %c0_i32 = arith.constant 0 : i32
    %c0_i32_0 = arith.constant 0 : i32
    return %c0_i32, %arg0 : i32, i32
  }
  func.func @transform_1(%arg0: i32) -> (i32, i32) {
    %c0_i32 = arith.constant 0 : i32
    %c0_i32_0 = arith.constant 0 : i32
    return %arg0, %c0_i32 : i32, i32
  }
  func.func @transform_2(%arg0: i32) -> (i32, i32) {
    %c0_i32 = arith.constant 0 : i32
    %c0_i32_0 = arith.constant 0 : i32
    %c0_i32_1 = arith.constant 0 : i32
    return %c0_i32, %c0_i32_0 : i32, i32
  }
  func.func @transform_3(%arg0: i32) -> (i32, i32) {
    %c0_i32 = arith.constant 0 : i32
    %c0_i32_0 = arith.constant 0 : i32
    %c0_i32_1 = arith.constant 0 : i32
    return %c0_i32, %c0_i32_0 : i32, i32
  }
  func.func @transform_4(%arg0: i32) -> (i32, i32) {
    %c0_i32 = arith.constant 0 : i32
    %c0_i32_0 = arith.constant 0 : i32
    %c0_i32_1 = arith.constant 0 : i32
    return %c0_i32, %c0_i32_0 : i32, i32
  }
  func.func @transform_5(%arg0: i32) -> (i32, i32) {
    %c0_i32 = arith.constant 0 : i32
    %c0_i32_0 = arith.constant 0 : i32
    %c0_i32_1 = arith.constant 0 : i32
    return %c0_i32, %c0_i32_0 : i32, i32
  }
  func.func @transform_6(%arg0: i32) -> (i32, i32) {
    %c0_i32 = arith.constant 0 : i32
    %c0_i32_0 = arith.constant 0 : i32
    %c0_i32_1 = arith.constant 0 : i32
    return %c0_i32, %c0_i32_0 : i32, i32
  }
  func.func @transform_7(%arg0: i32) -> (i32, i32) {
    %c0_i32 = arith.constant 0 : i32
    %c0_i32_0 = arith.constant 0 : i32
    %c0_i32_1 = arith.constant 0 : i32
    return %c0_i32, %c0_i32_0 : i32, i32
  }
}

</mosaic_0001>

<bundles_post_ra>
// kernel: tpu_custom_call.1
= control target key start
LH: loop header
LB: loop body
LE: loop exit
PB: predicated region body
PF: predicated region fallthrough
CT: control target
= control target key end

     0   :  { %12 = vsyncpa [#allocation4], 0  ;;  %s10683_s0 = inlined_call_operand.hbm [shape: bf16[2,12288], index: 0, kind: input, shape index: {}]   ;;  %s10684_s1 = inlined_call_operand.hbm [shape: bf16[12288,256], index: 1, kind: input, shape index: {}]   ;;  %s10685_s2 = inlined_call_operand.hbm [shape: f32[1,256], index: 2, kind: input, shape index: {}]   ;;  %s10686_s3 = inlined_call_operand.hbm [shape: bf16[256,128], index: 3, kind: input, shape index: {}]   ;;  %s10687_s4 = inlined_call_operand.hbm [shape: f32[1,128], index: 4, kind: input, shape index: {}]   ;;  %s10688_s5 = inlined_call_operand.vmem [shape: bf16[128,8], index: 5, kind: input, shape index: {}]   ;;  %s10689_s6 = inlined_call_operand.hbm [shape: f32[1,8], index: 6, kind: input, shape index: {}]   ;;  %s10690_s7 = inlined_call_operand.hbm [shape: f32[2,8], index: 7, kind: output, shape index: {}]  }
   0x1   :  { %14 = vsyncpa [#allocation4 + $0x1], 0 }
   0x2   :  { %15 = vsyncpa [#allocation7], 0 }
   0x3   :  { %17 = vsyncpa [#allocation7 + $0x1], 0 }
   0x4   :  { %18 = vsyncpa [#allocation10], 0 }
   0x5   :  { %19 = vsyncpa [#allocation13], 0 }
   0x6   :  { %20 = vsyncpa [#allocation5], 0  ;;  %s9352_s24 = smov 0   ;;  %s9354_s25 = smov 0  }
   0x7   :  { %s9356_s26 = smov 0   ;;  %s9358_s27 = smov 0  }
   0x8 LB: > { %s9296_s28 = smov [#allocation8]   ;;  %s9373_s30 = sadd.s32 4294967295, %s9294_s27   ;;  %s9294_s27 = sphi %s9358_s27, %s10710_s27   ;;  %s9290_s26 = sphi %s9356_s26, %s10709_s26   ;;  %s9286_s25 = sphi %s9354_s25, %s10708_s25   ;;  %s9282_s24 = sphi %s9352_s24, %s10707_s24  }
   0x9   : > { %s222_s29 = sshll.u32 %s9296_s28, 4  ;;  %p6792_p0 = scmp.ge.s32.totalorder %s9294_s27, 1  ;;  %s223_s29 = int_to_ptr.vmem [resolvable:$true] %s222_s29 }
   0xa   : > { %p10691_p1 = scmp.eq.s32.totalorder %s9373_s30, 0  ;;  %p209_p2 = scmp.lt.s32.totalorder %s9294_s27, 3 }
   0xb   : > { %s9297_s9 = smov [#allocation9]   ;;  %s9298_s12 = smov [#allocation11]  }
   0xc   : > { %p9379_p4 = pnand %p6792_p0, %p209_p2  ;;  %s232_s10 = sshll.u32 %s9297_s9, 4  ;;  %s9385_s10 = int_to_ptr.vmem [resolvable:$true] %s232_s10 }
   0xd   : > { %s246_s13 = sshll.u32 %s9298_s12, 4  ;;  %s9042_s16 = scalar_lea.hbm %s10685_s2, 32  ;;  %s9393_s13 = int_to_ptr.vmem [resolvable:$true] %s246_s13 }
   0xe   : > { %s10693_s8 = scalar_select %p9379_p4, 1, 0 }
   0xf   : > { %p7779_p5 = pneg %p9379_p4  ;;  %p9043_p7 = scmp.ne.s32.totalorder %s10685_s2, %s9042_s16 }
  0x10   : > { %p9049_p11 = scmp.lt.u32.totalorder %s9042_s16, %s10685_s2 }
  0x11   : > { %p9389_p6 = pnand %p7779_p5, %p10691_p1 }
  0x13   : > { %p9403_p8 = pneg %p9389_p6 }
  0x15   : > { %p9045_p9 = pnand %p9403_p8, %p9043_p7 }
  0x17   : > { %p9046_p10 = pneg %p9045_p9 }
  0x19   : > { %p9051_p12 = pnand %p9049_p11, %p9046_p10 }
  0x1b   : > { %9054 = shalt.err (!%p9051_p12)
}
  0x1c   : > { %s9055_s22 = scalar_lea.vmem %s223_s29, 32  ;;  %p9063_p5 = scmp.lt.s32.totalorder %s223_s29, %s223_s29 }
  0x1d   : > { %p9056_p13 = scmp.ne.s32.totalorder %s223_s29, %s9055_s22  ;;  %p9064_p3 = scmp.lt.s32.totalorder %s9055_s22, %s9055_s22 }
  0x1f   : > { %p9058_p0 = pnand %p9056_p13, %p9403_p8  ;;  %p9065_p1 = por %p9064_p3, %p9063_p5 }
  0x21   : > { %p9059_p2 = pneg %p9058_p0 }
  0x23   : > { %p9066_p4 = pnand %p9065_p1, %p9059_p2 }
  0x25   : > { %9069 = shalt.err (!%p9066_p4)
}
  0x26   : > { %7782 = dma.hbm_to_vmem [thread:$0]  (!%p9389_p6), %s10685_s2, 32, %s223_s29, [#allocation7]  }
  0x27   : > { %s9070_s14 = scalar_lea.hbm %s10686_s3, 2048 }
  0x28   : > { %p9071_p7 = scmp.ne.s32.totalorder %s10686_s3, %s9070_s14  ;;  %p9077_p1 = scmp.lt.u32.totalorder %s9070_s14, %s10686_s3 }
  0x2a   : > { %p9073_p9 = pnand %p9071_p7, %p9403_p8 }
  0x2c   : > { %p9074_p3 = pneg %p9073_p9 }
  0x2e   : > { %p9079_p4 = pnand %p9077_p1, %p9074_p3 }
  0x30   : > { %9082 = shalt.err (!%p9079_p4)
}
  0x31   : > { %s9083_s29 = scalar_lea.vmem %s9385_s10, 2048  ;;  %p9091_p13 = scmp.lt.s32.totalorder %s9385_s10, %s9385_s10 }
  0x32   : > { %p9084_p10 = scmp.ne.s32.totalorder %s9385_s10, %s9083_s29  ;;  %p9092_p0 = scmp.lt.s32.totalorder %s9083_s29, %s9083_s29 }
  0x34   : > { %p9086_p11 = pnand %p9084_p10, %p9403_p8  ;;  %p9093_p2 = por %p9092_p0, %p9091_p13 }
  0x36   : > { %p9087_p12 = pneg %p9086_p11 }
  0x38   : > { %p9094_p5 = pnand %p9093_p2, %p9087_p12 }
  0x3a   : > { %9097 = shalt.err (!%p9094_p5)
}
  0x3b   : > { %s9299_s20 = smov 64   ;;  %s9300_s21 = smov 4  }
  0x3c   : > { %7785 = dma.hbm_to_vmem [thread:$0]  (!%p9389_p6), %s10686_s3, 2048, %s9385_s10, [#allocation10], %s9299_s20, %s9299_s20, %s9300_s21  }
  0x3d   : > { %s9098_s12 = scalar_lea.hbm %s10687_s4, 16 }
  0x3e   : > { %p9099_p7 = scmp.ne.s32.totalorder %s10687_s4, %s9098_s12  ;;  %p9105_p1 = scmp.lt.u32.totalorder %s9098_s12, %s10687_s4 }
  0x40   : > { %p9101_p9 = pnand %p9099_p7, %p9403_p8 }
  0x42   : > { %p9102_p3 = pneg %p9101_p9 }
  0x44   : > { %p9107_p4 = pnand %p9105_p1, %p9102_p3 }
  0x46   : > { %9110 = shalt.err (!%p9107_p4)
}
  0x47   : > { %s9111_s10 = scalar_lea.vmem %s9393_s13, 16  ;;  %s9118_s18 = scalar_lea.vmem %s9393_s13, 32 }
  0x48   : > { %p9112_p10 = scmp.ne.s32.totalorder %s9393_s13, %s9111_s10  ;;  %p9119_p13 = scmp.lt.s32.totalorder %s9393_s13, %s9393_s13 }
  0x49   : > { %p9120_p0 = scmp.lt.s32.totalorder %s9118_s18, %s9111_s10 }
  0x4a   : > { %p9114_p11 = pnand %p9112_p10, %p9403_p8 }
  0x4b   : > { %p9121_p2 = por %p9120_p0, %p9119_p13 }
  0x4c   : > { %p9115_p12 = pneg %p9114_p11 }
  0x4e   : > { %p9122_p5 = pnand %p9121_p2, %p9115_p12 }
  0x50   : > { %9125 = shalt.err (!%p9122_p5)
}
  0x51   : > { %7788 = dma.hbm_to_vmem [thread:$0]  (!%p9389_p6), %s10687_s4, 16, %s9393_s13, [#allocation10]  }
  0x52   : > { %s9301_s21 = smov [#allocation12]   ;;  %s9126_s9 = scalar_lea.hbm %s10689_s6, 16 }
  0x53   : > { %s260_s22 = sshll.u32 %s9301_s21, 4  ;;  %p9127_p7 = scmp.ne.s32.totalorder %s10689_s6, %s9126_s9  ;;  %s261_s22 = int_to_ptr.vmem [resolvable:$true] %s260_s22 }
  0x54   : > { %p9133_p1 = scmp.lt.u32.totalorder %s9126_s9, %s10689_s6 }
  0x55   : > { %p9129_p9 = pnand %p9127_p7, %p9403_p8 }
  0x57   : > { %p9130_p3 = pneg %p9129_p9 }
  0x59   : > { %p9135_p4 = pnand %p9133_p1, %p9130_p3 }
  0x5b   : > { %9138 = shalt.err (!%p9135_p4)
}
  0x5c   : > { %s9139_s13 = scalar_lea.vmem %s261_s22, 16  ;;  %s9146_s17 = scalar_lea.vmem %s261_s22, 32 }
  0x5d   : > { %p9140_p10 = scmp.ne.s32.totalorder %s261_s22, %s9139_s13  ;;  %p9147_p13 = scmp.lt.s32.totalorder %s261_s22, %s261_s22 }
  0x5e   : > { %p9148_p0 = scmp.lt.s32.totalorder %s9146_s17, %s9139_s13 }
  0x5f   : > { %p9142_p11 = pnand %p9140_p10, %p9403_p8 }
  0x60   : > { %p9149_p2 = por %p9148_p0, %p9147_p13 }
  0x61   : > { %p9143_p12 = pneg %p9142_p11 }
  0x63   : > { %p9150_p5 = pnand %p9149_p2, %p9143_p12 }
  0x65   : > { %9153 = shalt.err (!%p9150_p5)
}
  0x66   : > { %7791 = dma.hbm_to_vmem [thread:$0]  (!%p9389_p6), %s10689_s6, 16, %s261_s22, [#allocation13]  }
  0x67   : > { %s9485_s19 = sadd.s32 1, %s9294_s27   ;;  %s33_s11 = sadd.s32 1, %s9290_s26 }
  0x68   : > { %s30_s29 = ssub.s32 %s9294_s27, %s9485_s19  ;;  %p40_p8 = scmp.ne.s32.totalorder %s9290_s26, %s9286_s25 }
  0x69   : > { %p31_p7 = scmp.eq.s32.totalorder %s30_s29, 0  ;;  %p41_p9 = scmp.eq.s32.totalorder %s9294_s27, 0 }
  0x6a   : > { %p46_p3 = scmp.ne.s32.totalorder %s9286_s25, %s9282_s24  ;;  %p7803_p1 = scmp.lt.s32.totalorder %s9294_s27, 2 }
  0x6b   : > { %s9497_s20 = scalar_select %p31_p7, %s9290_s26, %s33_s11  }
  0x6c   : > { %p42_p4 = por %p41_p9, %p40_p8  ;;  %p10696_p10 = scmp.eq.s32.totalorder %s9373_s30, 0 }
  0x6d   : > { %s9506_s23 = sand.u32 1, %s9290_s26   ;;  %s7606_s22 = smul.u32 768, %s9294_s27 }
  0x6e   : > { %p9501_p11 = por %p10696_p10, %p46_p3  ;;  %s7751_s28 = smul.u32 48, %s9506_s23 }
  0x6f   : > { %s9513_s24 = scalar_lea.hbm %s10683_s0, %s7606_s22  ;;  %p9515_p6 = pnand %p7803_p1, %p42_p4 }
  0x70   : > { %s7752_s15 = smul.u32 6144, %s9506_s23  ;;  %s275_s16 = scalar_lea.vmem [#allocation3], %s7751_s28 }
  0x71   : > { %s283_s13 = sshll.u32 %s275_s16, 4  ;;  %s272_s17 = scalar_lea.sflag [#allocation4], %s9506_s23  ;;  %s9520_s13 = int_to_ptr.vmem [resolvable:$true] %s283_s13 }
  0x72   : > { %s9154_s10 = scalar_lea.hbm %s9513_s24, 768  ;;  %p9156_p13 = pneg %p9515_p6 }
  0x73   : > { %p9155_p12 = scmp.ne.s32.totalorder %s9513_s24, %s9154_s10  ;;  %s9159_s29 = scalar_lea.hbm %s10683_s0, 1536 }
  0x74   : > { %p9160_p5 = scmp.lt.u32.totalorder %s9513_s24, %s10683_s0  ;;  %p9161_p8 = scmp.lt.u32.totalorder %s9159_s29, %s9154_s10 }
  0x75   : > { %p9157_p0 = pnand %p9156_p13, %p9155_p12  ;;  %p9163_p9 = scmp.lt.u32.totalorder %s9154_s10, %s9513_s24 }
  0x76   : > { %p9162_p7 = por %p9161_p8, %p9160_p5 }
  0x77   : > { %p9158_p2 = pneg %p9157_p0 }
  0x78   : > { %p9164_p3 = por %p9163_p9, %p9162_p7 }
  0x7a   : > { %p9165_p1 = pnand %p9164_p3, %p9158_p2 }
  0x7c   : > { %9168 = shalt.err (!%p9165_p1)
}
  0x7d   : > { %s9169_s28 = scalar_lea.vmem %s9520_s13, 768  ;;  %s9302_s12 = smov [#allocation3]  }
  0x7e   : > { %p9170_p4 = scmp.ne.s32.totalorder %s9520_s13, %s9169_s28  ;;  %s9174_s16 = sshll.u32 %s9302_s12, 4  ;;  %s9175_s16 = int_to_ptr.vmem [resolvable:$false] %s9174_s16 }
  0x7f   : > { %s9176_s18 = scalar_lea.vmem %s9175_s16, 1536  ;;  %p9177_p0 = scmp.lt.s32.totalorder %s9520_s13, %s9175_s16 }
  0x80   : > { %p9172_p10 = pnand %p9170_p4, %p9156_p13  ;;  %p9178_p5 = scmp.lt.s32.totalorder %s9176_s18, %s9169_s28 }
  0x82   : > { %p9173_p12 = pneg %p9172_p10  ;;  %p9179_p8 = por %p9178_p5, %p9177_p0 }
  0x84   : > { %p9180_p7 = pnand %p9179_p8, %p9173_p12 }
  0x86   : > { %9183 = shalt.err (!%p9180_p7)
}
  0x87   : > { %7795 = dma.hbm_to_vmem [thread:$0]  (!%p9515_p6), %s9513_s24, 768, %s9520_s13, %s272_s17  }
  0x88   : > { %s294_s10 = scalar_lea.vmem [#allocation6], %s7752_s15  ;;  %s290_s29 = sand.u32 1, %s9294_s27  }
  0x89   : > { %s302_s11 = sshll.u32 %s294_s10, 4  ;;  %s7609_s22 = smul.u32 98304, %s9294_s27  ;;  %s9551_s11 = int_to_ptr.vmem [resolvable:$true] %s302_s11 }
  0x8a   : > { %s9559_s16 = scalar_lea.sflag [#allocation7], %s290_s29  ;;  %s9189_s27 = scalar_lea.hbm %s10684_s1, 196608 }
  0x8b   : > { %s9557_s12 = scalar_lea.hbm %s10684_s1, %s7609_s22 }
  0x8c   : > { %s9184_s18 = scalar_lea.hbm %s9557_s12, 98304  ;;  %p9190_p1 = scmp.lt.u32.totalorder %s9557_s12, %s10684_s1 }
  0x8d   : > { %p9185_p2 = scmp.ne.s32.totalorder %s9557_s12, %s9184_s18  ;;  %p9191_p4 = scmp.lt.u32.totalorder %s9189_s27, %s9184_s18 }
  0x8e   : > { %p9193_p12 = scmp.lt.u32.totalorder %s9184_s18, %s9557_s12 }
  0x8f   : > { %p9187_p9 = pnand %p9185_p2, %p9156_p13  ;;  %p9192_p10 = por %p9191_p4, %p9190_p1 }
  0x91   : > { %p9188_p3 = pneg %p9187_p9  ;;  %p9194_p0 = por %p9193_p12, %p9192_p10 }
  0x93   : > { %p9195_p5 = pnand %p9194_p0, %p9188_p3 }
  0x95   : > { %9198 = shalt.err (!%p9195_p5)
}
  0x96   : > { %s9199_s17 = scalar_lea.vmem %s9551_s11, 98304  ;;  %s9303_s10 = smov [#allocation6]  }
  0x97   : > { %p9200_p8 = scmp.ne.s32.totalorder %s9551_s11, %s9199_s17  ;;  %s9204_s29 = sshll.u32 %s9303_s10, 4  ;;  %s9205_s29 = int_to_ptr.vmem [resolvable:$false] %s9204_s29 }
  0x98   : > { %s9206_s22 = scalar_lea.vmem %s9205_s29, 196608  ;;  %p9207_p9 = scmp.lt.s32.totalorder %s9551_s11, %s9205_s29 }
  0x99   : > { %p9202_p7 = pnand %p9200_p8, %p9156_p13  ;;  %p9208_p1 = scmp.lt.s32.totalorder %s9206_s22, %s9199_s17 }
  0x9b   : > { %p9203_p2 = pneg %p9202_p7  ;;  %p9209_p4 = por %p9208_p1, %p9207_p9 }
  0x9d   : > { %p9210_p10 = pnand %p9209_p4, %p9203_p2 }
  0x9f   : > { %9213 = shalt.err (!%p9210_p10)
}
  0xa0   : > { %s9304_s9 = smov 128   ;;  %s9305_s28 = smov 8  }
  0xa1   : > { %7798 = dma.hbm_to_vmem [thread:$0]  (!%p9515_p6), %s9557_s12, 98304, %s9551_s11, %s9559_s16, %s9304_s9, %s9304_s9, %s9305_s28  }
  0xa2   : > { %p10699_p13 = scmp.ne.s32.totalorder %s10693_s8, 0 }
  0xa3   : > { %s316_s18 = sand.u32 (!%p10699_p13), 1, %s9286_s25  }
  0xa4   : > { %314 = sbr.rel (%p10699_p13) target bundleno = 1666 (0x682), region = 48  ;;  %s317_s24 = scalar_lea.sflag (!%p10699_p13), [#allocation4], %s316_s18 }
  0xa5   : > { %s7753_s23 = smul.u32 (!%p10699_p13), 48, %s316_s18 }
  0xa7   : > { %s9588_s27 = scalar_lea.vmem (!%p10699_p13), [#allocation3], %s7753_s23 }
  0xab   : > { %9257 = dma.done.wait (%p9501_p11), %s317_s24, 768  }
  0xac   : > { %9259 = vsyncadd (%p9501_p11), %s317_s24, 4294966528  ;;  %s325_s15 = sand.u32 1, %s9373_s30   ;;  %s7754_s14 = smul.u32 6144, %s316_s18 }
  0xad   : > { %s326_s11 = scalar_lea.sflag [#allocation7], %s325_s15 }
  0xae   : > { %s9595_s12 = scalar_lea.vmem [#allocation6], %s7754_s14 }
  0xaf   : > { %9261 = dma.done.wait (%p9501_p11), %s326_s11, 98304  }
  0xb0   : > { %9263 = vsyncadd (%p9501_p11), %s326_s11, 4294868992  ;;  %p10700_p6 = scmp.eq.s32.totalorder %s9373_s30, 0 }
  0xb2   : > { %9265 = dma.done.wait (%p10700_p6), [#allocation7], 32   ;;  %p10701_p3 = pmov %p10700_p6 }
  0xb4   : > { %9267 = vsyncadd (%p10701_p3), [#allocation7], 4294967264  ;;  %p10702_p12 = pmov %p10701_p3 }
  0xb5   : > { %p10703_p0 = pmov %p10701_p3 }
  0xb6   : > { %9269 = dma.done.wait (%p10702_p12), [#allocation10], 2064  }
  0xb7   : > { %9271 = vsyncadd (%p10703_p0), [#allocation10], 4294965232  ;;  %p10704_p5 = pmov %p10703_p0 }
  0xb8   : > { %p10705_p8 = pmov %p10703_p0 }
  0xb9   : > { %9273 = dma.done.wait (%p10704_p5), [#allocation13], 16  }
  0xba   : > { %9275 = vsyncadd (%p10705_p8), [#allocation13], 4294967280  ;;  %p10706_p11 = scmp.ne.s32.totalorder %s9373_s30, 0 }
  0xbb   : > { %v9306_v0 = vmov (!%p10706_p11), 0.0  }
  0xbc   : > { %382 = sbr.rel (%p10706_p11) target bundleno = 195 (0xc3), region = 76  ;;  %383 = vst [vmem:[#allocation2] sm:$0xf] (!%p10706_p11), %v9306_v0 }
  0xc3 PF: > { %v7856_v1 = vld [vmem:[%s9595_s12 + $0x4] ss:$8 sps:$4 sm:$0xff]   ;;  %v7860_v3 = vld [vmem:[%s9595_s12] ss:$8 sps:$4 sm:$0xff]   ;;  %v7862_v5 = vld [vmem:[%s9595_s12 + $0x14] ss:$8 sps:$4 sm:$0xff]   ;;  %v1169_v39 = vlaneseq }
  0xc4   : > { %v7858_v2 = vld [vmem:[%s9595_s12 + $0xc04] ss:$8 sps:$4 sm:$0xff]   ;;  %5347 = vmatprep.subr.bf16.mxu1 %v7856_v1  ;;  %v7861_v4 = vld [vmem:[%s9595_s12 + $0xc00] ss:$8 sps:$4 sm:$0xff]   ;;  %v7864_v6 = vld [vmem:[%s9595_s12 + $0xc14] ss:$8 sps:$4 sm:$0xff]  }
  0xc5   : > { %5839 = vmatprep.subr.bf16.mxu0 %v7858_v2  ;;  %5348 = vmatpush1.bf16.msra.mxu1 %v7860_v3  ;;  %v7866_v7 = vld [vmem:[%s9595_s12 + $0x10] ss:$8 sps:$4 sm:$0xff]   ;;  %v7868_v9 = vld [vmem:[%s9595_s12 + $0x24] ss:$8 sps:$4 sm:$0xff]   ;;  %v7872_v11 = vld [vmem:[%s9595_s12 + $0x20] ss:$8 sps:$4 sm:$0xff]  }
  0xc6   : > { %5840 = vmatpush1.bf16.msra.mxu0 %v7861_v4  ;;  %5349 = vmatprep.subr.bf16.mxu1 %v7862_v5  ;;  %v7867_v8 = vld [vmem:[%s9595_s12 + $0xc10] ss:$8 sps:$4 sm:$0xff]   ;;  %v7870_v10 = vld [vmem:[%s9595_s12 + $0xc24] ss:$8 sps:$4 sm:$0xff]   ;;  %v7873_v12 = vld [vmem:[%s9595_s12 + $0xc20] ss:$8 sps:$4 sm:$0xff]  }
  0xc7   : > { %5841 = vmatprep.subr.bf16.mxu0 %v7864_v6  ;;  %v7874_v13 = vld [vmem:[%s9595_s12 + $0x34] ss:$8 sps:$4 sm:$0xff]   ;;  %v7878_v15 = vld [vmem:[%s9595_s12 + $0x30] ss:$8 sps:$4 sm:$0xff]   ;;  %v7880_v17 = vld [vmem:[%s9595_s12 + $0x44] ss:$8 sps:$4 sm:$0xff]  }
  0xc8   : > { %v7876_v14 = vld [vmem:[%s9595_s12 + $0xc34] ss:$8 sps:$4 sm:$0xff]   ;;  %v7879_v16 = vld [vmem:[%s9595_s12 + $0xc30] ss:$8 sps:$4 sm:$0xff]   ;;  %v7882_v18 = vld [vmem:[%s9595_s12 + $0xc44] ss:$8 sps:$4 sm:$0xff]  }
  0xc9   : > { %5350 = vmatpush1.bf16.msra.mxu1 %v7866_v7  ;;  %v7884_v19 = vld [vmem:[%s9595_s12 + $0x40] ss:$8 sps:$4 sm:$0xff]   ;;  %v7886_v21 = vld [vmem:[%s9595_s12 + $0x54] ss:$8 sps:$4 sm:$0xff]   ;;  %v7890_v23 = vld [vmem:[%s9595_s12 + $0x50] ss:$8 sps:$4 sm:$0xff]  }
  0xca   : > { %5842 = vmatpush1.bf16.msra.mxu0 %v7867_v8  ;;  %5351 = vmatprep.subr.bf16.mxu1 %v7868_v9  ;;  %v7885_v20 = vld [vmem:[%s9595_s12 + $0xc40] ss:$8 sps:$4 sm:$0xff]   ;;  %v7888_v22 = vld [vmem:[%s9595_s12 + $0xc54] ss:$8 sps:$4 sm:$0xff]   ;;  %v7891_v24 = vld [vmem:[%s9595_s12 + $0xc50] ss:$8 sps:$4 sm:$0xff]  }
  0xcb   : > { %5843 = vmatprep.subr.bf16.mxu0 %v7870_v10  ;;  %v7892_v25 = vld [vmem:[%s9595_s12 + $0x64] ss:$8 sps:$4 sm:$0xff]   ;;  %v7896_v27 = vld [vmem:[%s9595_s12 + $0x60] ss:$8 sps:$4 sm:$0xff]   ;;  %v7898_v29 = vld [vmem:[%s9595_s12 + $0x74] ss:$8 sps:$4 sm:$0xff]  }
  0xcc   : > { %v7894_v26 = vld [vmem:[%s9595_s12 + $0xc64] ss:$8 sps:$4 sm:$0xff]   ;;  %v7897_v28 = vld [vmem:[%s9595_s12 + $0xc60] ss:$8 sps:$4 sm:$0xff]   ;;  %v7900_v30 = vld [vmem:[%s9595_s12 + $0xc74] ss:$8 sps:$4 sm:$0xff]  }
  0xcd   : > { %5352 = vmatpush1.bf16.msra.mxu1 %v7872_v11  ;;  %v7902_v31 = vld [vmem:[%s9595_s12 + $0x70] ss:$8 sps:$4 sm:$0xff]   ;;  %v7904_v33 = vld [vmem:[%s9595_s12 + $0x84] ss:$8 sps:$4 sm:$0xff]   ;;  %v7908_v35 = vld [vmem:[%s9595_s12 + $0x80] ss:$8 sps:$4 sm:$0xff]  }
  0xce   : > { %5844 = vmatpush1.bf16.msra.mxu0 %v7873_v12  ;;  %5353 = vmatprep.subr.bf16.mxu1 %v7874_v13  ;;  %v7903_v32 = vld [vmem:[%s9595_s12 + $0xc70] ss:$8 sps:$4 sm:$0xff]   ;;  %v7906_v34 = vld [vmem:[%s9595_s12 + $0xc84] ss:$8 sps:$4 sm:$0xff]   ;;  %v7909_v36 = vld [vmem:[%s9595_s12 + $0xc80] ss:$8 sps:$4 sm:$0xff]  }
  0xcf   : > { %5845 = vmatprep.subr.bf16.mxu0 %v7876_v14  ;;  %v9307_v37 = vmov 1966171168   ;;  %v7910_v40 = vld [vmem:[%s9595_s12 + $0x94] ss:$8 sps:$4 sm:$0xff]   ;;  %v7914_v42 = vld [vmem:[%s9595_s12 + $0x90] ss:$8 sps:$4 sm:$0xff]  }
  0xd0   : > { %v1167_v38 = vunpack.c.l.s4 %v9307_v37  ;;  %v7912_v41 = vld [vmem:[%s9595_s12 + $0xc94] ss:$8 sps:$4 sm:$0xff]   ;;  %v9654_v44 = vshrl.u32 %v1169_v39, 7  ;;  %v7915_v45 = vld [vmem:[%s9595_s12 + $0xc90] ss:$8 sps:$4 sm:$0xff]   ;;  %p7575_p7 = scmp.ne.s32.totalorder %s9373_s30, 1 }
  0xd1   : > { %5354 = vmatpush1.bf16.msra.mxu1 %v7878_v15  ;;  %v7916_v46 = vld [vmem:[%s9595_s12 + $0xa4] ss:$8 sps:$4 sm:$0xff]   ;;  %v7920_v48 = vld [vmem:[%s9595_s12 + $0xa0] ss:$8 sps:$4 sm:$0xff]   ;;  %v7922_v51 = vld [vmem:[%s9595_s12 + $0xb4] ss:$8 sps:$4 sm:$0xff]  }
  0xd2   : > { %5846 = vmatpush1.bf16.msra.mxu0 %v7879_v16  ;;  %5355 = vmatprep.subr.bf16.mxu1 %v7880_v17  ;;  %v1168_v43 = vunpack.c.0.s8 %v1167_v38  ;;  %v7918_v47 = vld [vmem:[%s9595_s12 + $0xca4] ss:$8 sps:$4 sm:$0xff]   ;;  %v7921_v49 = vld [vmem:[%s9595_s12 + $0xca0] ss:$8 sps:$4 sm:$0xff]   ;;  %v7924_v52 = vld [vmem:[%s9595_s12 + $0xcb4] ss:$8 sps:$4 sm:$0xff]  }
  0xd3   : > { %5847 = vmatprep.subr.bf16.mxu0 %v7882_v18  ;;  %v9667_v53 = vld [vmem:[%s9588_s27] sm:$0xff]  ;;  %v9674_v57 = vld [vmem:[%s9588_s27 + $0x18] sm:$0xff]  ;;  %vm9310_vm0 = vmmov (!%p7575_p7), 0   ;;  %vm6671_vm1 = vcmask (!%p7575_p7), 58368  }
  0xd4   : > { %v9662_v50 = vsub.s32 %v1168_v43, %v9654_v44  ;;  %v7926_v54 = vld [vmem:[%s9595_s12 + $0xb0] ss:$8 sps:$4 sm:$0xff]   ;;  %v7928_v58 = vld [vmem:[%s9595_s12 + $0xc4] ss:$8 sps:$4 sm:$0xff]   ;;  %v7932_v0 = vld [vmem:[%s9595_s12 + $0xc0] ss:$8 sps:$4 sm:$0xff]  }
  0xd5   : > { %5356 = vmatpush1.bf16.msra.mxu1 %v7884_v19  ;;  %v7927_v56 = vld [vmem:[%s9595_s12 + $0xcb0] ss:$8 sps:$4 sm:$0xff]   ;;  %v7930_v59 = vld [vmem:[%s9595_s12 + $0xcc4] ss:$8 sps:$4 sm:$0xff]   ;;  %v7933_v1 = vld [vmem:[%s9595_s12 + $0xcc0] ss:$8 sps:$4 sm:$0xff]  }
  0xd6   : > { %5848 = vmatpush1.bf16.msra.mxu0 %v7885_v20  ;;  %5357 = vmatprep.subr.bf16.mxu1 %v7886_v21  ;;  %v1172_v55 = vrot.slane %v9667_v53, %v9662_v50  ;;  %v1319_v61 = vrot.slane %v9674_v57, %v9662_v50  ;;  %v7934_v2 = vld [vmem:[%s9595_s12 + $0xd4] ss:$8 sps:$4 sm:$0xff]   ;;  %v7938_v5 = vld [vmem:[%s9595_s12 + $0xd0] ss:$8 sps:$4 sm:$0xff]   ;;  %v7940_v7 = vld [vmem:[%s9595_s12 + $0xe4] ss:$8 sps:$4 sm:$0xff]  }
  0xd7   : > { %5849 = vmatprep.subr.bf16.mxu0 %v7888_v22  ;;  %v7936_v3 = vld [vmem:[%s9595_s12 + $0xcd4] ss:$8 sps:$4 sm:$0xff]   ;;  %v7939_v6 = vld [vmem:[%s9595_s12 + $0xcd0] ss:$8 sps:$4 sm:$0xff]   ;;  %v7942_v8 = vld [vmem:[%s9595_s12 + $0xce4] ss:$8 sps:$4 sm:$0xff]  }
  0xd8   : > { %v1180_v60 = vcombine.high %v1172_v55, %v1172_v55  ;;  %v1327_v63 = vcombine.high %v1319_v61, %v1319_v61  ;;  %v7944_v9 = vld [vmem:[%s9595_s12 + $0xe0] ss:$8 sps:$4 sm:$0xff]   ;;  %v7946_v11 = vld [vmem:[%s9595_s12 + $0xf4] ss:$8 sps:$4 sm:$0xff]   ;;  %v7950_v13 = vld [vmem:[%s9595_s12 + $0xf0] ss:$8 sps:$4 sm:$0xff]   ;;  %v9699_v17 = vrot.slane %v1172_v55, %v9662_v50  ;;  %v9702_v18 = vrot.slane %v1319_v61, %v9662_v50 }
  0xd9   : > { %5358 = vmatpush1.bf16.msra.mxu1 %v7890_v23  ;;  %v7945_v10 = vld [vmem:[%s9595_s12 + $0xce0] ss:$8 sps:$4 sm:$0xff]   ;;  %v7948_v12 = vld [vmem:[%s9595_s12 + $0xcf4] ss:$8 sps:$4 sm:$0xff]   ;;  %v7951_v14 = vld [vmem:[%s9595_s12 + $0xcf0] ss:$8 sps:$4 sm:$0xff]  }
  0xda   : > { %5850 = vmatpush1.bf16.msra.mxu0 %v7891_v24  ;;  %5359 = vmatprep.subr.bf16.mxu1 %v7892_v25  ;;  %v1202_v62 = vrot.slane %v1180_v60, %v9662_v50  ;;  %v1349_v4 = vrot.slane %v1327_v63, %v9662_v50  ;;  %v7955_v15 = vld [vmem:[%s9595_s12 + $0x104] ss:$8 sps:$4 sm:$0xff]   ;;  %v7953_v19 = vld [vmem:[%s9595_s12 + $0x100] ss:$8 sps:$4 sm:$0xff]   ;;  %v7962_v21 = vld [vmem:[%s9595_s12 + $0x114] ss:$8 sps:$4 sm:$0xff]  }
  0xdb   : > { %5851 = vmatprep.subr.bf16.mxu0 %v7894_v26  ;;  %v7959_v16 = vld [vmem:[%s9595_s12 + $0xd04] ss:$8 sps:$4 sm:$0xff]   ;;  %v7957_v20 = vld [vmem:[%s9595_s12 + $0xd00] ss:$8 sps:$4 sm:$0xff]   ;;  %v7965_v22 = vld [vmem:[%s9595_s12 + $0xd14] ss:$8 sps:$4 sm:$0xff]  }
  0xdc   : > { %5379 = vmatprep.mubr.bf16.mxu1 %v1202_v62  ;;  %5871 = vmatprep.mubr.bf16.mxu0 %v1349_v4  ;;  %v1212_v23 = vcombine.high %v1202_v62, %v1202_v62  ;;  %v1359_v24 = vcombine.high %v1349_v4, %v1349_v4  ;;  %v7960_v25 = vld [vmem:[%s9595_s12 + $0x110] ss:$8 sps:$4 sm:$0xff]   ;;  %v7978_v37 = vld [vmem:[%s9595_s12 + $0x140] ss:$8 sps:$4 sm:$0xff]   ;;  %v7986_v39 = vld [vmem:[%s9595_s12 + $0x154] ss:$8 sps:$4 sm:$0xff]  }
  0xdd   : > { %5360 = vmatpush1.bf16.msra.mxu1 %v7896_v27  ;;  %v7963_v26 = vld [vmem:[%s9595_s12 + $0xd10] ss:$8 sps:$4 sm:$0xff]   ;;  %v7968_v27 = vld [vmem:[%s9595_s12 + $0x124] ss:$8 sps:$4 sm:$0xff]   ;;  %v7981_v38 = vld [vmem:[%s9595_s12 + $0xd40] ss:$8 sps:$4 sm:$0xff]  }
  0xde   : > { %5852 = vmatpush1.bf16.msra.mxu0 %v7897_v28  ;;  %5361 = vmatprep.subr.bf16.mxu1 %v7898_v29  ;;  %v7971_v28 = vld [vmem:[%s9595_s12 + $0xd24] ss:$8 sps:$4 sm:$0xff]   ;;  %v7966_v29 = vld [vmem:[%s9595_s12 + $0x120] ss:$8 sps:$4 sm:$0xff]   ;;  %v8013_v60 = vld [vmem:[%s9595_s12 + $0xd94] ss:$8 sps:$4 sm:$0xff]  }
  0xdf   : > { %5853 = vmatprep.subr.bf16.mxu0 %v7900_v30  ;;  %v7969_v30 = vld [vmem:[%s9595_s12 + $0xd20] ss:$8 sps:$4 sm:$0xff]   ;;  %v7992_v43 = vld [vmem:[%s9595_s12 + $0x164] ss:$8 sps:$4 sm:$0xff]   ;;  %v8008_v61 = vld [vmem:[%s9595_s12 + $0x190] ss:$8 sps:$4 sm:$0xff]  }
  0xe0   : > { %v8007_v55 = vld [vmem:[%s9595_s12 + $0xd84] ss:$8 sps:$4 sm:$0xff]   ;;  %v8011_v62 = vld [vmem:[%s9595_s12 + $0xd90] ss:$8 sps:$4 sm:$0xff]   ;;  %v8025_v4 = vld [vmem:[%s9595_s12 + $0xdb4] ss:$8 sps:$4 sm:$0xff]  }
  0xe1   : > { %5362 = vmatpush1.bf16.msra.mxu1 %v7902_v31  ;;  %v7974_v31 = vld [vmem:[%s9595_s12 + $0x134] ss:$8 sps:$4 sm:$0xff]   ;;  %v8016_v63 = vld [vmem:[%s9595_s12 + $0x1a4] ss:$8 sps:$4 sm:$0xff]  }
  0xe2   : > { %5854 = vmatpush1.bf16.msra.mxu0 %v7903_v32  ;;  %5363 = vmatprep.subr.bf16.mxu1 %v7904_v33  ;;  %v7977_v32 = vld [vmem:[%s9595_s12 + $0xd34] ss:$8 sps:$4 sm:$0xff]   ;;  %v7972_v33 = vld [vmem:[%s9595_s12 + $0x130] ss:$8 sps:$4 sm:$0xff]  }
  0xe3   : > { %5855 = vmatprep.subr.bf16.mxu0 %v7906_v34  ;;  %v7975_v34 = vld [vmem:[%s9595_s12 + $0xd30] ss:$8 sps:$4 sm:$0xff]  }
  0xe5   : > { %5364 = vmatpush1.bf16.msra.mxu1 %v7908_v35  ;;  %v7980_v35 = vld [vmem:[%s9595_s12 + $0x144] ss:$8 sps:$4 sm:$0xff]  }
  0xe6   : > { %5856 = vmatpush1.bf16.msra.mxu0 %v7909_v36  ;;  %5365 = vmatprep.subr.bf16.mxu1 %v7910_v40  ;;  %v7983_v36 = vld [vmem:[%s9595_s12 + $0xd44] ss:$8 sps:$4 sm:$0xff]   ;;  %v7989_v40 = vld [vmem:[%s9595_s12 + $0xd54] ss:$8 sps:$4 sm:$0xff]  }
  0xe7   : > { %5857 = vmatprep.subr.bf16.mxu0 %v7912_v41  ;;  %v7984_v41 = vld [vmem:[%s9595_s12 + $0x150] ss:$8 sps:$4 sm:$0xff]  }
  0xe9   : > { %5366 = vmatpush1.bf16.msra.mxu1 %v7914_v42  ;;  %v7987_v42 = vld [vmem:[%s9595_s12 + $0xd50] ss:$8 sps:$4 sm:$0xff]  }
  0xea   : > { %5858 = vmatpush1.bf16.msra.mxu0 %v7915_v45  ;;  %5367 = vmatprep.subr.bf16.mxu1 %v7916_v46  ;;  %v7995_v45 = vld [vmem:[%s9595_s12 + $0xd64] ss:$8 sps:$4 sm:$0xff]   ;;  %v7990_v46 = vld [vmem:[%s9595_s12 + $0x160] ss:$8 sps:$4 sm:$0xff]  }
  0xeb   : > { %5859 = vmatprep.subr.bf16.mxu0 %v7918_v47  ;;  %v7993_v47 = vld [vmem:[%s9595_s12 + $0xd60] ss:$8 sps:$4 sm:$0xff]  }
  0xed   : > { %5368 = vmatpush1.bf16.msra.mxu1 %v7920_v48  ;;  %v7998_v48 = vld [vmem:[%s9595_s12 + $0x174] ss:$8 sps:$4 sm:$0xff]  }
  0xee   : > { %5860 = vmatpush1.bf16.msra.mxu0 %v7921_v49  ;;  %5369 = vmatprep.subr.bf16.mxu1 %v7922_v51  ;;  %v8001_v49 = vld [vmem:[%s9595_s12 + $0xd74] ss:$8 sps:$4 sm:$0xff]   ;;  %v7996_v51 = vld [vmem:[%s9595_s12 + $0x170] ss:$8 sps:$4 sm:$0xff]  }
  0xef   : > { %5861 = vmatprep.subr.bf16.mxu0 %v7924_v52  ;;  %v7999_v52 = vld [vmem:[%s9595_s12 + $0xd70] ss:$8 sps:$4 sm:$0xff]  }
  0xf1   : > { %5370 = vmatpush1.bf16.msra.mxu1 %v7926_v54  ;;  %v8004_v54 = vld [vmem:[%s9595_s12 + $0x184] ss:$8 sps:$4 sm:$0xff]  }
  0xf2   : > { %5862 = vmatpush1.bf16.msra.mxu0 %v7927_v56  ;;  %5371 = vmatprep.subr.bf16.mxu1 %v7928_v58  ;;  %v8002_v56 = vld [vmem:[%s9595_s12 + $0x180] ss:$8 sps:$4 sm:$0xff]  }
  0xf3   : > { %5863 = vmatprep.subr.bf16.mxu0 %v7930_v59  ;;  %v8005_v58 = vld [vmem:[%s9595_s12 + $0xd80] ss:$8 sps:$4 sm:$0xff]   ;;  %v8010_v59 = vld [vmem:[%s9595_s12 + $0x194] ss:$8 sps:$4 sm:$0xff]  }
  0xf5   : > { %5372 = vmatpush1.bf16.msra.mxu1 %v7932_v0  ;;  %v8019_v0 = vld [vmem:[%s9595_s12 + $0xda4] ss:$8 sps:$4 sm:$0xff]  }
  0xf6   : > { %5864 = vmatpush1.bf16.msra.mxu0 %v7933_v1  ;;  %5373 = vmatprep.subr.bf16.mxu1 %v7934_v2  ;;  %v8014_v1 = vld [vmem:[%s9595_s12 + $0x1a0] ss:$8 sps:$4 sm:$0xff]  }
  0xf7   : > { %5865 = vmatprep.subr.bf16.mxu0 %v7936_v3  ;;  %v8017_v2 = vld [vmem:[%s9595_s12 + $0xda0] ss:$8 sps:$4 sm:$0xff]   ;;  %v8022_v3 = vld [vmem:[%s9595_s12 + $0x1b4] ss:$8 sps:$4 sm:$0xff]  }
  0xf9   : > { %5374 = vmatpush1.bf16.msra.mxu1 %v7938_v5  ;;  %v8020_v5 = vld [vmem:[%s9595_s12 + $0x1b0] ss:$8 sps:$4 sm:$0xff]  }
  0xfa   : > { %5866 = vmatpush1.bf16.msra.mxu0 %v7939_v6  ;;  %5375 = vmatprep.subr.bf16.mxu1 %v7940_v7  ;;  %v8023_v6 = vld [vmem:[%s9595_s12 + $0xdb0] ss:$8 sps:$4 sm:$0xff]   ;;  %v8028_v7 = vld [vmem:[%s9595_s12 + $0x1c4] ss:$8 sps:$4 sm:$0xff]  }
  0xfb   : > { %5867 = vmatprep.subr.bf16.mxu0 %v7942_v8  ;;  %v8031_v8 = vld [vmem:[%s9595_s12 + $0xdc4] ss:$8 sps:$4 sm:$0xff]  }
  0xfd   : > { %5376 = vmatpush1.bf16.msra.mxu1 %v7944_v9  ;;  %v8026_v9 = vld [vmem:[%s9595_s12 + $0x1c0] ss:$8 sps:$4 sm:$0xff]  }
  0xfe   : > { %5868 = vmatpush1.bf16.msra.mxu0 %v7945_v10  ;;  %5377 = vmatprep.subr.bf16.mxu1 %v7946_v11  ;;  %v8029_v10 = vld [vmem:[%s9595_s12 + $0xdc0] ss:$8 sps:$4 sm:$0xff]   ;;  %v8034_v11 = vld [vmem:[%s9595_s12 + $0x1d4] ss:$8 sps:$4 sm:$0xff]  }
  0xff   : > { %5869 = vmatprep.subr.bf16.mxu0 %v7948_v12  ;;  %v8037_v12 = vld [vmem:[%s9595_s12 + $0xdd4] ss:$8 sps:$4 sm:$0xff]  }
 0x101   : > { %5378 = vmatpush1.bf16.msra.mxu1 %v7950_v13  ;;  %v8032_v13 = vld [vmem:[%s9595_s12 + $0x1d0] ss:$8 sps:$4 sm:$0xff]  }
 0x102   : > { %5870 = vmatpush1.bf16.msra.mxu0 %v7951_v14  ;;  %5388 = vmatprep.subr.bf16.mxu1 %v7955_v15  ;;  %v8035_v14 = vld [vmem:[%s9595_s12 + $0xdd0] ss:$8 sps:$4 sm:$0xff]   ;;  %v8040_v15 = vld [vmem:[%s9595_s12 + $0x1e4] ss:$8 sps:$4 sm:$0xff]  }
 0x103   : > { %5880 = vmatprep.subr.bf16.mxu0 %v7959_v16  ;;  %v8043_v16 = vld [vmem:[%s9595_s12 + $0xde4] ss:$8 sps:$4 sm:$0xff]  }
 0x104   : > { %5380 = vmatmul.mubr.bf16.vlgmr.msra.gmra.mrb[0].mxu1 %v9699_v17 }
 0x105   : > { %5872 = vmatmul.mubr.bf16.vlgmr.msra.gmra.mrb[0].mxu0 %v9702_v18  ;;  %5389 = vmatpush1.bf16.msra.mxu1 %v7953_v19  ;;  %v1165_v19 = vcombine.high %v9667_v53, %v9667_v53  ;;  %v8044_v53 = vld [vmem:[%s9595_s12 + $0x1f0] ss:$8 sps:$4 sm:$0xff]  }
 0x106   : > { %5881 = vmatpush1.bf16.msra.mxu0 %v7957_v20  ;;  %5390 = vmatprep.subr.bf16.mxu1 %v7962_v21  ;;  %v1312_v20 = vcombine.high %v9674_v57, %v9674_v57  ;;  %v8038_v21 = vld [vmem:[%s9595_s12 + $0x1e0] ss:$8 sps:$4 sm:$0xff]   ;;  %v8047_v57 = vld [vmem:[%s9595_s12 + $0xdf0] ss:$8 sps:$4 sm:$0xff]  }
 0x107   : > { %5882 = vmatprep.subr.bf16.mxu0 %v7965_v22  ;;  %5420 = vmatprep.mubr.bf16.mxu1 %v1212_v23  ;;  %v8041_v22 = vld [vmem:[%s9595_s12 + $0xde0] ss:$8 sps:$4 sm:$0xff]   ;;  %v8046_v23 = vld [vmem:[%s9595_s12 + $0x1f4] ss:$8 sps:$4 sm:$0xff]  }
 0x108   : > { %5912 = vmatprep.mubr.bf16.mxu0 %v1359_v24  ;;  %v8049_v24 = vld [vmem:[%s9595_s12 + $0xdf4] ss:$8 sps:$4 sm:$0xff]  }
 0x109   : > { %5391 = vmatpush1.bf16.msra.mxu1 %v7960_v25  ;;  %v9771_v25 = vrot.slane %v1165_v19, %v9662_v50  ;;  %v8116_v19 = vld [vmem:[%s9595_s12 + $0x2b0] ss:$8 sps:$4 sm:$0xff]  }
 0x10a   : > { %5883 = vmatpush1.bf16.msra.mxu0 %v7963_v26  ;;  %5392 = vmatprep.subr.bf16.mxu1 %v7968_v27  ;;  %v9774_v26 = vrot.slane %v1312_v20, %v9662_v50  ;;  %v8052_v27 = vld [vmem:[%s9595_s12 + $0x204] ss:$8 sps:$4 sm:$0xff]   ;;  %v8119_v20 = vld [vmem:[%s9595_s12 + $0xeb0] ss:$8 sps:$4 sm:$0xff]  }
 0x10b   : > { %5884 = vmatprep.subr.bf16.mxu0 %v7971_v28  ;;  %v8055_v28 = vld [vmem:[%s9595_s12 + $0xe04] ss:$8 sps:$4 sm:$0xff]  }
 0x10d   : > { %5393 = vmatpush1.bf16.msra.mxu1 %v7966_v29  ;;  %v1181_v29 = vcombine.high %v9771_v25, %v9771_v25 }
 0x10e   : > { %5885 = vmatpush1.bf16.msra.mxu0 %v7969_v30  ;;  %5394 = vmatprep.subr.bf16.mxu1 %v7974_v31  ;;  %v1328_v30 = vcombine.high %v9774_v26, %v9774_v26  ;;  %v1210_v31 = vcombine.high %v9699_v17, %v9699_v17 }
 0x10f   : > { %5886 = vmatprep.subr.bf16.mxu0 %v7977_v32  ;;  %v1357_v32 = vcombine.high %v9702_v18, %v9702_v18  ;;  %v8056_v18 = vld [vmem:[%s9595_s12 + $0x210] ss:$8 sps:$4 sm:$0xff]  }
 0x110   : > { %v9796_v17 = vrot.slane %v1328_v30, %v9662_v50  ;;  %v8139_v30 = vld [vmem:[%s9595_s12 + $0xee4] ss:$8 sps:$4 sm:$0xff]  }
 0x111   : > { %5395 = vmatpush1.bf16.msra.mxu1 %v7972_v33  ;;  %v8050_v33 = vld [vmem:[%s9595_s12 + $0x200] ss:$8 sps:$4 sm:$0xff]  }
 0x112   : > { %5887 = vmatpush1.bf16.msra.mxu0 %v7975_v34  ;;  %5396 = vmatprep.subr.bf16.mxu1 %v7980_v35  ;;  %v8053_v34 = vld [vmem:[%s9595_s12 + $0xe00] ss:$8 sps:$4 sm:$0xff]   ;;  %v8058_v35 = vld [vmem:[%s9595_s12 + $0x214] ss:$8 sps:$4 sm:$0xff]  }
 0x113   : > { %5888 = vmatprep.subr.bf16.mxu0 %v7983_v36  ;;  %v8061_v36 = vld [vmem:[%s9595_s12 + $0xe14] ss:$8 sps:$4 sm:$0xff]  }
 0x115   : > { %5397 = vmatpush1.bf16.msra.mxu1 %v7978_v37  ;;  %v9793_v37 = vrot.slane %v1181_v29, %v9662_v50  ;;  %v8136_v29 = vld [vmem:[%s9595_s12 + $0x2e4] ss:$8 sps:$4 sm:$0xff]  }
 0x116   : > { %5889 = vmatpush1.bf16.msra.mxu0 %v7981_v38  ;;  %5398 = vmatprep.subr.bf16.mxu1 %v7986_v39  ;;  %v8059_v38 = vld [vmem:[%s9595_s12 + $0xe10] ss:$8 sps:$4 sm:$0xff]   ;;  %v8064_v39 = vld [vmem:[%s9595_s12 + $0x224] ss:$8 sps:$4 sm:$0xff]  }
 0x117   : > { %5890 = vmatprep.subr.bf16.mxu0 %v7989_v40  ;;  %v8067_v40 = vld [vmem:[%s9595_s12 + $0xe24] ss:$8 sps:$4 sm:$0xff]  }
 0x119   : > { %5399 = vmatpush1.bf16.msra.mxu1 %v7984_v41  ;;  %v8062_v41 = vld [vmem:[%s9595_s12 + $0x220] ss:$8 sps:$4 sm:$0xff]  }
 0x11a   : > { %5891 = vmatpush1.bf16.msra.mxu0 %v7987_v42  ;;  %5400 = vmatprep.subr.bf16.mxu1 %v7992_v43  ;;  %v8065_v42 = vld [vmem:[%s9595_s12 + $0xe20] ss:$8 sps:$4 sm:$0xff]   ;;  %v8070_v43 = vld [vmem:[%s9595_s12 + $0x234] ss:$8 sps:$4 sm:$0xff]  }
 0x11b   : > { %5892 = vmatprep.subr.bf16.mxu0 %v7995_v45  ;;  %v8073_v45 = vld [vmem:[%s9595_s12 + $0xe34] ss:$8 sps:$4 sm:$0xff]  }
 0x11d   : > { %5401 = vmatpush1.bf16.msra.mxu1 %v7990_v46  ;;  %v8068_v46 = vld [vmem:[%s9595_s12 + $0x230] ss:$8 sps:$4 sm:$0xff]  }
 0x11e   : > { %5893 = vmatpush1.bf16.msra.mxu0 %v7993_v47  ;;  %5402 = vmatprep.subr.bf16.mxu1 %v7998_v48  ;;  %v8071_v47 = vld [vmem:[%s9595_s12 + $0xe30] ss:$8 sps:$4 sm:$0xff]   ;;  %v8076_v48 = vld [vmem:[%s9595_s12 + $0x244] ss:$8 sps:$4 sm:$0xff]  }
 0x11f   : > { %5894 = vmatprep.subr.bf16.mxu0 %v8001_v49  ;;  %v8079_v49 = vld [vmem:[%s9595_s12 + $0xe44] ss:$8 sps:$4 sm:$0xff]  }
 0x121   : > { %5403 = vmatpush1.bf16.msra.mxu1 %v7996_v51  ;;  %v8074_v51 = vld [vmem:[%s9595_s12 + $0x240] ss:$8 sps:$4 sm:$0xff]  }
 0x122   : > { %5895 = vmatpush1.bf16.msra.mxu0 %v7999_v52  ;;  %5404 = vmatprep.subr.bf16.mxu1 %v8004_v54  ;;  %v8077_v52 = vld [vmem:[%s9595_s12 + $0xe40] ss:$8 sps:$4 sm:$0xff]   ;;  %v8082_v54 = vld [vmem:[%s9595_s12 + $0x254] ss:$8 sps:$4 sm:$0xff]  }
 0x123   : > { %5896 = vmatprep.subr.bf16.mxu0 %v8007_v55  ;;  %v8085_v55 = vld [vmem:[%s9595_s12 + $0xe54] ss:$8 sps:$4 sm:$0xff]  }
 0x125   : > { %5405 = vmatpush1.bf16.msra.mxu1 %v8002_v56  ;;  %v8080_v56 = vld [vmem:[%s9595_s12 + $0x250] ss:$8 sps:$4 sm:$0xff]  }
 0x126   : > { %5897 = vmatpush1.bf16.msra.mxu0 %v8005_v58  ;;  %5406 = vmatprep.subr.bf16.mxu1 %v8010_v59  ;;  %v8083_v58 = vld [vmem:[%s9595_s12 + $0xe50] ss:$8 sps:$4 sm:$0xff]   ;;  %v8088_v59 = vld [vmem:[%s9595_s12 + $0x264] ss:$8 sps:$4 sm:$0xff]  }
 0x127   : > { %5898 = vmatprep.subr.bf16.mxu0 %v8013_v60  ;;  %v8091_v60 = vld [vmem:[%s9595_s12 + $0xe64] ss:$8 sps:$4 sm:$0xff]  }
 0x129   : > { %5407 = vmatpush1.bf16.msra.mxu1 %v8008_v61  ;;  %v8086_v61 = vld [vmem:[%s9595_s12 + $0x260] ss:$8 sps:$4 sm:$0xff]  }
 0x12a   : > { %5899 = vmatpush1.bf16.msra.mxu0 %v8011_v62  ;;  %5408 = vmatprep.subr.bf16.mxu1 %v8016_v63  ;;  %v8089_v62 = vld [vmem:[%s9595_s12 + $0xe60] ss:$8 sps:$4 sm:$0xff]   ;;  %v8094_v63 = vld [vmem:[%s9595_s12 + $0x274] ss:$8 sps:$4 sm:$0xff]  }
 0x12b   : > { %5900 = vmatprep.subr.bf16.mxu0 %v8019_v0  ;;  %v8097_v0 = vld [vmem:[%s9595_s12 + $0xe74] ss:$8 sps:$4 sm:$0xff]  }
 0x12d   : > { %5409 = vmatpush1.bf16.msra.mxu1 %v8014_v1  ;;  %v8092_v1 = vld [vmem:[%s9595_s12 + $0x270] ss:$8 sps:$4 sm:$0xff]  }
 0x12e   : > { %5901 = vmatpush1.bf16.msra.mxu0 %v8017_v2  ;;  %5410 = vmatprep.subr.bf16.mxu1 %v8022_v3  ;;  %v8095_v2 = vld [vmem:[%s9595_s12 + $0xe70] ss:$8 sps:$4 sm:$0xff]   ;;  %v8100_v3 = vld [vmem:[%s9595_s12 + $0x284] ss:$8 sps:$4 sm:$0xff]  }
 0x12f   : > { %5902 = vmatprep.subr.bf16.mxu0 %v8025_v4  ;;  %v8103_v4 = vld [vmem:[%s9595_s12 + $0xe84] ss:$8 sps:$4 sm:$0xff]  }
 0x131   : > { %5411 = vmatpush1.bf16.msra.mxu1 %v8020_v5  ;;  %v8098_v5 = vld [vmem:[%s9595_s12 + $0x280] ss:$8 sps:$4 sm:$0xff]  }
 0x132   : > { %5903 = vmatpush1.bf16.msra.mxu0 %v8023_v6  ;;  %5412 = vmatprep.subr.bf16.mxu1 %v8028_v7  ;;  %v8101_v6 = vld [vmem:[%s9595_s12 + $0xe80] ss:$8 sps:$4 sm:$0xff]   ;;  %v8106_v7 = vld [vmem:[%s9595_s12 + $0x294] ss:$8 sps:$4 sm:$0xff]  }
 0x133   : > { %5904 = vmatprep.subr.bf16.mxu0 %v8031_v8  ;;  %v8109_v8 = vld [vmem:[%s9595_s12 + $0xe94] ss:$8 sps:$4 sm:$0xff]  }
 0x135   : > { %5413 = vmatpush1.bf16.msra.mxu1 %v8026_v9  ;;  %v8104_v9 = vld [vmem:[%s9595_s12 + $0x290] ss:$8 sps:$4 sm:$0xff]  }
 0x136   : > { %5905 = vmatpush1.bf16.msra.mxu0 %v8029_v10  ;;  %5414 = vmatprep.subr.bf16.mxu1 %v8034_v11  ;;  %v8107_v10 = vld [vmem:[%s9595_s12 + $0xe90] ss:$8 sps:$4 sm:$0xff]   ;;  %v8112_v11 = vld [vmem:[%s9595_s12 + $0x2a4] ss:$8 sps:$4 sm:$0xff]  }
 0x137   : > { %5906 = vmatprep.subr.bf16.mxu0 %v8037_v12  ;;  %v8115_v12 = vld [vmem:[%s9595_s12 + $0xea4] ss:$8 sps:$4 sm:$0xff]  }
 0x139   : > { %5415 = vmatpush1.bf16.msra.mxu1 %v8032_v13  ;;  %v8110_v13 = vld [vmem:[%s9595_s12 + $0x2a0] ss:$8 sps:$4 sm:$0xff]  }
 0x13a   : > { %5907 = vmatpush1.bf16.msra.mxu0 %v8035_v14  ;;  %5416 = vmatprep.subr.bf16.mxu1 %v8040_v15  ;;  %v8113_v14 = vld [vmem:[%s9595_s12 + $0xea0] ss:$8 sps:$4 sm:$0xff]   ;;  %v8118_v15 = vld [vmem:[%s9595_s12 + $0x2b4] ss:$8 sps:$4 sm:$0xff]  }
 0x13b   : > { %5908 = vmatprep.subr.bf16.mxu0 %v8043_v16  ;;  %v8121_v16 = vld [vmem:[%s9595_s12 + $0xeb4] ss:$8 sps:$4 sm:$0xff]  }
 0x13d   : > { %5417 = vmatpush1.bf16.msra.mxu1 %v8038_v21  ;;  %v8124_v21 = vld [vmem:[%s9595_s12 + $0x2c4] ss:$8 sps:$4 sm:$0xff]  }
 0x13e   : > { %5909 = vmatpush1.bf16.msra.mxu0 %v8041_v22  ;;  %5418 = vmatprep.subr.bf16.mxu1 %v8046_v23  ;;  %v8127_v22 = vld [vmem:[%s9595_s12 + $0xec4] ss:$8 sps:$4 sm:$0xff]   ;;  %v8122_v23 = vld [vmem:[%s9595_s12 + $0x2c0] ss:$8 sps:$4 sm:$0xff]  }
 0x13f   : > { %5910 = vmatprep.subr.bf16.mxu0 %v8049_v24  ;;  %v8125_v24 = vld [vmem:[%s9595_s12 + $0xec0] ss:$8 sps:$4 sm:$0xff]  }
 0x141   : > { %5419 = vmatpush1.bf16.msra.mxu1 %v8044_v53  ;;  %v8130_v53 = vld [vmem:[%s9595_s12 + $0x2d4] ss:$8 sps:$4 sm:$0xff]  }
 0x142   : > { %5911 = vmatpush1.bf16.msra.mxu0 %v8047_v57  ;;  %5429 = vmatprep.subr.bf16.mxu1 %v8052_v27  ;;  %v8133_v57 = vld [vmem:[%s9595_s12 + $0xed4] ss:$8 sps:$4 sm:$0xff]   ;;  %v8128_v27 = vld [vmem:[%s9595_s12 + $0x2d0] ss:$8 sps:$4 sm:$0xff]  }
 0x143   : > { %5921 = vmatprep.subr.bf16.mxu0 %v8055_v28  ;;  %v8131_v28 = vld [vmem:[%s9595_s12 + $0xed0] ss:$8 sps:$4 sm:$0xff]  }
 0x144   : > { %5421 = vmatmul.mubr.bf16.vlgmr.msra.gmra.mrb[0].mxu1 %v1210_v31  ;;  %v8134_v31 = vld [vmem:[%s9595_s12 + $0x2e0] ss:$8 sps:$4 sm:$0xff]  }
 0x145   : > { %5913 = vmatmul.mubr.bf16.vlgmr.msra.gmra.mrb[0].mxu0 %v1357_v32  ;;  %5430 = vmatpush1.bf16.msra.mxu1 %v8050_v33  ;;  %v8137_v32 = vld [vmem:[%s9595_s12 + $0xee0] ss:$8 sps:$4 sm:$0xff]   ;;  %v8142_v33 = vld [vmem:[%s9595_s12 + $0x2f4] ss:$8 sps:$4 sm:$0xff]  }
 0x146   : > { %5922 = vmatpush1.bf16.msra.mxu0 %v8053_v34  ;;  %5431 = vmatprep.subr.bf16.mxu1 %v8058_v35  ;;  %v8145_v34 = vld [vmem:[%s9595_s12 + $0xef4] ss:$8 sps:$4 sm:$0xff]   ;;  %v8140_v35 = vld [vmem:[%s9595_s12 + $0x2f0] ss:$8 sps:$4 sm:$0xff]  }
 0x147   : > { %5923 = vmatprep.subr.bf16.mxu0 %v8061_v36  ;;  %5461 = vmatprep.mubr.bf16.mxu1 %v9793_v37  ;;  %v8143_v36 = vld [vmem:[%s9595_s12 + $0xef0] ss:$8 sps:$4 sm:$0xff]  }
 0x148   : > { %5953 = vmatprep.mubr.bf16.mxu0 %v9796_v17 }
 0x149   : > { %5432 = vmatpush1.bf16.msra.mxu1 %v8056_v18  ;;  %v8148_v18 = vld [vmem:[%s9595_s12 + $0x304] ss:$8 sps:$4 sm:$0xff]  }
 0x14a   : > { %5924 = vmatpush1.bf16.msra.mxu0 %v8059_v38  ;;  %5433 = vmatprep.subr.bf16.mxu1 %v8064_v39  ;;  %v8151_v38 = vld [vmem:[%s9595_s12 + $0xf04] ss:$8 sps:$4 sm:$0xff]   ;;  %v9862_v39 = vrot.slane %v9771_v25, %v9662_v50  ;;  %v1213_v25 = vcombine.high %v9793_v37, %v9793_v37 }
 0x14b   : > { %5925 = vmatprep.subr.bf16.mxu0 %v8067_v40  ;;  %v9866_v40 = vrot.slane %v9774_v26, %v9662_v50  ;;  %v8152_v26 = vld [vmem:[%s9595_s12 + $0x310] ss:$8 sps:$4 sm:$0xff]   ;;  %v8160_v37 = vld [vmem:[%s9595_s12 + $0x324] ss:$8 sps:$4 sm:$0xff]  }
 0x14d   : > { %5434 = vmatpush1.bf16.msra.mxu1 %v8062_v41  ;;  %v8146_v41 = vld [vmem:[%s9595_s12 + $0x300] ss:$8 sps:$4 sm:$0xff]  }
 0x14e   : > { %5926 = vmatpush1.bf16.msra.mxu0 %v8065_v42  ;;  %5435 = vmatprep.subr.bf16.mxu1 %v8070_v43  ;;  %v8149_v42 = vld [vmem:[%s9595_s12 + $0xf00] ss:$8 sps:$4 sm:$0xff]   ;;  %v8154_v43 = vld [vmem:[%s9595_s12 + $0x314] ss:$8 sps:$4 sm:$0xff]  }
 0x14f   : > { %5927 = vmatprep.subr.bf16.mxu0 %v8073_v45  ;;  %v8157_v45 = vld [vmem:[%s9595_s12 + $0xf14] ss:$8 sps:$4 sm:$0xff]  }
 0x151   : > { %5436 = vmatpush1.bf16.msra.mxu1 %v8068_v46  ;;  %v1360_v46 = vcombine.high %v9796_v17, %v9796_v17  ;;  %v8158_v17 = vld [vmem:[%s9595_s12 + $0x320] ss:$8 sps:$4 sm:$0xff]  }
 0x152   : > { %5928 = vmatpush1.bf16.msra.mxu0 %v8071_v47  ;;  %5437 = vmatprep.subr.bf16.mxu1 %v8076_v48  ;;  %v8155_v47 = vld [vmem:[%s9595_s12 + $0xf10] ss:$8 sps:$4 sm:$0xff]   ;;  %v8163_v48 = vld [vmem:[%s9595_s12 + $0xf24] ss:$8 sps:$4 sm:$0xff]  }
 0x153   : > { %5929 = vmatprep.subr.bf16.mxu0 %v8079_v49  ;;  %v8161_v49 = vld [vmem:[%s9595_s12 + $0xf20] ss:$8 sps:$4 sm:$0xff]  }
 0x155   : > { %5438 = vmatpush1.bf16.msra.mxu1 %v8074_v51  ;;  %v8166_v51 = vld [vmem:[%s9595_s12 + $0x334] ss:$8 sps:$4 sm:$0xff]  }
 0x156   : > { %5930 = vmatpush1.bf16.msra.mxu0 %v8077_v52  ;;  %5439 = vmatprep.subr.bf16.mxu1 %v8082_v54  ;;  %v8169_v52 = vld [vmem:[%s9595_s12 + $0xf34] ss:$8 sps:$4 sm:$0xff]   ;;  %v8164_v54 = vld [vmem:[%s9595_s12 + $0x330] ss:$8 sps:$4 sm:$0xff]  }
 0x157   : > { %5931 = vmatprep.subr.bf16.mxu0 %v8085_v55  ;;  %v8167_v55 = vld [vmem:[%s9595_s12 + $0xf30] ss:$8 sps:$4 sm:$0xff]  }
 0x159   : > { %5440 = vmatpush1.bf16.msra.mxu1 %v8080_v56  ;;  %v8172_v56 = vld [vmem:[%s9595_s12 + $0x344] ss:$8 sps:$4 sm:$0xff]  }
 0x15a   : > { %5932 = vmatpush1.bf16.msra.mxu0 %v8083_v58  ;;  %5441 = vmatprep.subr.bf16.mxu1 %v8088_v59  ;;  %v8175_v58 = vld [vmem:[%s9595_s12 + $0xf44] ss:$8 sps:$4 sm:$0xff]   ;;  %v8170_v59 = vld [vmem:[%s9595_s12 + $0x340] ss:$8 sps:$4 sm:$0xff]  }
 0x15b   : > { %5933 = vmatprep.subr.bf16.mxu0 %v8091_v60  ;;  %v8173_v60 = vld [vmem:[%s9595_s12 + $0xf40] ss:$8 sps:$4 sm:$0xff]  }
 0x15d   : > { %5442 = vmatpush1.bf16.msra.mxu1 %v8086_v61  ;;  %v8178_v61 = vld [vmem:[%s9595_s12 + $0x354] ss:$8 sps:$4 sm:$0xff]  }
 0x15e   : > { %5934 = vmatpush1.bf16.msra.mxu0 %v8089_v62  ;;  %5443 = vmatprep.subr.bf16.mxu1 %v8094_v63  ;;  %v8181_v62 = vld [vmem:[%s9595_s12 + $0xf54] ss:$8 sps:$4 sm:$0xff]   ;;  %v8176_v63 = vld [vmem:[%s9595_s12 + $0x350] ss:$8 sps:$4 sm:$0xff]  }
 0x15f   : > { %5935 = vmatprep.subr.bf16.mxu0 %v8097_v0  ;;  %v8179_v0 = vld [vmem:[%s9595_s12 + $0xf50] ss:$8 sps:$4 sm:$0xff]  }
 0x161   : > { %5444 = vmatpush1.bf16.msra.mxu1 %v8092_v1  ;;  %v8184_v1 = vld [vmem:[%s9595_s12 + $0x364] ss:$8 sps:$4 sm:$0xff]  }
 0x162   : > { %5936 = vmatpush1.bf16.msra.mxu0 %v8095_v2  ;;  %5445 = vmatprep.subr.bf16.mxu1 %v8100_v3  ;;  %v8187_v2 = vld [vmem:[%s9595_s12 + $0xf64] ss:$8 sps:$4 sm:$0xff]   ;;  %v8182_v3 = vld [vmem:[%s9595_s12 + $0x360] ss:$8 sps:$4 sm:$0xff]  }
 0x163   : > { %5937 = vmatprep.subr.bf16.mxu0 %v8103_v4  ;;  %v8185_v4 = vld [vmem:[%s9595_s12 + $0xf60] ss:$8 sps:$4 sm:$0xff]  }
 0x165   : > { %5446 = vmatpush1.bf16.msra.mxu1 %v8098_v5  ;;  %v8190_v5 = vld [vmem:[%s9595_s12 + $0x374] ss:$8 sps:$4 sm:$0xff]  }
 0x166   : > { %5938 = vmatpush1.bf16.msra.mxu0 %v8101_v6  ;;  %5447 = vmatprep.subr.bf16.mxu1 %v8106_v7  ;;  %v8193_v6 = vld [vmem:[%s9595_s12 + $0xf74] ss:$8 sps:$4 sm:$0xff]   ;;  %v8188_v7 = vld [vmem:[%s9595_s12 + $0x370] ss:$8 sps:$4 sm:$0xff]  }
 0x167   : > { %5939 = vmatprep.subr.bf16.mxu0 %v8109_v8  ;;  %v8191_v8 = vld [vmem:[%s9595_s12 + $0xf70] ss:$8 sps:$4 sm:$0xff]  }
 0x169   : > { %5448 = vmatpush1.bf16.msra.mxu1 %v8104_v9  ;;  %v8196_v9 = vld [vmem:[%s9595_s12 + $0x384] ss:$8 sps:$4 sm:$0xff]  }
 0x16a   : > { %5940 = vmatpush1.bf16.msra.mxu0 %v8107_v10  ;;  %5449 = vmatprep.subr.bf16.mxu1 %v8112_v11  ;;  %v8199_v10 = vld [vmem:[%s9595_s12 + $0xf84] ss:$8 sps:$4 sm:$0xff]   ;;  %v8194_v11 = vld [vmem:[%s9595_s12 + $0x380] ss:$8 sps:$4 sm:$0xff]  }
 0x16b   : > { %5941 = vmatprep.subr.bf16.mxu0 %v8115_v12  ;;  %v8197_v12 = vld [vmem:[%s9595_s12 + $0xf80] ss:$8 sps:$4 sm:$0xff]  }
 0x16d   : > { %5450 = vmatpush1.bf16.msra.mxu1 %v8110_v13  ;;  %v8202_v13 = vld [vmem:[%s9595_s12 + $0x394] ss:$8 sps:$4 sm:$0xff]  }
 0x16e   : > { %5942 = vmatpush1.bf16.msra.mxu0 %v8113_v14  ;;  %5451 = vmatprep.subr.bf16.mxu1 %v8118_v15  ;;  %v8205_v14 = vld [vmem:[%s9595_s12 + $0xf94] ss:$8 sps:$4 sm:$0xff]   ;;  %v8200_v15 = vld [vmem:[%s9595_s12 + $0x390] ss:$8 sps:$4 sm:$0xff]  }
 0x16f   : > { %5943 = vmatprep.subr.bf16.mxu0 %v8121_v16  ;;  %v8203_v16 = vld [vmem:[%s9595_s12 + $0xf90] ss:$8 sps:$4 sm:$0xff]  }
 0x171   : > { %5452 = vmatpush1.bf16.msra.mxu1 %v8116_v19  ;;  %v8208_v19 = vld [vmem:[%s9595_s12 + $0x3a4] ss:$8 sps:$4 sm:$0xff]  }
 0x172   : > { %5944 = vmatpush1.bf16.msra.mxu0 %v8119_v20  ;;  %5453 = vmatprep.subr.bf16.mxu1 %v8124_v21  ;;  %v8211_v20 = vld [vmem:[%s9595_s12 + $0xfa4] ss:$8 sps:$4 sm:$0xff]   ;;  %v8206_v21 = vld [vmem:[%s9595_s12 + $0x3a0] ss:$8 sps:$4 sm:$0xff]  }
 0x173   : > { %5945 = vmatprep.subr.bf16.mxu0 %v8127_v22  ;;  %v8209_v22 = vld [vmem:[%s9595_s12 + $0xfa0] ss:$8 sps:$4 sm:$0xff]  }
 0x175   : > { %5454 = vmatpush1.bf16.msra.mxu1 %v8122_v23  ;;  %v8214_v23 = vld [vmem:[%s9595_s12 + $0x3b4] ss:$8 sps:$4 sm:$0xff]  }
 0x176   : > { %5946 = vmatpush1.bf16.msra.mxu0 %v8125_v24  ;;  %5455 = vmatprep.subr.bf16.mxu1 %v8130_v53  ;;  %v8217_v24 = vld [vmem:[%s9595_s12 + $0xfb4] ss:$8 sps:$4 sm:$0xff]   ;;  %v8212_v53 = vld [vmem:[%s9595_s12 + $0x3b0] ss:$8 sps:$4 sm:$0xff]  }
 0x177   : > { %5947 = vmatprep.subr.bf16.mxu0 %v8133_v57  ;;  %v8215_v57 = vld [vmem:[%s9595_s12 + $0xfb0] ss:$8 sps:$4 sm:$0xff]  }
 0x179   : > { %5456 = vmatpush1.bf16.msra.mxu1 %v8128_v27  ;;  %v8220_v27 = vld [vmem:[%s9595_s12 + $0x3c4] ss:$8 sps:$4 sm:$0xff]  }
 0x17a   : > { %5948 = vmatpush1.bf16.msra.mxu0 %v8131_v28  ;;  %5457 = vmatprep.subr.bf16.mxu1 %v8136_v29  ;;  %v8223_v28 = vld [vmem:[%s9595_s12 + $0xfc4] ss:$8 sps:$4 sm:$0xff]   ;;  %v8218_v29 = vld [vmem:[%s9595_s12 + $0x3c0] ss:$8 sps:$4 sm:$0xff]  }
 0x17b   : > { %5949 = vmatprep.subr.bf16.mxu0 %v8139_v30  ;;  %v8221_v30 = vld [vmem:[%s9595_s12 + $0xfc0] ss:$8 sps:$4 sm:$0xff]  }
 0x17d   : > { %5458 = vmatpush1.bf16.msra.mxu1 %v8134_v31  ;;  %v8226_v31 = vld [vmem:[%s9595_s12 + $0x3d4] ss:$8 sps:$4 sm:$0xff]  }
 0x17e   : > { %5950 = vmatpush1.bf16.msra.mxu0 %v8137_v32  ;;  %5459 = vmatprep.subr.bf16.mxu1 %v8142_v33  ;;  %v8229_v32 = vld [vmem:[%s9595_s12 + $0xfd4] ss:$8 sps:$4 sm:$0xff]   ;;  %v8224_v33 = vld [vmem:[%s9595_s12 + $0x3d0] ss:$8 sps:$4 sm:$0xff]  }
 0x17f   : > { %5951 = vmatprep.subr.bf16.mxu0 %v8145_v34  ;;  %v8227_v34 = vld [vmem:[%s9595_s12 + $0xfd0] ss:$8 sps:$4 sm:$0xff]  }
 0x181   : > { %5460 = vmatpush1.bf16.msra.mxu1 %v8140_v35  ;;  %v8232_v35 = vld [vmem:[%s9595_s12 + $0x3e4] ss:$8 sps:$4 sm:$0xff]  }
 0x182   : > { %5952 = vmatpush1.bf16.msra.mxu0 %v8143_v36  ;;  %5470 = vmatprep.subr.bf16.mxu1 %v8148_v18  ;;  %v8235_v36 = vld [vmem:[%s9595_s12 + $0xfe4] ss:$8 sps:$4 sm:$0xff]   ;;  %v8230_v18 = vld [vmem:[%s9595_s12 + $0x3e0] ss:$8 sps:$4 sm:$0xff]  }
 0x183   : > { %5962 = vmatprep.subr.bf16.mxu0 %v8151_v38  ;;  %v8233_v38 = vld [vmem:[%s9595_s12 + $0xfe0] ss:$8 sps:$4 sm:$0xff]  }
 0x184   : > { %5462 = vmatmul.mubr.bf16.vlgmr.msra.gmra.mrb[0].mxu1 %v9862_v39 }
 0x185   : > { %5954 = vmatmul.mubr.bf16.vlgmr.msra.gmra.mrb[0].mxu0 %v9866_v40  ;;  %5471 = vmatpush1.bf16.msra.mxu1 %v8146_v41  ;;  %v9933_v41 = vld.sshfl [vmem:[%s9588_s27 + $0x8] sm:$0xff pattern:$0x75316420] }
 0x186   : > { %5963 = vmatpush1.bf16.msra.mxu0 %v8149_v42  ;;  %5472 = vmatprep.subr.bf16.mxu1 %v8154_v43  ;;  %v9936_v42 = vld.sshfl [vmem:[%s9588_s27 + $0x20] sm:$0xff pattern:$0x75316420] }
 0x187   : > { %5964 = vmatprep.subr.bf16.mxu0 %v8157_v45  ;;  %5502 = vmatprep.mubr.bf16.mxu1 %v1213_v25  ;;  %v8238_v43 = vld [vmem:[%s9595_s12 + $0x3f4] ss:$8 sps:$4 sm:$0xff]   ;;  %v8236_v25 = vld [vmem:[%s9595_s12 + $0x3f0] ss:$8 sps:$4 sm:$0xff]  }
 0x188   : > { %5994 = vmatprep.mubr.bf16.mxu0 %v1360_v46  ;;  %v8241_v45 = vld [vmem:[%s9595_s12 + $0xff4] ss:$8 sps:$4 sm:$0xff]   ;;  %v8239_v46 = vld [vmem:[%s9595_s12 + $0xff0] ss:$8 sps:$4 sm:$0xff]  }
 0x189   : > { %5473 = vmatpush1.bf16.msra.mxu1 %v8152_v26  ;;  %v8244_v26 = vld [vmem:[%s9595_s12 + $0x404] ss:$8 sps:$4 sm:$0xff]  }
 0x18a   : > { %5965 = vmatpush1.bf16.msra.mxu0 %v8155_v47  ;;  %5474 = vmatprep.subr.bf16.mxu1 %v8160_v37  ;;  %v8247_v47 = vld [vmem:[%s9595_s12 + $0x1004] ss:$8 sps:$4 sm:$0xff]   ;;  %v1229_v37 = vcombine.high %v9933_v41, %v9933_v41 }
 0x18b   : > { %5966 = vmatprep.subr.bf16.mxu0 %v8163_v48  ;;  %v1376_v48 = vcombine.high %v9936_v42, %v9936_v42 }
 0x18d   : > { %5475 = vmatpush1.bf16.msra.mxu1 %v8158_v17  ;;  %v8242_v17 = vld [vmem:[%s9595_s12 + $0x400] ss:$8 sps:$4 sm:$0xff]  }
 0x18e   : > { %5967 = vmatpush1.bf16.msra.mxu0 %v8161_v49  ;;  %5476 = vmatprep.subr.bf16.mxu1 %v8166_v51  ;;  %v8245_v49 = vld [vmem:[%s9595_s12 + $0x1000] ss:$8 sps:$4 sm:$0xff]   ;;  %v1211_v51 = vcombine.high %v9862_v39, %v9862_v39  ;;  %v8248_v39 = vld [vmem:[%s9595_s12 + $0x410] ss:$8 sps:$4 sm:$0xff]  }
 0x18f   : > { %5968 = vmatprep.subr.bf16.mxu0 %v8169_v52  ;;  %v1358_v52 = vcombine.high %v9866_v40, %v9866_v40  ;;  %v8251_v40 = vld [vmem:[%s9595_s12 + $0x1010] ss:$8 sps:$4 sm:$0xff]  }
 0x191   : > { %5477 = vmatpush1.bf16.msra.mxu1 %v8164_v54  ;;  %v8250_v54 = vld [vmem:[%s9595_s12 + $0x414] ss:$8 sps:$4 sm:$0xff]  }
 0x192   : > { %5969 = vmatpush1.bf16.msra.mxu0 %v8167_v55  ;;  %5478 = vmatprep.subr.bf16.mxu1 %v8172_v56  ;;  %v8253_v55 = vld [vmem:[%s9595_s12 + $0x1014] ss:$8 sps:$4 sm:$0xff]   ;;  %v9957_v56 = vrot.slane %v1229_v37, %v9662_v50  ;;  %v8328_v37 = vld [vmem:[%s9595_s12 + $0x4e4] ss:$8 sps:$4 sm:$0xff]  }
 0x193   : > { %5970 = vmatprep.subr.bf16.mxu0 %v8175_v58  ;;  %v9960_v58 = vrot.slane %v1376_v48, %v9662_v50  ;;  %v8331_v48 = vld [vmem:[%s9595_s12 + $0x10e4] ss:$8 sps:$4 sm:$0xff]  }
 0x195   : > { %5479 = vmatpush1.bf16.msra.mxu1 %v8170_v59  ;;  %v8256_v59 = vld [vmem:[%s9595_s12 + $0x424] ss:$8 sps:$4 sm:$0xff]  }
 0x196   : > { %5971 = vmatpush1.bf16.msra.mxu0 %v8173_v60  ;;  %5480 = vmatprep.subr.bf16.mxu1 %v8178_v61  ;;  %v8259_v60 = vld [vmem:[%s9595_s12 + $0x1024] ss:$8 sps:$4 sm:$0xff]   ;;  %v8254_v61 = vld [vmem:[%s9595_s12 + $0x420] ss:$8 sps:$4 sm:$0xff]  }
 0x197   : > { %5972 = vmatprep.subr.bf16.mxu0 %v8181_v62  ;;  %v8257_v62 = vld [vmem:[%s9595_s12 + $0x1020] ss:$8 sps:$4 sm:$0xff]  }
 0x199   : > { %5481 = vmatpush1.bf16.msra.mxu1 %v8176_v63  ;;  %v8262_v63 = vld [vmem:[%s9595_s12 + $0x434] ss:$8 sps:$4 sm:$0xff]  }
 0x19a   : > { %5973 = vmatpush1.bf16.msra.mxu0 %v8179_v0  ;;  %5482 = vmatprep.subr.bf16.mxu1 %v8184_v1  ;;  %v8265_v0 = vld [vmem:[%s9595_s12 + $0x1034] ss:$8 sps:$4 sm:$0xff]   ;;  %v8260_v1 = vld [vmem:[%s9595_s12 + $0x430] ss:$8 sps:$4 sm:$0xff]  }
 0x19b   : > { %5974 = vmatprep.subr.bf16.mxu0 %v8187_v2  ;;  %v8263_v2 = vld [vmem:[%s9595_s12 + $0x1030] ss:$8 sps:$4 sm:$0xff]  }
 0x19d   : > { %5483 = vmatpush1.bf16.msra.mxu1 %v8182_v3  ;;  %v8268_v3 = vld [vmem:[%s9595_s12 + $0x444] ss:$8 sps:$4 sm:$0xff]  }
 0x19e   : > { %5975 = vmatpush1.bf16.msra.mxu0 %v8185_v4  ;;  %5484 = vmatprep.subr.bf16.mxu1 %v8190_v5  ;;  %v8271_v4 = vld [vmem:[%s9595_s12 + $0x1044] ss:$8 sps:$4 sm:$0xff]   ;;  %v8266_v5 = vld [vmem:[%s9595_s12 + $0x440] ss:$8 sps:$4 sm:$0xff]  }
 0x19f   : > { %5976 = vmatprep.subr.bf16.mxu0 %v8193_v6  ;;  %v8269_v6 = vld [vmem:[%s9595_s12 + $0x1040] ss:$8 sps:$4 sm:$0xff]  }
 0x1a1   : > { %5485 = vmatpush1.bf16.msra.mxu1 %v8188_v7  ;;  %v8274_v7 = vld [vmem:[%s9595_s12 + $0x454] ss:$8 sps:$4 sm:$0xff]  }
 0x1a2   : > { %5977 = vmatpush1.bf16.msra.mxu0 %v8191_v8  ;;  %5486 = vmatprep.subr.bf16.mxu1 %v8196_v9  ;;  %v8277_v8 = vld [vmem:[%s9595_s12 + $0x1054] ss:$8 sps:$4 sm:$0xff]   ;;  %v8272_v9 = vld [vmem:[%s9595_s12 + $0x450] ss:$8 sps:$4 sm:$0xff]  }
 0x1a3   : > { %5978 = vmatprep.subr.bf16.mxu0 %v8199_v10  ;;  %v8275_v10 = vld [vmem:[%s9595_s12 + $0x1050] ss:$8 sps:$4 sm:$0xff]  }
 0x1a5   : > { %5487 = vmatpush1.bf16.msra.mxu1 %v8194_v11  ;;  %v8280_v11 = vld [vmem:[%s9595_s12 + $0x464] ss:$8 sps:$4 sm:$0xff]  }
 0x1a6   : > { %5979 = vmatpush1.bf16.msra.mxu0 %v8197_v12  ;;  %5488 = vmatprep.subr.bf16.mxu1 %v8202_v13  ;;  %v8283_v12 = vld [vmem:[%s9595_s12 + $0x1064] ss:$8 sps:$4 sm:$0xff]   ;;  %v8278_v13 = vld [vmem:[%s9595_s12 + $0x460] ss:$8 sps:$4 sm:$0xff]  }
 0x1a7   : > { %5980 = vmatprep.subr.bf16.mxu0 %v8205_v14  ;;  %v8281_v14 = vld [vmem:[%s9595_s12 + $0x1060] ss:$8 sps:$4 sm:$0xff]  }
 0x1a9   : > { %5489 = vmatpush1.bf16.msra.mxu1 %v8200_v15  ;;  %v8286_v15 = vld [vmem:[%s9595_s12 + $0x474] ss:$8 sps:$4 sm:$0xff]  }
 0x1aa   : > { %5981 = vmatpush1.bf16.msra.mxu0 %v8203_v16  ;;  %5490 = vmatprep.subr.bf16.mxu1 %v8208_v19  ;;  %v8289_v16 = vld [vmem:[%s9595_s12 + $0x1074] ss:$8 sps:$4 sm:$0xff]   ;;  %v8284_v19 = vld [vmem:[%s9595_s12 + $0x470] ss:$8 sps:$4 sm:$0xff]  }
 0x1ab   : > { %5982 = vmatprep.subr.bf16.mxu0 %v8211_v20  ;;  %v8287_v20 = vld [vmem:[%s9595_s12 + $0x1070] ss:$8 sps:$4 sm:$0xff]  }
 0x1ad   : > { %5491 = vmatpush1.bf16.msra.mxu1 %v8206_v21  ;;  %v8292_v21 = vld [vmem:[%s9595_s12 + $0x484] ss:$8 sps:$4 sm:$0xff]  }
 0x1ae   : > { %5983 = vmatpush1.bf16.msra.mxu0 %v8209_v22  ;;  %5492 = vmatprep.subr.bf16.mxu1 %v8214_v23  ;;  %v8295_v22 = vld [vmem:[%s9595_s12 + $0x1084] ss:$8 sps:$4 sm:$0xff]   ;;  %v8290_v23 = vld [vmem:[%s9595_s12 + $0x480] ss:$8 sps:$4 sm:$0xff]  }
 0x1af   : > { %5984 = vmatprep.subr.bf16.mxu0 %v8217_v24  ;;  %v8293_v24 = vld [vmem:[%s9595_s12 + $0x1080] ss:$8 sps:$4 sm:$0xff]  }
 0x1b1   : > { %5493 = vmatpush1.bf16.msra.mxu1 %v8212_v53  ;;  %v8298_v53 = vld [vmem:[%s9595_s12 + $0x494] ss:$8 sps:$4 sm:$0xff]  }
 0x1b2   : > { %5985 = vmatpush1.bf16.msra.mxu0 %v8215_v57  ;;  %5494 = vmatprep.subr.bf16.mxu1 %v8220_v27  ;;  %v8301_v57 = vld [vmem:[%s9595_s12 + $0x1094] ss:$8 sps:$4 sm:$0xff]   ;;  %v8296_v27 = vld [vmem:[%s9595_s12 + $0x490] ss:$8 sps:$4 sm:$0xff]  }
 0x1b3   : > { %5986 = vmatprep.subr.bf16.mxu0 %v8223_v28  ;;  %v8299_v28 = vld [vmem:[%s9595_s12 + $0x1090] ss:$8 sps:$4 sm:$0xff]  }
 0x1b5   : > { %5495 = vmatpush1.bf16.msra.mxu1 %v8218_v29  ;;  %v8304_v29 = vld [vmem:[%s9595_s12 + $0x4a4] ss:$8 sps:$4 sm:$0xff]  }
 0x1b6   : > { %5987 = vmatpush1.bf16.msra.mxu0 %v8221_v30  ;;  %5496 = vmatprep.subr.bf16.mxu1 %v8226_v31  ;;  %v8307_v30 = vld [vmem:[%s9595_s12 + $0x10a4] ss:$8 sps:$4 sm:$0xff]   ;;  %v8302_v31 = vld [vmem:[%s9595_s12 + $0x4a0] ss:$8 sps:$4 sm:$0xff]  }
 0x1b7   : > { %5988 = vmatprep.subr.bf16.mxu0 %v8229_v32  ;;  %v8305_v32 = vld [vmem:[%s9595_s12 + $0x10a0] ss:$8 sps:$4 sm:$0xff]  }
 0x1b9   : > { %5497 = vmatpush1.bf16.msra.mxu1 %v8224_v33  ;;  %v8310_v33 = vld [vmem:[%s9595_s12 + $0x4b4] ss:$8 sps:$4 sm:$0xff]  }
 0x1ba   : > { %5989 = vmatpush1.bf16.msra.mxu0 %v8227_v34  ;;  %5498 = vmatprep.subr.bf16.mxu1 %v8232_v35  ;;  %v8313_v34 = vld [vmem:[%s9595_s12 + $0x10b4] ss:$8 sps:$4 sm:$0xff]   ;;  %v8308_v35 = vld [vmem:[%s9595_s12 + $0x4b0] ss:$8 sps:$4 sm:$0xff]  }
 0x1bb   : > { %5990 = vmatprep.subr.bf16.mxu0 %v8235_v36  ;;  %v8311_v36 = vld [vmem:[%s9595_s12 + $0x10b0] ss:$8 sps:$4 sm:$0xff]  }
 0x1bd   : > { %5499 = vmatpush1.bf16.msra.mxu1 %v8230_v18  ;;  %v8316_v18 = vld [vmem:[%s9595_s12 + $0x4c4] ss:$8 sps:$4 sm:$0xff]  }
 0x1be   : > { %5991 = vmatpush1.bf16.msra.mxu0 %v8233_v38  ;;  %5500 = vmatprep.subr.bf16.mxu1 %v8238_v43  ;;  %v8319_v38 = vld [vmem:[%s9595_s12 + $0x10c4] ss:$8 sps:$4 sm:$0xff]   ;;  %v8314_v43 = vld [vmem:[%s9595_s12 + $0x4c0] ss:$8 sps:$4 sm:$0xff]  }
 0x1bf   : > { %5992 = vmatprep.subr.bf16.mxu0 %v8241_v45  ;;  %v8317_v45 = vld [vmem:[%s9595_s12 + $0x10c0] ss:$8 sps:$4 sm:$0xff]  }
 0x1c1   : > { %5501 = vmatpush1.bf16.msra.mxu1 %v8236_v25  ;;  %v8322_v25 = vld [vmem:[%s9595_s12 + $0x4d4] ss:$8 sps:$4 sm:$0xff]  }
 0x1c2   : > { %5993 = vmatpush1.bf16.msra.mxu0 %v8239_v46  ;;  %5511 = vmatprep.subr.bf16.mxu1 %v8244_v26  ;;  %v8325_v46 = vld [vmem:[%s9595_s12 + $0x10d4] ss:$8 sps:$4 sm:$0xff]   ;;  %v8320_v26 = vld [vmem:[%s9595_s12 + $0x4d0] ss:$8 sps:$4 sm:$0xff]  }
 0x1c3   : > { %6003 = vmatprep.subr.bf16.mxu0 %v8247_v47  ;;  %v8323_v47 = vld [vmem:[%s9595_s12 + $0x10d0] ss:$8 sps:$4 sm:$0xff]  }
 0x1c4   : > { %5503 = vmatmul.mubr.bf16.vlgmr.msra.gmra.mrb[0].mxu1 %v1211_v51  ;;  %v8334_v51 = vld [vmem:[%s9595_s12 + $0x4f4] ss:$8 sps:$4 sm:$0xff]  }
 0x1c5   : > { %5995 = vmatmul.mubr.bf16.vlgmr.msra.gmra.mrb[0].mxu0 %v1358_v52  ;;  %5512 = vmatpush1.bf16.msra.mxu1 %v8242_v17  ;;  %v8326_v17 = vld [vmem:[%s9595_s12 + $0x4e0] ss:$8 sps:$4 sm:$0xff]   ;;  %v8337_v52 = vld [vmem:[%s9595_s12 + $0x10f4] ss:$8 sps:$4 sm:$0xff]  }
 0x1c6   : > { %6004 = vmatpush1.bf16.msra.mxu0 %v8245_v49  ;;  %5513 = vmatprep.subr.bf16.mxu1 %v8250_v54  ;;  %v8329_v49 = vld [vmem:[%s9595_s12 + $0x10e0] ss:$8 sps:$4 sm:$0xff]   ;;  %v8332_v54 = vld [vmem:[%s9595_s12 + $0x4f0] ss:$8 sps:$4 sm:$0xff]  }
 0x1c7   : > { %6005 = vmatprep.subr.bf16.mxu0 %v8253_v55  ;;  %5543 = vmatprep.mubr.bf16.mxu1 %v9957_v56  ;;  %v8335_v55 = vld [vmem:[%s9595_s12 + $0x10f0] ss:$8 sps:$4 sm:$0xff]  }
 0x1c8   : > { %6035 = vmatprep.mubr.bf16.mxu0 %v9960_v58 }
 0x1c9   : > { %5514 = vmatpush1.bf16.msra.mxu1 %v8248_v39  ;;  %v8340_v39 = vld [vmem:[%s9595_s12 + $0x504] ss:$8 sps:$4 sm:$0xff]  }
 0x1ca   : > { %6006 = vmatpush1.bf16.msra.mxu0 %v8251_v40  ;;  %5515 = vmatprep.subr.bf16.mxu1 %v8256_v59  ;;  %v8343_v40 = vld [vmem:[%s9595_s12 + $0x1104] ss:$8 sps:$4 sm:$0xff]   ;;  %v10026_v59 = vrot.slane %v9933_v41, %v9662_v50  ;;  %v1261_v41 = vcombine.high %v9957_v56, %v9957_v56 }
 0x1cb   : > { %6007 = vmatprep.subr.bf16.mxu0 %v8259_v60  ;;  %v10030_v60 = vrot.slane %v9936_v42, %v9662_v50  ;;  %v8344_v42 = vld [vmem:[%s9595_s12 + $0x510] ss:$8 sps:$4 sm:$0xff]   ;;  %v8352_v56 = vld [vmem:[%s9595_s12 + $0x524] ss:$8 sps:$4 sm:$0xff]  }
 0x1cd   : > { %5516 = vmatpush1.bf16.msra.mxu1 %v8254_v61  ;;  %v8338_v61 = vld [vmem:[%s9595_s12 + $0x500] ss:$8 sps:$4 sm:$0xff]  }
 0x1ce   : > { %6008 = vmatpush1.bf16.msra.mxu0 %v8257_v62  ;;  %5517 = vmatprep.subr.bf16.mxu1 %v8262_v63  ;;  %v8341_v62 = vld [vmem:[%s9595_s12 + $0x1100] ss:$8 sps:$4 sm:$0xff]   ;;  %v8346_v63 = vld [vmem:[%s9595_s12 + $0x514] ss:$8 sps:$4 sm:$0xff]  }
 0x1cf   : > { %6009 = vmatprep.subr.bf16.mxu0 %v8265_v0  ;;  %v8349_v0 = vld [vmem:[%s9595_s12 + $0x1114] ss:$8 sps:$4 sm:$0xff]  }
 0x1d1   : > { %5518 = vmatpush1.bf16.msra.mxu1 %v8260_v1  ;;  %v1408_v1 = vcombine.high %v9960_v58, %v9960_v58  ;;  %v8350_v58 = vld [vmem:[%s9595_s12 + $0x520] ss:$8 sps:$4 sm:$0xff]  }
 0x1d2   : > { %6010 = vmatpush1.bf16.msra.mxu0 %v8263_v2  ;;  %5519 = vmatprep.subr.bf16.mxu1 %v8268_v3  ;;  %v8347_v2 = vld [vmem:[%s9595_s12 + $0x1110] ss:$8 sps:$4 sm:$0xff]   ;;  %v8355_v3 = vld [vmem:[%s9595_s12 + $0x1124] ss:$8 sps:$4 sm:$0xff]  }
 0x1d3   : > { %6011 = vmatprep.subr.bf16.mxu0 %v8271_v4  ;;  %v8353_v4 = vld [vmem:[%s9595_s12 + $0x1120] ss:$8 sps:$4 sm:$0xff]  }
 0x1d5   : > { %5520 = vmatpush1.bf16.msra.mxu1 %v8266_v5  ;;  %v8358_v5 = vld [vmem:[%s9595_s12 + $0x534] ss:$8 sps:$4 sm:$0xff]  }
 0x1d6   : > { %6012 = vmatpush1.bf16.msra.mxu0 %v8269_v6  ;;  %5521 = vmatprep.subr.bf16.mxu1 %v8274_v7  ;;  %v8361_v6 = vld [vmem:[%s9595_s12 + $0x1134] ss:$8 sps:$4 sm:$0xff]   ;;  %v8356_v7 = vld [vmem:[%s9595_s12 + $0x530] ss:$8 sps:$4 sm:$0xff]  }
 0x1d7   : > { %6013 = vmatprep.subr.bf16.mxu0 %v8277_v8  ;;  %v8359_v8 = vld [vmem:[%s9595_s12 + $0x1130] ss:$8 sps:$4 sm:$0xff]  }
 0x1d9   : > { %5522 = vmatpush1.bf16.msra.mxu1 %v8272_v9  ;;  %v8364_v9 = vld [vmem:[%s9595_s12 + $0x544] ss:$8 sps:$4 sm:$0xff]  }
 0x1da   : > { %6014 = vmatpush1.bf16.msra.mxu0 %v8275_v10  ;;  %5523 = vmatprep.subr.bf16.mxu1 %v8280_v11  ;;  %v8367_v10 = vld [vmem:[%s9595_s12 + $0x1144] ss:$8 sps:$4 sm:$0xff]   ;;  %v8362_v11 = vld [vmem:[%s9595_s12 + $0x540] ss:$8 sps:$4 sm:$0xff]  }
 0x1db   : > { %6015 = vmatprep.subr.bf16.mxu0 %v8283_v12  ;;  %v8365_v12 = vld [vmem:[%s9595_s12 + $0x1140] ss:$8 sps:$4 sm:$0xff]  }
 0x1dd   : > { %5524 = vmatpush1.bf16.msra.mxu1 %v8278_v13  ;;  %v8370_v13 = vld [vmem:[%s9595_s12 + $0x554] ss:$8 sps:$4 sm:$0xff]  }
 0x1de   : > { %6016 = vmatpush1.bf16.msra.mxu0 %v8281_v14  ;;  %5525 = vmatprep.subr.bf16.mxu1 %v8286_v15  ;;  %v8373_v14 = vld [vmem:[%s9595_s12 + $0x1154] ss:$8 sps:$4 sm:$0xff]   ;;  %v8368_v15 = vld [vmem:[%s9595_s12 + $0x550] ss:$8 sps:$4 sm:$0xff]  }
 0x1df   : > { %6017 = vmatprep.subr.bf16.mxu0 %v8289_v16  ;;  %v8371_v16 = vld [vmem:[%s9595_s12 + $0x1150] ss:$8 sps:$4 sm:$0xff]  }
 0x1e1   : > { %5526 = vmatpush1.bf16.msra.mxu1 %v8284_v19  ;;  %v8376_v19 = vld [vmem:[%s9595_s12 + $0x564] ss:$8 sps:$4 sm:$0xff]  }
 0x1e2   : > { %6018 = vmatpush1.bf16.msra.mxu0 %v8287_v20  ;;  %5527 = vmatprep.subr.bf16.mxu1 %v8292_v21  ;;  %v8379_v20 = vld [vmem:[%s9595_s12 + $0x1164] ss:$8 sps:$4 sm:$0xff]   ;;  %v8374_v21 = vld [vmem:[%s9595_s12 + $0x560] ss:$8 sps:$4 sm:$0xff]  }
 0x1e3   : > { %6019 = vmatprep.subr.bf16.mxu0 %v8295_v22  ;;  %v8377_v22 = vld [vmem:[%s9595_s12 + $0x1160] ss:$8 sps:$4 sm:$0xff]  }
 0x1e5   : > { %5528 = vmatpush1.bf16.msra.mxu1 %v8290_v23  ;;  %v8382_v23 = vld [vmem:[%s9595_s12 + $0x574] ss:$8 sps:$4 sm:$0xff]  }
 0x1e6   : > { %6020 = vmatpush1.bf16.msra.mxu0 %v8293_v24  ;;  %5529 = vmatprep.subr.bf16.mxu1 %v8298_v53  ;;  %v8385_v24 = vld [vmem:[%s9595_s12 + $0x1174] ss:$8 sps:$4 sm:$0xff]   ;;  %v8380_v53 = vld [vmem:[%s9595_s12 + $0x570] ss:$8 sps:$4 sm:$0xff]  }
 0x1e7   : > { %6021 = vmatprep.subr.bf16.mxu0 %v8301_v57  ;;  %v8383_v57 = vld [vmem:[%s9595_s12 + $0x1170] ss:$8 sps:$4 sm:$0xff]  }
 0x1e9   : > { %5530 = vmatpush1.bf16.msra.mxu1 %v8296_v27  ;;  %v8388_v27 = vld [vmem:[%s9595_s12 + $0x584] ss:$8 sps:$4 sm:$0xff]  }
 0x1ea   : > { %6022 = vmatpush1.bf16.msra.mxu0 %v8299_v28  ;;  %5531 = vmatprep.subr.bf16.mxu1 %v8304_v29  ;;  %v8391_v28 = vld [vmem:[%s9595_s12 + $0x1184] ss:$8 sps:$4 sm:$0xff]   ;;  %v8386_v29 = vld [vmem:[%s9595_s12 + $0x580] ss:$8 sps:$4 sm:$0xff]  }
 0x1eb   : > { %6023 = vmatprep.subr.bf16.mxu0 %v8307_v30  ;;  %v8389_v30 = vld [vmem:[%s9595_s12 + $0x1180] ss:$8 sps:$4 sm:$0xff]  }
 0x1ed   : > { %5532 = vmatpush1.bf16.msra.mxu1 %v8302_v31  ;;  %v8394_v31 = vld [vmem:[%s9595_s12 + $0x594] ss:$8 sps:$4 sm:$0xff]  }
 0x1ee   : > { %6024 = vmatpush1.bf16.msra.mxu0 %v8305_v32  ;;  %5533 = vmatprep.subr.bf16.mxu1 %v8310_v33  ;;  %v8397_v32 = vld [vmem:[%s9595_s12 + $0x1194] ss:$8 sps:$4 sm:$0xff]   ;;  %v8392_v33 = vld [vmem:[%s9595_s12 + $0x590] ss:$8 sps:$4 sm:$0xff]  }
 0x1ef   : > { %6025 = vmatprep.subr.bf16.mxu0 %v8313_v34  ;;  %v8395_v34 = vld [vmem:[%s9595_s12 + $0x1190] ss:$8 sps:$4 sm:$0xff]  }
 0x1f1   : > { %5534 = vmatpush1.bf16.msra.mxu1 %v8308_v35  ;;  %v8400_v35 = vld [vmem:[%s9595_s12 + $0x5a4] ss:$8 sps:$4 sm:$0xff]  }
 0x1f2   : > { %6026 = vmatpush1.bf16.msra.mxu0 %v8311_v36  ;;  %5535 = vmatprep.subr.bf16.mxu1 %v8316_v18  ;;  %v8403_v36 = vld [vmem:[%s9595_s12 + $0x11a4] ss:$8 sps:$4 sm:$0xff]   ;;  %v8398_v18 = vld [vmem:[%s9595_s12 + $0x5a0] ss:$8 sps:$4 sm:$0xff]  }
 0x1f3   : > { %6027 = vmatprep.subr.bf16.mxu0 %v8319_v38  ;;  %v8401_v38 = vld [vmem:[%s9595_s12 + $0x11a0] ss:$8 sps:$4 sm:$0xff]  }
 0x1f5   : > { %5536 = vmatpush1.bf16.msra.mxu1 %v8314_v43  ;;  %v8406_v43 = vld [vmem:[%s9595_s12 + $0x5b4] ss:$8 sps:$4 sm:$0xff]  }
 0x1f6   : > { %6028 = vmatpush1.bf16.msra.mxu0 %v8317_v45  ;;  %5537 = vmatprep.subr.bf16.mxu1 %v8322_v25  ;;  %v8409_v45 = vld [vmem:[%s9595_s12 + $0x11b4] ss:$8 sps:$4 sm:$0xff]   ;;  %v8404_v25 = vld [vmem:[%s9595_s12 + $0x5b0] ss:$8 sps:$4 sm:$0xff]  }
 0x1f7   : > { %6029 = vmatprep.subr.bf16.mxu0 %v8325_v46  ;;  %v8407_v46 = vld [vmem:[%s9595_s12 + $0x11b0] ss:$8 sps:$4 sm:$0xff]  }
 0x1f9   : > { %5538 = vmatpush1.bf16.msra.mxu1 %v8320_v26  ;;  %v8412_v26 = vld [vmem:[%s9595_s12 + $0x5c4] ss:$8 sps:$4 sm:$0xff]  }
 0x1fa   : > { %6030 = vmatpush1.bf16.msra.mxu0 %v8323_v47  ;;  %5539 = vmatprep.subr.bf16.mxu1 %v8328_v37  ;;  %v8415_v47 = vld [vmem:[%s9595_s12 + $0x11c4] ss:$8 sps:$4 sm:$0xff]   ;;  %v8410_v37 = vld [vmem:[%s9595_s12 + $0x5c0] ss:$8 sps:$4 sm:$0xff]  }
 0x1fb   : > { %6031 = vmatprep.subr.bf16.mxu0 %v8331_v48  ;;  %v8413_v48 = vld [vmem:[%s9595_s12 + $0x11c0] ss:$8 sps:$4 sm:$0xff]  }
 0x1fd   : > { %5540 = vmatpush1.bf16.msra.mxu1 %v8326_v17  ;;  %v8418_v17 = vld [vmem:[%s9595_s12 + $0x5d4] ss:$8 sps:$4 sm:$0xff]  }
 0x1fe   : > { %6032 = vmatpush1.bf16.msra.mxu0 %v8329_v49  ;;  %5541 = vmatprep.subr.bf16.mxu1 %v8334_v51  ;;  %v8421_v49 = vld [vmem:[%s9595_s12 + $0x11d4] ss:$8 sps:$4 sm:$0xff]   ;;  %v8416_v51 = vld [vmem:[%s9595_s12 + $0x5d0] ss:$8 sps:$4 sm:$0xff]  }
 0x1ff   : > { %6033 = vmatprep.subr.bf16.mxu0 %v8337_v52  ;;  %v8419_v52 = vld [vmem:[%s9595_s12 + $0x11d0] ss:$8 sps:$4 sm:$0xff]  }
 0x201   : > { %5542 = vmatpush1.bf16.msra.mxu1 %v8332_v54  ;;  %v8424_v54 = vld [vmem:[%s9595_s12 + $0x5e4] ss:$8 sps:$4 sm:$0xff]  }
 0x202   : > { %6034 = vmatpush1.bf16.msra.mxu0 %v8335_v55  ;;  %5552 = vmatprep.subr.bf16.mxu1 %v8340_v39  ;;  %v8427_v55 = vld [vmem:[%s9595_s12 + $0x11e4] ss:$8 sps:$4 sm:$0xff]  }
 0x203   : > { %6044 = vmatprep.subr.bf16.mxu0 %v8343_v40  ;;  %v9014_v39 = vld [vmem:[%s9588_s27 + $0x8] sm:$0xff] }
 0x204   : > { %5544 = vmatmul.mubr.bf16.vlgmr.msra.gmra.mrb[0].mxu1 %v10026_v59  ;;  %v1214_v40 = vcombine.high %v9014_v39, %v9014_v39  ;;  %v8502_v39 = vld [vmem:[%s9595_s12 + $0x6b4] ss:$8 sps:$4 sm:$0xff]  }
 0x205   : > { %6036 = vmatmul.mubr.bf16.vlgmr.msra.gmra.mrb[0].mxu0 %v10030_v60  ;;  %5553 = vmatpush1.bf16.msra.mxu1 %v8338_v61  ;;  %v9015_v61 = vld [vmem:[%s9588_s27 + $0x20] sm:$0xff] }
 0x206   : > { %6045 = vmatpush1.bf16.msra.mxu0 %v8341_v62  ;;  %5554 = vmatprep.subr.bf16.mxu1 %v8346_v63  ;;  %v1361_v62 = vcombine.high %v9015_v61, %v9015_v61  ;;  %v8422_v63 = vld [vmem:[%s9595_s12 + $0x5e0] ss:$8 sps:$4 sm:$0xff]   ;;  %v8500_v61 = vld [vmem:[%s9595_s12 + $0x6b0] ss:$8 sps:$4 sm:$0xff]  }
 0x207   : > { %6046 = vmatprep.subr.bf16.mxu0 %v8349_v0  ;;  %5584 = vmatprep.mubr.bf16.mxu1 %v1261_v41  ;;  %v8425_v0 = vld [vmem:[%s9595_s12 + $0x11e0] ss:$8 sps:$4 sm:$0xff]   ;;  %v8430_v41 = vld [vmem:[%s9595_s12 + $0x5f4] ss:$8 sps:$4 sm:$0xff]  }
 0x208   : > { %6076 = vmatprep.mubr.bf16.mxu0 %v1408_v1  ;;  %v8433_v1 = vld [vmem:[%s9595_s12 + $0x11f4] ss:$8 sps:$4 sm:$0xff]  }
 0x209   : > { %5555 = vmatpush1.bf16.msra.mxu1 %v8344_v42  ;;  %v10101_v42 = vrot.slane %v1214_v40, %v9662_v50  ;;  %v8505_v40 = vld [vmem:[%s9595_s12 + $0x12b4] ss:$8 sps:$4 sm:$0xff]  }
 0x20a   : > { %6047 = vmatpush1.bf16.msra.mxu0 %v8347_v2  ;;  %5556 = vmatprep.subr.bf16.mxu1 %v8352_v56  ;;  %v10104_v2 = vrot.slane %v1361_v62, %v9662_v50  ;;  %v8428_v56 = vld [vmem:[%s9595_s12 + $0x5f0] ss:$8 sps:$4 sm:$0xff]  }
 0x20b   : > { %6048 = vmatprep.subr.bf16.mxu0 %v8355_v3  ;;  %v8431_v3 = vld [vmem:[%s9595_s12 + $0x11f0] ss:$8 sps:$4 sm:$0xff]  }
 0x20c   : > { %v8503_v62 = vld [vmem:[%s9595_s12 + $0x12b0] ss:$8 sps:$4 sm:$0xff]  }
 0x20d   : > { %5557 = vmatpush1.bf16.msra.mxu1 %v8350_v58  ;;  %v8436_v58 = vld [vmem:[%s9595_s12 + $0x604] ss:$8 sps:$4 sm:$0xff]  }
 0x20e   : > { %6049 = vmatpush1.bf16.msra.mxu0 %v8353_v4  ;;  %5558 = vmatprep.subr.bf16.mxu1 %v8358_v5  ;;  %v8439_v4 = vld [vmem:[%s9595_s12 + $0x1204] ss:$8 sps:$4 sm:$0xff]   ;;  %v1230_v5 = vcombine.high %v10101_v42, %v10101_v42 }
 0x20f   : > { %6050 = vmatprep.subr.bf16.mxu0 %v8361_v6  ;;  %v1377_v6 = vcombine.high %v10104_v2, %v10104_v2 }
 0x211   : > { %5559 = vmatpush1.bf16.msra.mxu1 %v8356_v7  ;;  %v1259_v7 = vcombine.high %v10026_v59, %v10026_v59  ;;  %v10126_v59 = vrot.slane %v1377_v6, %v9662_v50  ;;  %v8523_v6 = vld [vmem:[%s9595_s12 + $0x12e4] ss:$8 sps:$4 sm:$0xff]  }
 0x212   : > { %6051 = vmatpush1.bf16.msra.mxu0 %v8359_v8  ;;  %5560 = vmatprep.subr.bf16.mxu1 %v8364_v9  ;;  %v1406_v8 = vcombine.high %v10030_v60, %v10030_v60  ;;  %v8434_v9 = vld [vmem:[%s9595_s12 + $0x600] ss:$8 sps:$4 sm:$0xff]   ;;  %v8440_v60 = vld [vmem:[%s9595_s12 + $0x610] ss:$8 sps:$4 sm:$0xff]  }
 0x213   : > { %6052 = vmatprep.subr.bf16.mxu0 %v8367_v10  ;;  %v8437_v10 = vld [vmem:[%s9595_s12 + $0x1200] ss:$8 sps:$4 sm:$0xff]  }
 0x215   : > { %5561 = vmatpush1.bf16.msra.mxu1 %v8362_v11  ;;  %v8442_v11 = vld [vmem:[%s9595_s12 + $0x614] ss:$8 sps:$4 sm:$0xff]  }
 0x216   : > { %6053 = vmatpush1.bf16.msra.mxu0 %v8365_v12  ;;  %5562 = vmatprep.subr.bf16.mxu1 %v8370_v13  ;;  %v8445_v12 = vld [vmem:[%s9595_s12 + $0x1214] ss:$8 sps:$4 sm:$0xff]   ;;  %v10123_v13 = vrot.slane %v1230_v5, %v9662_v50  ;;  %v8520_v5 = vld [vmem:[%s9595_s12 + $0x6e4] ss:$8 sps:$4 sm:$0xff]  }
 0x217   : > { %6054 = vmatprep.subr.bf16.mxu0 %v8373_v14  ;;  %v8443_v14 = vld [vmem:[%s9595_s12 + $0x1210] ss:$8 sps:$4 sm:$0xff]  }
 0x219   : > { %5563 = vmatpush1.bf16.msra.mxu1 %v8368_v15  ;;  %v8448_v15 = vld [vmem:[%s9595_s12 + $0x624] ss:$8 sps:$4 sm:$0xff]  }
 0x21a   : > { %6055 = vmatpush1.bf16.msra.mxu0 %v8371_v16  ;;  %5564 = vmatprep.subr.bf16.mxu1 %v8376_v19  ;;  %v8451_v16 = vld [vmem:[%s9595_s12 + $0x1224] ss:$8 sps:$4 sm:$0xff]   ;;  %v8446_v19 = vld [vmem:[%s9595_s12 + $0x620] ss:$8 sps:$4 sm:$0xff]  }
 0x21b   : > { %6056 = vmatprep.subr.bf16.mxu0 %v8379_v20  ;;  %v8449_v20 = vld [vmem:[%s9595_s12 + $0x1220] ss:$8 sps:$4 sm:$0xff]  }
 0x21d   : > { %5565 = vmatpush1.bf16.msra.mxu1 %v8374_v21  ;;  %v8454_v21 = vld [vmem:[%s9595_s12 + $0x634] ss:$8 sps:$4 sm:$0xff]  }
 0x21e   : > { %6057 = vmatpush1.bf16.msra.mxu0 %v8377_v22  ;;  %5566 = vmatprep.subr.bf16.mxu1 %v8382_v23  ;;  %v8457_v22 = vld [vmem:[%s9595_s12 + $0x1234] ss:$8 sps:$4 sm:$0xff]   ;;  %v8452_v23 = vld [vmem:[%s9595_s12 + $0x630] ss:$8 sps:$4 sm:$0xff]  }
 0x21f   : > { %6058 = vmatprep.subr.bf16.mxu0 %v8385_v24  ;;  %v8455_v24 = vld [vmem:[%s9595_s12 + $0x1230] ss:$8 sps:$4 sm:$0xff]  }
 0x221   : > { %5567 = vmatpush1.bf16.msra.mxu1 %v8380_v53  ;;  %v8460_v53 = vld [vmem:[%s9595_s12 + $0x644] ss:$8 sps:$4 sm:$0xff]  }
 0x222   : > { %6059 = vmatpush1.bf16.msra.mxu0 %v8383_v57  ;;  %5568 = vmatprep.subr.bf16.mxu1 %v8388_v27  ;;  %v8463_v57 = vld [vmem:[%s9595_s12 + $0x1244] ss:$8 sps:$4 sm:$0xff]   ;;  %v8458_v27 = vld [vmem:[%s9595_s12 + $0x640] ss:$8 sps:$4 sm:$0xff]  }
 0x223   : > { %6060 = vmatprep.subr.bf16.mxu0 %v8391_v28  ;;  %v8461_v28 = vld [vmem:[%s9595_s12 + $0x1240] ss:$8 sps:$4 sm:$0xff]  }
 0x225   : > { %5569 = vmatpush1.bf16.msra.mxu1 %v8386_v29  ;;  %v8466_v29 = vld [vmem:[%s9595_s12 + $0x654] ss:$8 sps:$4 sm:$0xff]  }
 0x226   : > { %6061 = vmatpush1.bf16.msra.mxu0 %v8389_v30  ;;  %5570 = vmatprep.subr.bf16.mxu1 %v8394_v31  ;;  %v8469_v30 = vld [vmem:[%s9595_s12 + $0x1254] ss:$8 sps:$4 sm:$0xff]   ;;  %v8464_v31 = vld [vmem:[%s9595_s12 + $0x650] ss:$8 sps:$4 sm:$0xff]  }
 0x227   : > { %6062 = vmatprep.subr.bf16.mxu0 %v8397_v32  ;;  %v8467_v32 = vld [vmem:[%s9595_s12 + $0x1250] ss:$8 sps:$4 sm:$0xff]  }
 0x229   : > { %5571 = vmatpush1.bf16.msra.mxu1 %v8392_v33  ;;  %v8472_v33 = vld [vmem:[%s9595_s12 + $0x664] ss:$8 sps:$4 sm:$0xff]  }
 0x22a   : > { %6063 = vmatpush1.bf16.msra.mxu0 %v8395_v34  ;;  %5572 = vmatprep.subr.bf16.mxu1 %v8400_v35  ;;  %v8475_v34 = vld [vmem:[%s9595_s12 + $0x1264] ss:$8 sps:$4 sm:$0xff]   ;;  %v8470_v35 = vld [vmem:[%s9595_s12 + $0x660] ss:$8 sps:$4 sm:$0xff]  }
 0x22b   : > { %6064 = vmatprep.subr.bf16.mxu0 %v8403_v36  ;;  %v8473_v36 = vld [vmem:[%s9595_s12 + $0x1260] ss:$8 sps:$4 sm:$0xff]  }
 0x22d   : > { %5573 = vmatpush1.bf16.msra.mxu1 %v8398_v18  ;;  %v8478_v18 = vld [vmem:[%s9595_s12 + $0x674] ss:$8 sps:$4 sm:$0xff]  }
 0x22e   : > { %6065 = vmatpush1.bf16.msra.mxu0 %v8401_v38  ;;  %5574 = vmatprep.subr.bf16.mxu1 %v8406_v43  ;;  %v8481_v38 = vld [vmem:[%s9595_s12 + $0x1274] ss:$8 sps:$4 sm:$0xff]   ;;  %v8476_v43 = vld [vmem:[%s9595_s12 + $0x670] ss:$8 sps:$4 sm:$0xff]  }
 0x22f   : > { %6066 = vmatprep.subr.bf16.mxu0 %v8409_v45  ;;  %v8479_v45 = vld [vmem:[%s9595_s12 + $0x1270] ss:$8 sps:$4 sm:$0xff]  }
 0x231   : > { %5575 = vmatpush1.bf16.msra.mxu1 %v8404_v25  ;;  %v8484_v25 = vld [vmem:[%s9595_s12 + $0x684] ss:$8 sps:$4 sm:$0xff]  }
 0x232   : > { %6067 = vmatpush1.bf16.msra.mxu0 %v8407_v46  ;;  %5576 = vmatprep.subr.bf16.mxu1 %v8412_v26  ;;  %v8487_v46 = vld [vmem:[%s9595_s12 + $0x1284] ss:$8 sps:$4 sm:$0xff]   ;;  %v8482_v26 = vld [vmem:[%s9595_s12 + $0x680] ss:$8 sps:$4 sm:$0xff]  }
 0x233   : > { %6068 = vmatprep.subr.bf16.mxu0 %v8415_v47  ;;  %v8485_v47 = vld [vmem:[%s9595_s12 + $0x1280] ss:$8 sps:$4 sm:$0xff]  }
 0x235   : > { %5577 = vmatpush1.bf16.msra.mxu1 %v8410_v37  ;;  %v8490_v37 = vld [vmem:[%s9595_s12 + $0x694] ss:$8 sps:$4 sm:$0xff]  }
 0x236   : > { %6069 = vmatpush1.bf16.msra.mxu0 %v8413_v48  ;;  %5578 = vmatprep.subr.bf16.mxu1 %v8418_v17  ;;  %v8493_v48 = vld [vmem:[%s9595_s12 + $0x1294] ss:$8 sps:$4 sm:$0xff]   ;;  %v8488_v17 = vld [vmem:[%s9595_s12 + $0x690] ss:$8 sps:$4 sm:$0xff]  }
 0x237   : > { %6070 = vmatprep.subr.bf16.mxu0 %v8421_v49  ;;  %v8491_v49 = vld [vmem:[%s9595_s12 + $0x1290] ss:$8 sps:$4 sm:$0xff]  }
 0x239   : > { %5579 = vmatpush1.bf16.msra.mxu1 %v8416_v51  ;;  %v8496_v51 = vld [vmem:[%s9595_s12 + $0x6a4] ss:$8 sps:$4 sm:$0xff]  }
 0x23a   : > { %6071 = vmatpush1.bf16.msra.mxu0 %v8419_v52  ;;  %5580 = vmatprep.subr.bf16.mxu1 %v8424_v54  ;;  %v8499_v52 = vld [vmem:[%s9595_s12 + $0x12a4] ss:$8 sps:$4 sm:$0xff]   ;;  %v8494_v54 = vld [vmem:[%s9595_s12 + $0x6a0] ss:$8 sps:$4 sm:$0xff]  }
 0x23b   : > { %6072 = vmatprep.subr.bf16.mxu0 %v8427_v55  ;;  %v8497_v55 = vld [vmem:[%s9595_s12 + $0x12a0] ss:$8 sps:$4 sm:$0xff]  }
 0x23d   : > { %5581 = vmatpush1.bf16.msra.mxu1 %v8422_v63  ;;  %v8508_v63 = vld [vmem:[%s9595_s12 + $0x6c4] ss:$8 sps:$4 sm:$0xff]  }
 0x23e   : > { %6073 = vmatpush1.bf16.msra.mxu0 %v8425_v0  ;;  %5582 = vmatprep.subr.bf16.mxu1 %v8430_v41  ;;  %v8511_v0 = vld [vmem:[%s9595_s12 + $0x12c4] ss:$8 sps:$4 sm:$0xff]   ;;  %v8506_v41 = vld [vmem:[%s9595_s12 + $0x6c0] ss:$8 sps:$4 sm:$0xff]  }
 0x23f   : > { %6074 = vmatprep.subr.bf16.mxu0 %v8433_v1  ;;  %v8509_v1 = vld [vmem:[%s9595_s12 + $0x12c0] ss:$8 sps:$4 sm:$0xff]  }
 0x241   : > { %5583 = vmatpush1.bf16.msra.mxu1 %v8428_v56  ;;  %v8514_v56 = vld [vmem:[%s9595_s12 + $0x6d4] ss:$8 sps:$4 sm:$0xff]  }
 0x242   : > { %6075 = vmatpush1.bf16.msra.mxu0 %v8431_v3  ;;  %5593 = vmatprep.subr.bf16.mxu1 %v8436_v58  ;;  %v8517_v3 = vld [vmem:[%s9595_s12 + $0x12d4] ss:$8 sps:$4 sm:$0xff]   ;;  %v8512_v58 = vld [vmem:[%s9595_s12 + $0x6d0] ss:$8 sps:$4 sm:$0xff]  }
 0x243   : > { %6085 = vmatprep.subr.bf16.mxu0 %v8439_v4  ;;  %v8515_v4 = vld [vmem:[%s9595_s12 + $0x12d0] ss:$8 sps:$4 sm:$0xff]  }
 0x244   : > { %5585 = vmatmul.mubr.bf16.vlgmr.msra.gmra.mrb[0].mxu1 %v1259_v7  ;;  %v8518_v7 = vld [vmem:[%s9595_s12 + $0x6e0] ss:$8 sps:$4 sm:$0xff]  }
 0x245   : > { %6077 = vmatmul.mubr.bf16.vlgmr.msra.gmra.mrb[0].mxu0 %v1406_v8  ;;  %5594 = vmatpush1.bf16.msra.mxu1 %v8434_v9  ;;  %v8521_v8 = vld [vmem:[%s9595_s12 + $0x12e0] ss:$8 sps:$4 sm:$0xff]   ;;  %v8526_v9 = vld [vmem:[%s9595_s12 + $0x6f4] ss:$8 sps:$4 sm:$0xff]  }
 0x246   : > { %6086 = vmatpush1.bf16.msra.mxu0 %v8437_v10  ;;  %5595 = vmatprep.subr.bf16.mxu1 %v8442_v11  ;;  %v8529_v10 = vld [vmem:[%s9595_s12 + $0x12f4] ss:$8 sps:$4 sm:$0xff]   ;;  %v8524_v11 = vld [vmem:[%s9595_s12 + $0x6f0] ss:$8 sps:$4 sm:$0xff]  }
 0x247   : > { %6087 = vmatprep.subr.bf16.mxu0 %v8445_v12  ;;  %5625 = vmatprep.mubr.bf16.mxu1 %v10123_v13  ;;  %v8527_v12 = vld [vmem:[%s9595_s12 + $0x12f0] ss:$8 sps:$4 sm:$0xff]  }
 0x248   : > { %6117 = vmatprep.mubr.bf16.mxu0 %v10126_v59 }
 0x249   : > { %5596 = vmatpush1.bf16.msra.mxu1 %v8440_v60  ;;  %v8533_v60 = vld [vmem:[%s9595_s12 + $0x704] ss:$8 sps:$4 sm:$0xff]  }
 0x24a   : > { %6088 = vmatpush1.bf16.msra.mxu0 %v8443_v14  ;;  %5597 = vmatprep.subr.bf16.mxu1 %v8448_v15  ;;  %v8537_v14 = vld [vmem:[%s9595_s12 + $0x1304] ss:$8 sps:$4 sm:$0xff]   ;;  %v10192_v15 = vrot.slane %v10101_v42, %v9662_v50  ;;  %v1262_v42 = vcombine.high %v10123_v13, %v10123_v13 }
 0x24b   : > { %6089 = vmatprep.subr.bf16.mxu0 %v8451_v16  ;;  %v10196_v16 = vrot.slane %v10104_v2, %v9662_v50  ;;  %v8538_v2 = vld [vmem:[%s9595_s12 + $0x710] ss:$8 sps:$4 sm:$0xff]   ;;  %v8546_v13 = vld [vmem:[%s9595_s12 + $0x724] ss:$8 sps:$4 sm:$0xff]  }
 0x24d   : > { %5598 = vmatpush1.bf16.msra.mxu1 %v8446_v19  ;;  %v8531_v19 = vld [vmem:[%s9595_s12 + $0x700] ss:$8 sps:$4 sm:$0xff]  }
 0x24e   : > { %6090 = vmatpush1.bf16.msra.mxu0 %v8449_v20  ;;  %5599 = vmatprep.subr.bf16.mxu1 %v8454_v21  ;;  %v8535_v20 = vld [vmem:[%s9595_s12 + $0x1300] ss:$8 sps:$4 sm:$0xff]   ;;  %v8540_v21 = vld [vmem:[%s9595_s12 + $0x714] ss:$8 sps:$4 sm:$0xff]  }
 0x24f   : > { %6091 = vmatprep.subr.bf16.mxu0 %v8457_v22  ;;  %v8543_v22 = vld [vmem:[%s9595_s12 + $0x1314] ss:$8 sps:$4 sm:$0xff]  }
 0x251   : > { %5600 = vmatpush1.bf16.msra.mxu1 %v8452_v23  ;;  %v1409_v23 = vcombine.high %v10126_v59, %v10126_v59  ;;  %v8544_v59 = vld [vmem:[%s9595_s12 + $0x720] ss:$8 sps:$4 sm:$0xff]  }
 0x252   : > { %6092 = vmatpush1.bf16.msra.mxu0 %v8455_v24  ;;  %5601 = vmatprep.subr.bf16.mxu1 %v8460_v53  ;;  %v8541_v24 = vld [vmem:[%s9595_s12 + $0x1310] ss:$8 sps:$4 sm:$0xff]   ;;  %v8549_v53 = vld [vmem:[%s9595_s12 + $0x1324] ss:$8 sps:$4 sm:$0xff]  }
 0x253   : > { %6093 = vmatprep.subr.bf16.mxu0 %v8463_v57  ;;  %v8547_v57 = vld [vmem:[%s9595_s12 + $0x1320] ss:$8 sps:$4 sm:$0xff]  }
 0x255   : > { %5602 = vmatpush1.bf16.msra.mxu1 %v8458_v27  ;;  %v8552_v27 = vld [vmem:[%s9595_s12 + $0x734] ss:$8 sps:$4 sm:$0xff]  }
 0x256   : > { %6094 = vmatpush1.bf16.msra.mxu0 %v8461_v28  ;;  %5603 = vmatprep.subr.bf16.mxu1 %v8466_v29  ;;  %v8555_v28 = vld [vmem:[%s9595_s12 + $0x1334] ss:$8 sps:$4 sm:$0xff]   ;;  %v8550_v29 = vld [vmem:[%s9595_s12 + $0x730] ss:$8 sps:$4 sm:$0xff]  }
 0x257   : > { %6095 = vmatprep.subr.bf16.mxu0 %v8469_v30  ;;  %v8553_v30 = vld [vmem:[%s9595_s12 + $0x1330] ss:$8 sps:$4 sm:$0xff]  }
 0x259   : > { %5604 = vmatpush1.bf16.msra.mxu1 %v8464_v31  ;;  %v8558_v31 = vld [vmem:[%s9595_s12 + $0x744] ss:$8 sps:$4 sm:$0xff]  }
 0x25a   : > { %6096 = vmatpush1.bf16.msra.mxu0 %v8467_v32  ;;  %5605 = vmatprep.subr.bf16.mxu1 %v8472_v33  ;;  %v8561_v32 = vld [vmem:[%s9595_s12 + $0x1344] ss:$8 sps:$4 sm:$0xff]   ;;  %v8556_v33 = vld [vmem:[%s9595_s12 + $0x740] ss:$8 sps:$4 sm:$0xff]  }
 0x25b   : > { %6097 = vmatprep.subr.bf16.mxu0 %v8475_v34  ;;  %v8559_v34 = vld [vmem:[%s9595_s12 + $0x1340] ss:$8 sps:$4 sm:$0xff]  }
 0x25d   : > { %5606 = vmatpush1.bf16.msra.mxu1 %v8470_v35  ;;  %v8564_v35 = vld [vmem:[%s9595_s12 + $0x754] ss:$8 sps:$4 sm:$0xff]  }
 0x25e   : > { %6098 = vmatpush1.bf16.msra.mxu0 %v8473_v36  ;;  %5607 = vmatprep.subr.bf16.mxu1 %v8478_v18  ;;  %v8567_v36 = vld [vmem:[%s9595_s12 + $0x1354] ss:$8 sps:$4 sm:$0xff]   ;;  %v8562_v18 = vld [vmem:[%s9595_s12 + $0x750] ss:$8 sps:$4 sm:$0xff]  }
 0x25f   : > { %6099 = vmatprep.subr.bf16.mxu0 %v8481_v38  ;;  %v8565_v38 = vld [vmem:[%s9595_s12 + $0x1350] ss:$8 sps:$4 sm:$0xff]  }
 0x261   : > { %5608 = vmatpush1.bf16.msra.mxu1 %v8476_v43  ;;  %v8570_v43 = vld [vmem:[%s9595_s12 + $0x764] ss:$8 sps:$4 sm:$0xff]  }
 0x262   : > { %6100 = vmatpush1.bf16.msra.mxu0 %v8479_v45  ;;  %5609 = vmatprep.subr.bf16.mxu1 %v8484_v25  ;;  %v8573_v45 = vld [vmem:[%s9595_s12 + $0x1364] ss:$8 sps:$4 sm:$0xff]   ;;  %v8568_v25 = vld [vmem:[%s9595_s12 + $0x760] ss:$8 sps:$4 sm:$0xff]  }
 0x263   : > { %6101 = vmatprep.subr.bf16.mxu0 %v8487_v46  ;;  %v8571_v46 = vld [vmem:[%s9595_s12 + $0x1360] ss:$8 sps:$4 sm:$0xff]  }
 0x265   : > { %5610 = vmatpush1.bf16.msra.mxu1 %v8482_v26  ;;  %v8576_v26 = vld [vmem:[%s9595_s12 + $0x774] ss:$8 sps:$4 sm:$0xff]  }
 0x266   : > { %6102 = vmatpush1.bf16.msra.mxu0 %v8485_v47  ;;  %5611 = vmatprep.subr.bf16.mxu1 %v8490_v37  ;;  %v8579_v47 = vld [vmem:[%s9595_s12 + $0x1374] ss:$8 sps:$4 sm:$0xff]   ;;  %v8574_v37 = vld [vmem:[%s9595_s12 + $0x770] ss:$8 sps:$4 sm:$0xff]  }
 0x267   : > { %6103 = vmatprep.subr.bf16.mxu0 %v8493_v48  ;;  %v8577_v48 = vld [vmem:[%s9595_s12 + $0x1370] ss:$8 sps:$4 sm:$0xff]  }
 0x269   : > { %5612 = vmatpush1.bf16.msra.mxu1 %v8488_v17  ;;  %v8582_v17 = vld [vmem:[%s9595_s12 + $0x784] ss:$8 sps:$4 sm:$0xff]  }
 0x26a   : > { %6104 = vmatpush1.bf16.msra.mxu0 %v8491_v49  ;;  %5613 = vmatprep.subr.bf16.mxu1 %v8496_v51  ;;  %v8585_v49 = vld [vmem:[%s9595_s12 + $0x1384] ss:$8 sps:$4 sm:$0xff]   ;;  %v8580_v51 = vld [vmem:[%s9595_s12 + $0x780] ss:$8 sps:$4 sm:$0xff]  }
 0x26b   : > { %6105 = vmatprep.subr.bf16.mxu0 %v8499_v52  ;;  %v8583_v52 = vld [vmem:[%s9595_s12 + $0x1380] ss:$8 sps:$4 sm:$0xff]  }
 0x26d   : > { %5614 = vmatpush1.bf16.msra.mxu1 %v8494_v54  ;;  %v8588_v54 = vld [vmem:[%s9595_s12 + $0x794] ss:$8 sps:$4 sm:$0xff]  }
 0x26e   : > { %6106 = vmatpush1.bf16.msra.mxu0 %v8497_v55  ;;  %5615 = vmatprep.subr.bf16.mxu1 %v8502_v39  ;;  %v8591_v55 = vld [vmem:[%s9595_s12 + $0x1394] ss:$8 sps:$4 sm:$0xff]   ;;  %v8586_v39 = vld [vmem:[%s9595_s12 + $0x790] ss:$8 sps:$4 sm:$0xff]  }
 0x26f   : > { %6107 = vmatprep.subr.bf16.mxu0 %v8505_v40  ;;  %v8589_v40 = vld [vmem:[%s9595_s12 + $0x1390] ss:$8 sps:$4 sm:$0xff]  }
 0x271   : > { %5616 = vmatpush1.bf16.msra.mxu1 %v8500_v61  ;;  %v8594_v61 = vld [vmem:[%s9595_s12 + $0x7a4] ss:$8 sps:$4 sm:$0xff]  }
 0x272   : > { %6108 = vmatpush1.bf16.msra.mxu0 %v8503_v62  ;;  %5617 = vmatprep.subr.bf16.mxu1 %v8508_v63  ;;  %v8597_v62 = vld [vmem:[%s9595_s12 + $0x13a4] ss:$8 sps:$4 sm:$0xff]   ;;  %v8592_v63 = vld [vmem:[%s9595_s12 + $0x7a0] ss:$8 sps:$4 sm:$0xff]  }
 0x273   : > { %6109 = vmatprep.subr.bf16.mxu0 %v8511_v0  ;;  %v8595_v0 = vld [vmem:[%s9595_s12 + $0x13a0] ss:$8 sps:$4 sm:$0xff]  }
 0x275   : > { %5618 = vmatpush1.bf16.msra.mxu1 %v8506_v41  ;;  %v8600_v41 = vld [vmem:[%s9595_s12 + $0x7b4] ss:$8 sps:$4 sm:$0xff]  }
 0x276   : > { %6110 = vmatpush1.bf16.msra.mxu0 %v8509_v1  ;;  %5619 = vmatprep.subr.bf16.mxu1 %v8514_v56  ;;  %v8603_v1 = vld [vmem:[%s9595_s12 + $0x13b4] ss:$8 sps:$4 sm:$0xff]   ;;  %v8598_v56 = vld [vmem:[%s9595_s12 + $0x7b0] ss:$8 sps:$4 sm:$0xff]  }
 0x277   : > { %6111 = vmatprep.subr.bf16.mxu0 %v8517_v3  ;;  %v8601_v3 = vld [vmem:[%s9595_s12 + $0x13b0] ss:$8 sps:$4 sm:$0xff]  }
 0x279   : > { %5620 = vmatpush1.bf16.msra.mxu1 %v8512_v58  ;;  %v8606_v58 = vld [vmem:[%s9595_s12 + $0x7c4] ss:$8 sps:$4 sm:$0xff]  }
 0x27a   : > { %6112 = vmatpush1.bf16.msra.mxu0 %v8515_v4  ;;  %5621 = vmatprep.subr.bf16.mxu1 %v8520_v5  ;;  %v8609_v4 = vld [vmem:[%s9595_s12 + $0x13c4] ss:$8 sps:$4 sm:$0xff]   ;;  %v8604_v5 = vld [vmem:[%s9595_s12 + $0x7c0] ss:$8 sps:$4 sm:$0xff]  }
 0x27b   : > { %6113 = vmatprep.subr.bf16.mxu0 %v8523_v6  ;;  %v8607_v6 = vld [vmem:[%s9595_s12 + $0x13c0] ss:$8 sps:$4 sm:$0xff]  }
 0x27d   : > { %5622 = vmatpush1.bf16.msra.mxu1 %v8518_v7  ;;  %v8612_v7 = vld [vmem:[%s9595_s12 + $0x7d4] ss:$8 sps:$4 sm:$0xff]  }
 0x27e   : > { %6114 = vmatpush1.bf16.msra.mxu0 %v8521_v8  ;;  %5623 = vmatprep.subr.bf16.mxu1 %v8526_v9  ;;  %v8615_v8 = vld [vmem:[%s9595_s12 + $0x13d4] ss:$8 sps:$4 sm:$0xff]   ;;  %v8610_v9 = vld [vmem:[%s9595_s12 + $0x7d0] ss:$8 sps:$4 sm:$0xff]  }
 0x27f   : > { %6115 = vmatprep.subr.bf16.mxu0 %v8529_v10  ;;  %v8613_v10 = vld [vmem:[%s9595_s12 + $0x13d0] ss:$8 sps:$4 sm:$0xff]  }
 0x281   : > { %5624 = vmatpush1.bf16.msra.mxu1 %v8524_v11  ;;  %v8618_v11 = vld [vmem:[%s9595_s12 + $0x7e4] ss:$8 sps:$4 sm:$0xff]  }
 0x282   : > { %6116 = vmatpush1.bf16.msra.mxu0 %v8527_v12  ;;  %5634 = vmatprep.subr.bf16.mxu1 %v8533_v60  ;;  %v8621_v12 = vld [vmem:[%s9595_s12 + $0x13e4] ss:$8 sps:$4 sm:$0xff]  }
 0x283   : > { %6126 = vmatprep.subr.bf16.mxu0 %v8537_v14  ;;  %v10261_v60 = vld [vmem:[%s9588_s27 + $0x10] sm:$0xff]  ;;  %v10264_v14 = vld [vmem:[%s9588_s27 + $0x28] sm:$0xff] }
 0x284   : > { %5626 = vmatmul.mubr.bf16.vlgmr.msra.gmra.mrb[0].mxu1 %v10192_v15 }
 0x285   : > { %6118 = vmatmul.mubr.bf16.vlgmr.msra.gmra.mrb[0].mxu0 %v10196_v16  ;;  %5635 = vmatpush1.bf16.msra.mxu1 %v8531_v19  ;;  %v8616_v19 = vld [vmem:[%s9595_s12 + $0x7e0] ss:$8 sps:$4 sm:$0xff]  }
 0x286   : > { %6127 = vmatpush1.bf16.msra.mxu0 %v8535_v20  ;;  %5636 = vmatprep.subr.bf16.mxu1 %v8540_v21  ;;  %v8619_v20 = vld [vmem:[%s9595_s12 + $0x13e0] ss:$8 sps:$4 sm:$0xff]   ;;  %v8624_v21 = vld [vmem:[%s9595_s12 + $0x7f4] ss:$8 sps:$4 sm:$0xff]  }
 0x287   : > { %6128 = vmatprep.subr.bf16.mxu0 %v8543_v22  ;;  %5666 = vmatprep.mubr.bf16.mxu1 %v1262_v42  ;;  %v8627_v22 = vld [vmem:[%s9595_s12 + $0x13f4] ss:$8 sps:$4 sm:$0xff]   ;;  %v10272_v42 = vrot.slane %v10261_v60, %v9662_v50 }
 0x288   : > { %6158 = vmatprep.mubr.bf16.mxu0 %v1409_v23  ;;  %v10276_v23 = vrot.slane %v10264_v14, %v9662_v50 }
 0x289   : > { %5637 = vmatpush1.bf16.msra.mxu1 %v8538_v2  ;;  %v8622_v2 = vld [vmem:[%s9595_s12 + $0x7f0] ss:$8 sps:$4 sm:$0xff]  }
 0x28a   : > { %6129 = vmatpush1.bf16.msra.mxu0 %v8541_v24  ;;  %5638 = vmatprep.subr.bf16.mxu1 %v8546_v13  ;;  %v8625_v24 = vld [vmem:[%s9595_s12 + $0x13f0] ss:$8 sps:$4 sm:$0xff]   ;;  %v8630_v13 = vld [vmem:[%s9595_s12 + $0x804] ss:$8 sps:$4 sm:$0xff]  }
 0x28b   : > { %6130 = vmatprep.subr.bf16.mxu0 %v8549_v53  ;;  %v8633_v53 = vld [vmem:[%s9595_s12 + $0x1404] ss:$8 sps:$4 sm:$0xff]  }
 0x28d   : > { %5639 = vmatpush1.bf16.msra.mxu1 %v8544_v59  ;;  %v1278_v59 = vcombine.high %v10272_v42, %v10272_v42 }
 0x28e   : > { %6131 = vmatpush1.bf16.msra.mxu0 %v8547_v57  ;;  %5640 = vmatprep.subr.bf16.mxu1 %v8552_v27  ;;  %v1425_v57 = vcombine.high %v10276_v23, %v10276_v23  ;;  %v1260_v27 = vcombine.high %v10192_v15, %v10192_v15 }
 0x28f   : > { %6132 = vmatprep.subr.bf16.mxu0 %v8555_v28  ;;  %v1407_v28 = vcombine.high %v10196_v16, %v10196_v16  ;;  %v8634_v16 = vld [vmem:[%s9595_s12 + $0x810] ss:$8 sps:$4 sm:$0xff]  }
 0x290   : > { %v10298_v15 = vrot.slane %v1425_v57, %v9662_v50  ;;  %v8709_v57 = vld [vmem:[%s9595_s12 + $0x14d0] ss:$8 sps:$4 sm:$0xff]  }
 0x291   : > { %5641 = vmatpush1.bf16.msra.mxu1 %v8550_v29  ;;  %v8628_v29 = vld [vmem:[%s9595_s12 + $0x800] ss:$8 sps:$4 sm:$0xff]  }
 0x292   : > { %6133 = vmatpush1.bf16.msra.mxu0 %v8553_v30  ;;  %5642 = vmatprep.subr.bf16.mxu1 %v8558_v31  ;;  %v8631_v30 = vld [vmem:[%s9595_s12 + $0x1400] ss:$8 sps:$4 sm:$0xff]   ;;  %v8636_v31 = vld [vmem:[%s9595_s12 + $0x814] ss:$8 sps:$4 sm:$0xff]  }
 0x293   : > { %6134 = vmatprep.subr.bf16.mxu0 %v8561_v32  ;;  %v8639_v32 = vld [vmem:[%s9595_s12 + $0x1414] ss:$8 sps:$4 sm:$0xff]  }
 0x295   : > { %5643 = vmatpush1.bf16.msra.mxu1 %v8556_v33  ;;  %v10295_v33 = vrot.slane %v1278_v59, %v9662_v50  ;;  %v8706_v59 = vld [vmem:[%s9595_s12 + $0x8d0] ss:$8 sps:$4 sm:$0xff]  }
 0x296   : > { %6135 = vmatpush1.bf16.msra.mxu0 %v8559_v34  ;;  %5644 = vmatprep.subr.bf16.mxu1 %v8564_v35  ;;  %v8637_v34 = vld [vmem:[%s9595_s12 + $0x1410] ss:$8 sps:$4 sm:$0xff]   ;;  %v8642_v35 = vld [vmem:[%s9595_s12 + $0x824] ss:$8 sps:$4 sm:$0xff]  }
 0x297   : > { %6136 = vmatprep.subr.bf16.mxu0 %v8567_v36  ;;  %v8645_v36 = vld [vmem:[%s9595_s12 + $0x1424] ss:$8 sps:$4 sm:$0xff]  }
 0x299   : > { %5645 = vmatpush1.bf16.msra.mxu1 %v8562_v18  ;;  %v8640_v18 = vld [vmem:[%s9595_s12 + $0x820] ss:$8 sps:$4 sm:$0xff]  }
 0x29a   : > { %6137 = vmatpush1.bf16.msra.mxu0 %v8565_v38  ;;  %5646 = vmatprep.subr.bf16.mxu1 %v8570_v43  ;;  %v8643_v38 = vld [vmem:[%s9595_s12 + $0x1420] ss:$8 sps:$4 sm:$0xff]   ;;  %v8648_v43 = vld [vmem:[%s9595_s12 + $0x834] ss:$8 sps:$4 sm:$0xff]  }
 0x29b   : > { %6138 = vmatprep.subr.bf16.mxu0 %v8573_v45  ;;  %v8651_v45 = vld [vmem:[%s9595_s12 + $0x1434] ss:$8 sps:$4 sm:$0xff]  }
 0x29d   : > { %5647 = vmatpush1.bf16.msra.mxu1 %v8568_v25  ;;  %v8646_v25 = vld [vmem:[%s9595_s12 + $0x830] ss:$8 sps:$4 sm:$0xff]  }
 0x29e   : > { %6139 = vmatpush1.bf16.msra.mxu0 %v8571_v46  ;;  %5648 = vmatprep.subr.bf16.mxu1 %v8576_v26  ;;  %v8649_v46 = vld [vmem:[%s9595_s12 + $0x1430] ss:$8 sps:$4 sm:$0xff]   ;;  %v8654_v26 = vld [vmem:[%s9595_s12 + $0x844] ss:$8 sps:$4 sm:$0xff]  }
 0x29f   : > { %6140 = vmatprep.subr.bf16.mxu0 %v8579_v47  ;;  %v8657_v47 = vld [vmem:[%s9595_s12 + $0x1444] ss:$8 sps:$4 sm:$0xff]  }
 0x2a1   : > { %5649 = vmatpush1.bf16.msra.mxu1 %v8574_v37  ;;  %v8652_v37 = vld [vmem:[%s9595_s12 + $0x840] ss:$8 sps:$4 sm:$0xff]  }
 0x2a2   : > { %6141 = vmatpush1.bf16.msra.mxu0 %v8577_v48  ;;  %5650 = vmatprep.subr.bf16.mxu1 %v8582_v17  ;;  %v8655_v48 = vld [vmem:[%s9595_s12 + $0x1440] ss:$8 sps:$4 sm:$0xff]   ;;  %v8660_v17 = vld [vmem:[%s9595_s12 + $0x854] ss:$8 sps:$4 sm:$0xff]  }
 0x2a3   : > { %6142 = vmatprep.subr.bf16.mxu0 %v8585_v49  ;;  %v8663_v49 = vld [vmem:[%s9595_s12 + $0x1454] ss:$8 sps:$4 sm:$0xff]  }
 0x2a5   : > { %5651 = vmatpush1.bf16.msra.mxu1 %v8580_v51  ;;  %v8658_v51 = vld [vmem:[%s9595_s12 + $0x850] ss:$8 sps:$4 sm:$0xff]  }
 0x2a6   : > { %6143 = vmatpush1.bf16.msra.mxu0 %v8583_v52  ;;  %5652 = vmatprep.subr.bf16.mxu1 %v8588_v54  ;;  %v8661_v52 = vld [vmem:[%s9595_s12 + $0x1450] ss:$8 sps:$4 sm:$0xff]   ;;  %v8666_v54 = vld [vmem:[%s9595_s12 + $0x864] ss:$8 sps:$4 sm:$0xff]  }
 0x2a7   : > { %6144 = vmatprep.subr.bf16.mxu0 %v8591_v55  ;;  %v8669_v55 = vld [vmem:[%s9595_s12 + $0x1464] ss:$8 sps:$4 sm:$0xff]  }
 0x2a9   : > { %5653 = vmatpush1.bf16.msra.mxu1 %v8586_v39  ;;  %v8664_v39 = vld [vmem:[%s9595_s12 + $0x860] ss:$8 sps:$4 sm:$0xff]  }
 0x2aa   : > { %6145 = vmatpush1.bf16.msra.mxu0 %v8589_v40  ;;  %5654 = vmatprep.subr.bf16.mxu1 %v8594_v61  ;;  %v8667_v40 = vld [vmem:[%s9595_s12 + $0x1460] ss:$8 sps:$4 sm:$0xff]   ;;  %v8672_v61 = vld [vmem:[%s9595_s12 + $0x874] ss:$8 sps:$4 sm:$0xff]  }
 0x2ab   : > { %6146 = vmatprep.subr.bf16.mxu0 %v8597_v62  ;;  %v8675_v62 = vld [vmem:[%s9595_s12 + $0x1474] ss:$8 sps:$4 sm:$0xff]  }
 0x2ad   : > { %5655 = vmatpush1.bf16.msra.mxu1 %v8592_v63  ;;  %v8670_v63 = vld [vmem:[%s9595_s12 + $0x870] ss:$8 sps:$4 sm:$0xff]  }
 0x2ae   : > { %6147 = vmatpush1.bf16.msra.mxu0 %v8595_v0  ;;  %5656 = vmatprep.subr.bf16.mxu1 %v8600_v41  ;;  %v8673_v0 = vld [vmem:[%s9595_s12 + $0x1470] ss:$8 sps:$4 sm:$0xff]   ;;  %v8678_v41 = vld [vmem:[%s9595_s12 + $0x884] ss:$8 sps:$4 sm:$0xff]  }
 0x2af   : > { %6148 = vmatprep.subr.bf16.mxu0 %v8603_v1  ;;  %v8681_v1 = vld [vmem:[%s9595_s12 + $0x1484] ss:$8 sps:$4 sm:$0xff]  }
 0x2b1   : > { %5657 = vmatpush1.bf16.msra.mxu1 %v8598_v56  ;;  %v8676_v56 = vld [vmem:[%s9595_s12 + $0x880] ss:$8 sps:$4 sm:$0xff]  }
 0x2b2   : > { %6149 = vmatpush1.bf16.msra.mxu0 %v8601_v3  ;;  %5658 = vmatprep.subr.bf16.mxu1 %v8606_v58  ;;  %v8679_v3 = vld [vmem:[%s9595_s12 + $0x1480] ss:$8 sps:$4 sm:$0xff]   ;;  %v8684_v58 = vld [vmem:[%s9595_s12 + $0x894] ss:$8 sps:$4 sm:$0xff]  }
 0x2b3   : > { %6150 = vmatprep.subr.bf16.mxu0 %v8609_v4  ;;  %v8687_v4 = vld [vmem:[%s9595_s12 + $0x1494] ss:$8 sps:$4 sm:$0xff]  }
 0x2b5   : > { %5659 = vmatpush1.bf16.msra.mxu1 %v8604_v5  ;;  %v8682_v5 = vld [vmem:[%s9595_s12 + $0x890] ss:$8 sps:$4 sm:$0xff]  }
 0x2b6   : > { %6151 = vmatpush1.bf16.msra.mxu0 %v8607_v6  ;;  %5660 = vmatprep.subr.bf16.mxu1 %v8612_v7  ;;  %v8685_v6 = vld [vmem:[%s9595_s12 + $0x1490] ss:$8 sps:$4 sm:$0xff]   ;;  %v8690_v7 = vld [vmem:[%s9595_s12 + $0x8a4] ss:$8 sps:$4 sm:$0xff]  }
 0x2b7   : > { %6152 = vmatprep.subr.bf16.mxu0 %v8615_v8  ;;  %v8693_v8 = vld [vmem:[%s9595_s12 + $0x14a4] ss:$8 sps:$4 sm:$0xff]  }
 0x2b9   : > { %5661 = vmatpush1.bf16.msra.mxu1 %v8610_v9  ;;  %v8688_v9 = vld [vmem:[%s9595_s12 + $0x8a0] ss:$8 sps:$4 sm:$0xff]  }
 0x2ba   : > { %6153 = vmatpush1.bf16.msra.mxu0 %v8613_v10  ;;  %5662 = vmatprep.subr.bf16.mxu1 %v8618_v11  ;;  %v8691_v10 = vld [vmem:[%s9595_s12 + $0x14a0] ss:$8 sps:$4 sm:$0xff]   ;;  %v8696_v11 = vld [vmem:[%s9595_s12 + $0x8b4] ss:$8 sps:$4 sm:$0xff]  }
 0x2bb   : > { %6154 = vmatprep.subr.bf16.mxu0 %v8621_v12  ;;  %v8699_v12 = vld [vmem:[%s9595_s12 + $0x14b4] ss:$8 sps:$4 sm:$0xff]  }
 0x2bd   : > { %5663 = vmatpush1.bf16.msra.mxu1 %v8616_v19  ;;  %v8694_v19 = vld [vmem:[%s9595_s12 + $0x8b0] ss:$8 sps:$4 sm:$0xff]  }
 0x2be   : > { %6155 = vmatpush1.bf16.msra.mxu0 %v8619_v20  ;;  %5664 = vmatprep.subr.bf16.mxu1 %v8624_v21  ;;  %v8697_v20 = vld [vmem:[%s9595_s12 + $0x14b0] ss:$8 sps:$4 sm:$0xff]   ;;  %v8702_v21 = vld [vmem:[%s9595_s12 + $0x8c4] ss:$8 sps:$4 sm:$0xff]  }
 0x2bf   : > { %6156 = vmatprep.subr.bf16.mxu0 %v8627_v22  ;;  %v8705_v22 = vld [vmem:[%s9595_s12 + $0x14c4] ss:$8 sps:$4 sm:$0xff]  }
 0x2c1   : > { %5665 = vmatpush1.bf16.msra.mxu1 %v8622_v2  ;;  %v8700_v2 = vld [vmem:[%s9595_s12 + $0x8c0] ss:$8 sps:$4 sm:$0xff]  }
 0x2c2   : > { %6157 = vmatpush1.bf16.msra.mxu0 %v8625_v24  ;;  %5675 = vmatprep.subr.bf16.mxu1 %v8630_v13  ;;  %v8703_v24 = vld [vmem:[%s9595_s12 + $0x14c0] ss:$8 sps:$4 sm:$0xff]   ;;  %v8708_v13 = vld [vmem:[%s9595_s12 + $0x8d4] ss:$8 sps:$4 sm:$0xff]  }
 0x2c3   : > { %6167 = vmatprep.subr.bf16.mxu0 %v8633_v53  ;;  %v8711_v53 = vld [vmem:[%s9595_s12 + $0x14d4] ss:$8 sps:$4 sm:$0xff]  }
 0x2c4   : > { %5667 = vmatmul.mubr.bf16.vlgmr.msra.gmra.mrb[0].mxu1 %v1260_v27  ;;  %v8714_v27 = vld [vmem:[%s9595_s12 + $0x8e4] ss:$8 sps:$4 sm:$0xff]  }
 0x2c5   : > { %6159 = vmatmul.mubr.bf16.vlgmr.msra.gmra.mrb[0].mxu0 %v1407_v28  ;;  %5676 = vmatpush1.bf16.msra.mxu1 %v8628_v29  ;;  %v8717_v28 = vld [vmem:[%s9595_s12 + $0x14e4] ss:$8 sps:$4 sm:$0xff]   ;;  %v8712_v29 = vld [vmem:[%s9595_s12 + $0x8e0] ss:$8 sps:$4 sm:$0xff]  }
 0x2c6   : > { %6168 = vmatpush1.bf16.msra.mxu0 %v8631_v30  ;;  %5677 = vmatprep.subr.bf16.mxu1 %v8636_v31  ;;  %v8715_v30 = vld [vmem:[%s9595_s12 + $0x14e0] ss:$8 sps:$4 sm:$0xff]   ;;  %v8720_v31 = vld [vmem:[%s9595_s12 + $0x8f4] ss:$8 sps:$4 sm:$0xff]  }
 0x2c7   : > { %6169 = vmatprep.subr.bf16.mxu0 %v8639_v32  ;;  %5707 = vmatprep.mubr.bf16.mxu1 %v10295_v33  ;;  %v8723_v32 = vld [vmem:[%s9595_s12 + $0x14f4] ss:$8 sps:$4 sm:$0xff]  }
 0x2c8   : > { %6199 = vmatprep.mubr.bf16.mxu0 %v10298_v15 }
 0x2c9   : > { %5678 = vmatpush1.bf16.msra.mxu1 %v8634_v16  ;;  %v8718_v16 = vld [vmem:[%s9595_s12 + $0x8f0] ss:$8 sps:$4 sm:$0xff]  }
 0x2ca   : > { %6170 = vmatpush1.bf16.msra.mxu0 %v8637_v34  ;;  %5679 = vmatprep.subr.bf16.mxu1 %v8642_v35  ;;  %v8721_v34 = vld [vmem:[%s9595_s12 + $0x14f0] ss:$8 sps:$4 sm:$0xff]   ;;  %v8726_v35 = vld [vmem:[%s9595_s12 + $0x904] ss:$8 sps:$4 sm:$0xff]  }
 0x2cb   : > { %6171 = vmatprep.subr.bf16.mxu0 %v8645_v36  ;;  %v8729_v36 = vld [vmem:[%s9595_s12 + $0x1504] ss:$8 sps:$4 sm:$0xff]  }
 0x2cd   : > { %5680 = vmatpush1.bf16.msra.mxu1 %v8640_v18  ;;  %v10364_v18 = vrot.slane %v10272_v42, %v9662_v50  ;;  %v1310_v42 = vcombine.high %v10295_v33, %v10295_v33  ;;  %v8738_v33 = vld [vmem:[%s9595_s12 + $0x924] ss:$8 sps:$4 sm:$0xff]  }
 0x2ce   : > { %6172 = vmatpush1.bf16.msra.mxu0 %v8643_v38  ;;  %5681 = vmatprep.subr.bf16.mxu1 %v8648_v43  ;;  %v10368_v38 = vrot.slane %v10276_v23, %v9662_v50  ;;  %v8724_v43 = vld [vmem:[%s9595_s12 + $0x900] ss:$8 sps:$4 sm:$0xff]   ;;  %v8730_v23 = vld [vmem:[%s9595_s12 + $0x910] ss:$8 sps:$4 sm:$0xff]  }
 0x2cf   : > { %6173 = vmatprep.subr.bf16.mxu0 %v8651_v45  ;;  %v8727_v45 = vld [vmem:[%s9595_s12 + $0x1500] ss:$8 sps:$4 sm:$0xff]  }
 0x2d1   : > { %5682 = vmatpush1.bf16.msra.mxu1 %v8646_v25  ;;  %v8732_v25 = vld [vmem:[%s9595_s12 + $0x914] ss:$8 sps:$4 sm:$0xff]  }
 0x2d2   : > { %6174 = vmatpush1.bf16.msra.mxu0 %v8649_v46  ;;  %5683 = vmatprep.subr.bf16.mxu1 %v8654_v26  ;;  %v8735_v46 = vld [vmem:[%s9595_s12 + $0x1514] ss:$8 sps:$4 sm:$0xff]   ;;  %v1457_v26 = vcombine.high %v10298_v15, %v10298_v15  ;;  %v8736_v15 = vld [vmem:[%s9595_s12 + $0x920] ss:$8 sps:$4 sm:$0xff]  }
 0x2d3   : > { %6175 = vmatprep.subr.bf16.mxu0 %v8657_v47  ;;  %v8733_v47 = vld [vmem:[%s9595_s12 + $0x1510] ss:$8 sps:$4 sm:$0xff]  }
 0x2d5   : > { %5684 = vmatpush1.bf16.msra.mxu1 %v8652_v37  ;;  %v8741_v37 = vld [vmem:[%s9595_s12 + $0x1524] ss:$8 sps:$4 sm:$0xff]  }
 0x2d6   : > { %6176 = vmatpush1.bf16.msra.mxu0 %v8655_v48  ;;  %5685 = vmatprep.subr.bf16.mxu1 %v8660_v17  ;;  %v8739_v48 = vld [vmem:[%s9595_s12 + $0x1520] ss:$8 sps:$4 sm:$0xff]   ;;  %v8744_v17 = vld [vmem:[%s9595_s12 + $0x934] ss:$8 sps:$4 sm:$0xff]  }
 0x2d7   : > { %6177 = vmatprep.subr.bf16.mxu0 %v8663_v49  ;;  %v8747_v49 = vld [vmem:[%s9595_s12 + $0x1534] ss:$8 sps:$4 sm:$0xff]  }
 0x2d9   : > { %5686 = vmatpush1.bf16.msra.mxu1 %v8658_v51  ;;  %v8742_v51 = vld [vmem:[%s9595_s12 + $0x930] ss:$8 sps:$4 sm:$0xff]  }
 0x2da   : > { %6178 = vmatpush1.bf16.msra.mxu0 %v8661_v52  ;;  %5687 = vmatprep.subr.bf16.mxu1 %v8666_v54  ;;  %v8745_v52 = vld [vmem:[%s9595_s12 + $0x1530] ss:$8 sps:$4 sm:$0xff]   ;;  %v8750_v54 = vld [vmem:[%s9595_s12 + $0x944] ss:$8 sps:$4 sm:$0xff]  }
 0x2db   : > { %6179 = vmatprep.subr.bf16.mxu0 %v8669_v55  ;;  %v8753_v55 = vld [vmem:[%s9595_s12 + $0x1544] ss:$8 sps:$4 sm:$0xff]  }
 0x2dd   : > { %5688 = vmatpush1.bf16.msra.mxu1 %v8664_v39  ;;  %v8748_v39 = vld [vmem:[%s9595_s12 + $0x940] ss:$8 sps:$4 sm:$0xff]  }
 0x2de   : > { %6180 = vmatpush1.bf16.msra.mxu0 %v8667_v40  ;;  %5689 = vmatprep.subr.bf16.mxu1 %v8672_v61  ;;  %v8751_v40 = vld [vmem:[%s9595_s12 + $0x1540] ss:$8 sps:$4 sm:$0xff]   ;;  %v8756_v61 = vld [vmem:[%s9595_s12 + $0x954] ss:$8 sps:$4 sm:$0xff]  }
 0x2df   : > { %6181 = vmatprep.subr.bf16.mxu0 %v8675_v62  ;;  %v8759_v62 = vld [vmem:[%s9595_s12 + $0x1554] ss:$8 sps:$4 sm:$0xff]  }
 0x2e1   : > { %5690 = vmatpush1.bf16.msra.mxu1 %v8670_v63  ;;  %v8754_v63 = vld [vmem:[%s9595_s12 + $0x950] ss:$8 sps:$4 sm:$0xff]  }
 0x2e2   : > { %6182 = vmatpush1.bf16.msra.mxu0 %v8673_v0  ;;  %5691 = vmatprep.subr.bf16.mxu1 %v8678_v41  ;;  %v8757_v0 = vld [vmem:[%s9595_s12 + $0x1550] ss:$8 sps:$4 sm:$0xff]   ;;  %v8762_v41 = vld [vmem:[%s9595_s12 + $0x964] ss:$8 sps:$4 sm:$0xff]  }
 0x2e3   : > { %6183 = vmatprep.subr.bf16.mxu0 %v8681_v1  ;;  %v8765_v1 = vld [vmem:[%s9595_s12 + $0x1564] ss:$8 sps:$4 sm:$0xff]  }
 0x2e5   : > { %5692 = vmatpush1.bf16.msra.mxu1 %v8676_v56  ;;  %v8760_v56 = vld [vmem:[%s9595_s12 + $0x960] ss:$8 sps:$4 sm:$0xff]  }
 0x2e6   : > { %6184 = vmatpush1.bf16.msra.mxu0 %v8679_v3  ;;  %5693 = vmatprep.subr.bf16.mxu1 %v8684_v58  ;;  %v8763_v3 = vld [vmem:[%s9595_s12 + $0x1560] ss:$8 sps:$4 sm:$0xff]   ;;  %v8768_v58 = vld [vmem:[%s9595_s12 + $0x974] ss:$8 sps:$4 sm:$0xff]  }
 0x2e7   : > { %6185 = vmatprep.subr.bf16.mxu0 %v8687_v4  ;;  %v8771_v4 = vld [vmem:[%s9595_s12 + $0x1574] ss:$8 sps:$4 sm:$0xff]  }
 0x2e9   : > { %5694 = vmatpush1.bf16.msra.mxu1 %v8682_v5  ;;  %v8766_v5 = vld [vmem:[%s9595_s12 + $0x970] ss:$8 sps:$4 sm:$0xff]  }
 0x2ea   : > { %6186 = vmatpush1.bf16.msra.mxu0 %v8685_v6  ;;  %5695 = vmatprep.subr.bf16.mxu1 %v8690_v7  ;;  %v8769_v6 = vld [vmem:[%s9595_s12 + $0x1570] ss:$8 sps:$4 sm:$0xff]   ;;  %v8774_v7 = vld [vmem:[%s9595_s12 + $0x984] ss:$8 sps:$4 sm:$0xff]  }
 0x2eb   : > { %6187 = vmatprep.subr.bf16.mxu0 %v8693_v8  ;;  %v8777_v8 = vld [vmem:[%s9595_s12 + $0x1584] ss:$8 sps:$4 sm:$0xff]  }
 0x2ed   : > { %5696 = vmatpush1.bf16.msra.mxu1 %v8688_v9  ;;  %v8772_v9 = vld [vmem:[%s9595_s12 + $0x980] ss:$8 sps:$4 sm:$0xff]  }
 0x2ee   : > { %6188 = vmatpush1.bf16.msra.mxu0 %v8691_v10  ;;  %5697 = vmatprep.subr.bf16.mxu1 %v8696_v11  ;;  %v8775_v10 = vld [vmem:[%s9595_s12 + $0x1580] ss:$8 sps:$4 sm:$0xff]   ;;  %v8780_v11 = vld [vmem:[%s9595_s12 + $0x994] ss:$8 sps:$4 sm:$0xff]  }
 0x2ef   : > { %6189 = vmatprep.subr.bf16.mxu0 %v8699_v12  ;;  %v8783_v12 = vld [vmem:[%s9595_s12 + $0x1594] ss:$8 sps:$4 sm:$0xff]  }
 0x2f1   : > { %5698 = vmatpush1.bf16.msra.mxu1 %v8694_v19  ;;  %v8778_v19 = vld [vmem:[%s9595_s12 + $0x990] ss:$8 sps:$4 sm:$0xff]  }
 0x2f2   : > { %6190 = vmatpush1.bf16.msra.mxu0 %v8697_v20  ;;  %5699 = vmatprep.subr.bf16.mxu1 %v8702_v21  ;;  %v8781_v20 = vld [vmem:[%s9595_s12 + $0x1590] ss:$8 sps:$4 sm:$0xff]   ;;  %v8786_v21 = vld [vmem:[%s9595_s12 + $0x9a4] ss:$8 sps:$4 sm:$0xff]  }
 0x2f3   : > { %6191 = vmatprep.subr.bf16.mxu0 %v8705_v22  ;;  %v8789_v22 = vld [vmem:[%s9595_s12 + $0x15a4] ss:$8 sps:$4 sm:$0xff]  }
 0x2f5   : > { %5700 = vmatpush1.bf16.msra.mxu1 %v8700_v2  ;;  %v8784_v2 = vld [vmem:[%s9595_s12 + $0x9a0] ss:$8 sps:$4 sm:$0xff]  }
 0x2f6   : > { %6192 = vmatpush1.bf16.msra.mxu0 %v8703_v24  ;;  %5701 = vmatprep.subr.bf16.mxu1 %v8708_v13  ;;  %v8787_v24 = vld [vmem:[%s9595_s12 + $0x15a0] ss:$8 sps:$4 sm:$0xff]   ;;  %v8792_v13 = vld [vmem:[%s9595_s12 + $0x9b4] ss:$8 sps:$4 sm:$0xff]  }
 0x2f7   : > { %6193 = vmatprep.subr.bf16.mxu0 %v8711_v53  ;;  %v8795_v53 = vld [vmem:[%s9595_s12 + $0x15b4] ss:$8 sps:$4 sm:$0xff]  }
 0x2f9   : > { %5702 = vmatpush1.bf16.msra.mxu1 %v8706_v59  ;;  %v8790_v59 = vld [vmem:[%s9595_s12 + $0x9b0] ss:$8 sps:$4 sm:$0xff]  }
 0x2fa   : > { %6194 = vmatpush1.bf16.msra.mxu0 %v8709_v57  ;;  %5703 = vmatprep.subr.bf16.mxu1 %v8714_v27  ;;  %v8793_v57 = vld [vmem:[%s9595_s12 + $0x15b0] ss:$8 sps:$4 sm:$0xff]   ;;  %v8798_v27 = vld [vmem:[%s9595_s12 + $0x9c4] ss:$8 sps:$4 sm:$0xff]  }
 0x2fb   : > { %6195 = vmatprep.subr.bf16.mxu0 %v8717_v28  ;;  %v8801_v28 = vld [vmem:[%s9595_s12 + $0x15c4] ss:$8 sps:$4 sm:$0xff]  }
 0x2fd   : > { %5704 = vmatpush1.bf16.msra.mxu1 %v8712_v29  ;;  %v8796_v29 = vld [vmem:[%s9595_s12 + $0x9c0] ss:$8 sps:$4 sm:$0xff]  }
 0x2fe   : > { %6196 = vmatpush1.bf16.msra.mxu0 %v8715_v30  ;;  %5705 = vmatprep.subr.bf16.mxu1 %v8720_v31  ;;  %v8799_v30 = vld [vmem:[%s9595_s12 + $0x15c0] ss:$8 sps:$4 sm:$0xff]   ;;  %v8804_v31 = vld [vmem:[%s9595_s12 + $0x9d4] ss:$8 sps:$4 sm:$0xff]  }
 0x2ff   : > { %6197 = vmatprep.subr.bf16.mxu0 %v8723_v32  ;;  %v8807_v32 = vld [vmem:[%s9595_s12 + $0x15d4] ss:$8 sps:$4 sm:$0xff]  }
 0x301   : > { %5706 = vmatpush1.bf16.msra.mxu1 %v8718_v16  ;;  %v8802_v16 = vld [vmem:[%s9595_s12 + $0x9d0] ss:$8 sps:$4 sm:$0xff]  }
 0x302   : > { %6198 = vmatpush1.bf16.msra.mxu0 %v8721_v34  ;;  %5716 = vmatprep.subr.bf16.mxu1 %v8726_v35  ;;  %v8805_v34 = vld [vmem:[%s9595_s12 + $0x15d0] ss:$8 sps:$4 sm:$0xff]   ;;  %v8810_v35 = vld [vmem:[%s9595_s12 + $0x9e4] ss:$8 sps:$4 sm:$0xff]  }
 0x303   : > { %6208 = vmatprep.subr.bf16.mxu0 %v8729_v36  ;;  %v8813_v36 = vld [vmem:[%s9595_s12 + $0x15e4] ss:$8 sps:$4 sm:$0xff]  }
 0x304   : > { %5708 = vmatmul.mubr.bf16.vlgmr.msra.gmra.mrb[0].mxu1 %v10364_v18 }
 0x305   : > { %6200 = vmatmul.mubr.bf16.vlgmr.msra.gmra.mrb[0].mxu0 %v10368_v38  ;;  %5717 = vmatpush1.bf16.msra.mxu1 %v8724_v43  ;;  %v1263_v43 = vcombine.high %v10261_v60, %v10261_v60  ;;  %v8814_v60 = vld [vmem:[%s9595_s12 + $0x9f0] ss:$8 sps:$4 sm:$0xff]  }
 0x306   : > { %6209 = vmatpush1.bf16.msra.mxu0 %v8727_v45  ;;  %5718 = vmatprep.subr.bf16.mxu1 %v8732_v25  ;;  %v1410_v45 = vcombine.high %v10264_v14, %v10264_v14  ;;  %v8808_v25 = vld [vmem:[%s9595_s12 + $0x9e0] ss:$8 sps:$4 sm:$0xff]   ;;  %v8817_v14 = vld [vmem:[%s9595_s12 + $0x15f0] ss:$8 sps:$4 sm:$0xff]  }
 0x307   : > { %6210 = vmatprep.subr.bf16.mxu0 %v8735_v46  ;;  %5748 = vmatprep.mubr.bf16.mxu1 %v1310_v42  ;;  %v8811_v46 = vld [vmem:[%s9595_s12 + $0x15e0] ss:$8 sps:$4 sm:$0xff]   ;;  %v8816_v42 = vld [vmem:[%s9595_s12 + $0x9f4] ss:$8 sps:$4 sm:$0xff]  }
 0x308   : > { %6240 = vmatprep.mubr.bf16.mxu0 %v1457_v26  ;;  %v8819_v26 = vld [vmem:[%s9595_s12 + $0x15f4] ss:$8 sps:$4 sm:$0xff]  }
 0x309   : > { %5719 = vmatpush1.bf16.msra.mxu1 %v8730_v23  ;;  %v10441_v23 = vrot.slane %v1263_v43, %v9662_v50  ;;  %v8886_v43 = vld [vmem:[%s9595_s12 + $0xab0] ss:$8 sps:$4 sm:$0xff]  }
 0x30a   : > { %6211 = vmatpush1.bf16.msra.mxu0 %v8733_v47  ;;  %5720 = vmatprep.subr.bf16.mxu1 %v8738_v33  ;;  %v10444_v47 = vrot.slane %v1410_v45, %v9662_v50  ;;  %v8822_v33 = vld [vmem:[%s9595_s12 + $0xa04] ss:$8 sps:$4 sm:$0xff]   ;;  %v8889_v45 = vld [vmem:[%s9595_s12 + $0x16b0] ss:$8 sps:$4 sm:$0xff]  }
 0x30b   : > { %6212 = vmatprep.subr.bf16.mxu0 %v8741_v37  ;;  %v8825_v37 = vld [vmem:[%s9595_s12 + $0x1604] ss:$8 sps:$4 sm:$0xff]  }
 0x30d   : > { %5721 = vmatpush1.bf16.msra.mxu1 %v8736_v15  ;;  %v1279_v15 = vcombine.high %v10441_v23, %v10441_v23 }
 0x30e   : > { %6213 = vmatpush1.bf16.msra.mxu0 %v8739_v48  ;;  %5722 = vmatprep.subr.bf16.mxu1 %v8744_v17  ;;  %v1426_v48 = vcombine.high %v10444_v47, %v10444_v47  ;;  %v1308_v17 = vcombine.high %v10364_v18, %v10364_v18 }
 0x30f   : > { %6214 = vmatprep.subr.bf16.mxu0 %v8747_v49  ;;  %v1455_v49 = vcombine.high %v10368_v38, %v10368_v38  ;;  %v8826_v38 = vld [vmem:[%s9595_s12 + $0xa10] ss:$8 sps:$4 sm:$0xff]  }
 0x310   : > { %v10466_v18 = vrot.slane %v1426_v48, %v9662_v50  ;;  %v8909_v48 = vld [vmem:[%s9595_s12 + $0x16e4] ss:$8 sps:$4 sm:$0xff]  }
 0x311   : > { %5723 = vmatpush1.bf16.msra.mxu1 %v8742_v51  ;;  %v8820_v51 = vld [vmem:[%s9595_s12 + $0xa00] ss:$8 sps:$4 sm:$0xff]  }
 0x312   : > { %6215 = vmatpush1.bf16.msra.mxu0 %v8745_v52  ;;  %5724 = vmatprep.subr.bf16.mxu1 %v8750_v54  ;;  %v8823_v52 = vld [vmem:[%s9595_s12 + $0x1600] ss:$8 sps:$4 sm:$0xff]   ;;  %v8828_v54 = vld [vmem:[%s9595_s12 + $0xa14] ss:$8 sps:$4 sm:$0xff]  }
 0x313   : > { %6216 = vmatprep.subr.bf16.mxu0 %v8753_v55  ;;  %v8831_v55 = vld [vmem:[%s9595_s12 + $0x1614] ss:$8 sps:$4 sm:$0xff]  }
 0x315   : > { %5725 = vmatpush1.bf16.msra.mxu1 %v8748_v39  ;;  %v10463_v39 = vrot.slane %v1279_v15, %v9662_v50  ;;  %v8906_v15 = vld [vmem:[%s9595_s12 + $0xae4] ss:$8 sps:$4 sm:$0xff]  }
 0x316   : > { %6217 = vmatpush1.bf16.msra.mxu0 %v8751_v40  ;;  %5726 = vmatprep.subr.bf16.mxu1 %v8756_v61  ;;  %v8829_v40 = vld [vmem:[%s9595_s12 + $0x1610] ss:$8 sps:$4 sm:$0xff]   ;;  %v8834_v61 = vld [vmem:[%s9595_s12 + $0xa24] ss:$8 sps:$4 sm:$0xff]  }
 0x317   : > { %6218 = vmatprep.subr.bf16.mxu0 %v8759_v62  ;;  %v8837_v62 = vld [vmem:[%s9595_s12 + $0x1624] ss:$8 sps:$4 sm:$0xff]  }
 0x319   : > { %5727 = vmatpush1.bf16.msra.mxu1 %v8754_v63  ;;  %v8832_v63 = vld [vmem:[%s9595_s12 + $0xa20] ss:$8 sps:$4 sm:$0xff]  }
 0x31a   : > { %6219 = vmatpush1.bf16.msra.mxu0 %v8757_v0  ;;  %5728 = vmatprep.subr.bf16.mxu1 %v8762_v41  ;;  %v8835_v0 = vld [vmem:[%s9595_s12 + $0x1620] ss:$8 sps:$4 sm:$0xff]   ;;  %v8840_v41 = vld [vmem:[%s9595_s12 + $0xa34] ss:$8 sps:$4 sm:$0xff]  }
 0x31b   : > { %6220 = vmatprep.subr.bf16.mxu0 %v8765_v1  ;;  %v8843_v1 = vld [vmem:[%s9595_s12 + $0x1634] ss:$8 sps:$4 sm:$0xff]  }
 0x31d   : > { %5729 = vmatpush1.bf16.msra.mxu1 %v8760_v56  ;;  %v8838_v56 = vld [vmem:[%s9595_s12 + $0xa30] ss:$8 sps:$4 sm:$0xff]  }
 0x31e   : > { %6221 = vmatpush1.bf16.msra.mxu0 %v8763_v3  ;;  %5730 = vmatprep.subr.bf16.mxu1 %v8768_v58  ;;  %v8841_v3 = vld [vmem:[%s9595_s12 + $0x1630] ss:$8 sps:$4 sm:$0xff]   ;;  %v8846_v58 = vld [vmem:[%s9595_s12 + $0xa44] ss:$8 sps:$4 sm:$0xff]  }
 0x31f   : > { %6222 = vmatprep.subr.bf16.mxu0 %v8771_v4  ;;  %v8849_v4 = vld [vmem:[%s9595_s12 + $0x1644] ss:$8 sps:$4 sm:$0xff]  }
 0x321   : > { %5731 = vmatpush1.bf16.msra.mxu1 %v8766_v5  ;;  %v8844_v5 = vld [vmem:[%s9595_s12 + $0xa40] ss:$8 sps:$4 sm:$0xff]  }
 0x322   : > { %6223 = vmatpush1.bf16.msra.mxu0 %v8769_v6  ;;  %5732 = vmatprep.subr.bf16.mxu1 %v8774_v7  ;;  %v8847_v6 = vld [vmem:[%s9595_s12 + $0x1640] ss:$8 sps:$4 sm:$0xff]   ;;  %v8852_v7 = vld [vmem:[%s9595_s12 + $0xa54] ss:$8 sps:$4 sm:$0xff]  }
 0x323   : > { %6224 = vmatprep.subr.bf16.mxu0 %v8777_v8  ;;  %v8855_v8 = vld [vmem:[%s9595_s12 + $0x1654] ss:$8 sps:$4 sm:$0xff]  }
 0x325   : > { %5733 = vmatpush1.bf16.msra.mxu1 %v8772_v9  ;;  %v8850_v9 = vld [vmem:[%s9595_s12 + $0xa50] ss:$8 sps:$4 sm:$0xff]  }
 0x326   : > { %6225 = vmatpush1.bf16.msra.mxu0 %v8775_v10  ;;  %5734 = vmatprep.subr.bf16.mxu1 %v8780_v11  ;;  %v8853_v10 = vld [vmem:[%s9595_s12 + $0x1650] ss:$8 sps:$4 sm:$0xff]   ;;  %v8858_v11 = vld [vmem:[%s9595_s12 + $0xa64] ss:$8 sps:$4 sm:$0xff]  }
 0x327   : > { %6226 = vmatprep.subr.bf16.mxu0 %v8783_v12  ;;  %v8861_v12 = vld [vmem:[%s9595_s12 + $0x1664] ss:$8 sps:$4 sm:$0xff]  }
 0x329   : > { %5735 = vmatpush1.bf16.msra.mxu1 %v8778_v19  ;;  %v8856_v19 = vld [vmem:[%s9595_s12 + $0xa60] ss:$8 sps:$4 sm:$0xff]  }
 0x32a   : > { %6227 = vmatpush1.bf16.msra.mxu0 %v8781_v20  ;;  %5736 = vmatprep.subr.bf16.mxu1 %v8786_v21  ;;  %v8859_v20 = vld [vmem:[%s9595_s12 + $0x1660] ss:$8 sps:$4 sm:$0xff]   ;;  %v8864_v21 = vld [vmem:[%s9595_s12 + $0xa74] ss:$8 sps:$4 sm:$0xff]  }
 0x32b   : > { %6228 = vmatprep.subr.bf16.mxu0 %v8789_v22  ;;  %v8867_v22 = vld [vmem:[%s9595_s12 + $0x1674] ss:$8 sps:$4 sm:$0xff]  }
 0x32d   : > { %5737 = vmatpush1.bf16.msra.mxu1 %v8784_v2  ;;  %v8862_v2 = vld [vmem:[%s9595_s12 + $0xa70] ss:$8 sps:$4 sm:$0xff]  }
 0x32e   : > { %6229 = vmatpush1.bf16.msra.mxu0 %v8787_v24  ;;  %5738 = vmatprep.subr.bf16.mxu1 %v8792_v13  ;;  %v8865_v24 = vld [vmem:[%s9595_s12 + $0x1670] ss:$8 sps:$4 sm:$0xff]   ;;  %v8870_v13 = vld [vmem:[%s9595_s12 + $0xa84] ss:$8 sps:$4 sm:$0xff]  }
 0x32f   : > { %6230 = vmatprep.subr.bf16.mxu0 %v8795_v53  ;;  %v8873_v53 = vld [vmem:[%s9595_s12 + $0x1684] ss:$8 sps:$4 sm:$0xff]  }
 0x331   : > { %5739 = vmatpush1.bf16.msra.mxu1 %v8790_v59  ;;  %v8868_v59 = vld [vmem:[%s9595_s12 + $0xa80] ss:$8 sps:$4 sm:$0xff]  }
 0x332   : > { %6231 = vmatpush1.bf16.msra.mxu0 %v8793_v57  ;;  %5740 = vmatprep.subr.bf16.mxu1 %v8798_v27  ;;  %v8871_v57 = vld [vmem:[%s9595_s12 + $0x1680] ss:$8 sps:$4 sm:$0xff]   ;;  %v8876_v27 = vld [vmem:[%s9595_s12 + $0xa94] ss:$8 sps:$4 sm:$0xff]  }
 0x333   : > { %6232 = vmatprep.subr.bf16.mxu0 %v8801_v28  ;;  %v8879_v28 = vld [vmem:[%s9595_s12 + $0x1694] ss:$8 sps:$4 sm:$0xff]  }
 0x335   : > { %5741 = vmatpush1.bf16.msra.mxu1 %v8796_v29  ;;  %v8874_v29 = vld [vmem:[%s9595_s12 + $0xa90] ss:$8 sps:$4 sm:$0xff]  }
 0x336   : > { %6233 = vmatpush1.bf16.msra.mxu0 %v8799_v30  ;;  %5742 = vmatprep.subr.bf16.mxu1 %v8804_v31  ;;  %v8877_v30 = vld [vmem:[%s9595_s12 + $0x1690] ss:$8 sps:$4 sm:$0xff]   ;;  %v8882_v31 = vld [vmem:[%s9595_s12 + $0xaa4] ss:$8 sps:$4 sm:$0xff]  }
 0x337   : > { %6234 = vmatprep.subr.bf16.mxu0 %v8807_v32  ;;  %v8885_v32 = vld [vmem:[%s9595_s12 + $0x16a4] ss:$8 sps:$4 sm:$0xff]  }
 0x339   : > { %5743 = vmatpush1.bf16.msra.mxu1 %v8802_v16  ;;  %v8880_v16 = vld [vmem:[%s9595_s12 + $0xaa0] ss:$8 sps:$4 sm:$0xff]  }
 0x33a   : > { %6235 = vmatpush1.bf16.msra.mxu0 %v8805_v34  ;;  %5744 = vmatprep.subr.bf16.mxu1 %v8810_v35  ;;  %v8883_v34 = vld [vmem:[%s9595_s12 + $0x16a0] ss:$8 sps:$4 sm:$0xff]   ;;  %v8888_v35 = vld [vmem:[%s9595_s12 + $0xab4] ss:$8 sps:$4 sm:$0xff]  }
 0x33b   : > { %6236 = vmatprep.subr.bf16.mxu0 %v8813_v36  ;;  %v8891_v36 = vld [vmem:[%s9595_s12 + $0x16b4] ss:$8 sps:$4 sm:$0xff]  }
 0x33d   : > { %5745 = vmatpush1.bf16.msra.mxu1 %v8808_v25  ;;  %v8894_v25 = vld [vmem:[%s9595_s12 + $0xac4] ss:$8 sps:$4 sm:$0xff]  }
 0x33e   : > { %6237 = vmatpush1.bf16.msra.mxu0 %v8811_v46  ;;  %5746 = vmatprep.subr.bf16.mxu1 %v8816_v42  ;;  %v8897_v46 = vld [vmem:[%s9595_s12 + $0x16c4] ss:$8 sps:$4 sm:$0xff]   ;;  %v8892_v42 = vld [vmem:[%s9595_s12 + $0xac0] ss:$8 sps:$4 sm:$0xff]  }
 0x33f   : > { %6238 = vmatprep.subr.bf16.mxu0 %v8819_v26  ;;  %v8895_v26 = vld [vmem:[%s9595_s12 + $0x16c0] ss:$8 sps:$4 sm:$0xff]  }
 0x341   : > { %5747 = vmatpush1.bf16.msra.mxu1 %v8814_v60  ;;  %v8900_v60 = vld [vmem:[%s9595_s12 + $0xad4] ss:$8 sps:$4 sm:$0xff]  }
 0x342   : > { %6239 = vmatpush1.bf16.msra.mxu0 %v8817_v14  ;;  %5757 = vmatprep.subr.bf16.mxu1 %v8822_v33  ;;  %v8903_v14 = vld [vmem:[%s9595_s12 + $0x16d4] ss:$8 sps:$4 sm:$0xff]   ;;  %v8898_v33 = vld [vmem:[%s9595_s12 + $0xad0] ss:$8 sps:$4 sm:$0xff]  }
 0x343   : > { %6249 = vmatprep.subr.bf16.mxu0 %v8825_v37  ;;  %v8901_v37 = vld [vmem:[%s9595_s12 + $0x16d0] ss:$8 sps:$4 sm:$0xff]  }
 0x344   : > { %5749 = vmatmul.mubr.bf16.vlgmr.msra.gmra.mrb[0].mxu1 %v1308_v17  ;;  %v8904_v17 = vld [vmem:[%s9595_s12 + $0xae0] ss:$8 sps:$4 sm:$0xff]  }
 0x345   : > { %6241 = vmatmul.mubr.bf16.vlgmr.msra.gmra.mrb[0].mxu0 %v1455_v49  ;;  %5758 = vmatpush1.bf16.msra.mxu1 %v8820_v51  ;;  %v8907_v49 = vld [vmem:[%s9595_s12 + $0x16e0] ss:$8 sps:$4 sm:$0xff]   ;;  %v8912_v51 = vld [vmem:[%s9595_s12 + $0xaf4] ss:$8 sps:$4 sm:$0xff]  }
 0x346   : > { %6250 = vmatpush1.bf16.msra.mxu0 %v8823_v52  ;;  %5759 = vmatprep.subr.bf16.mxu1 %v8828_v54  ;;  %v8915_v52 = vld [vmem:[%s9595_s12 + $0x16f4] ss:$8 sps:$4 sm:$0xff]   ;;  %v8910_v54 = vld [vmem:[%s9595_s12 + $0xaf0] ss:$8 sps:$4 sm:$0xff]  }
 0x347   : > { %6251 = vmatprep.subr.bf16.mxu0 %v8831_v55  ;;  %5789 = vmatprep.mubr.bf16.mxu1 %v10463_v39  ;;  %v8913_v55 = vld [vmem:[%s9595_s12 + $0x16f0] ss:$8 sps:$4 sm:$0xff]  }
 0x348   : > { %6281 = vmatprep.mubr.bf16.mxu0 %v10466_v18 }
 0x349   : > { %5760 = vmatpush1.bf16.msra.mxu1 %v8826_v38  ;;  %v8919_v38 = vld [vmem:[%s9595_s12 + $0xb04] ss:$8 sps:$4 sm:$0xff]  }
 0x34a   : > { %6252 = vmatpush1.bf16.msra.mxu0 %v8829_v40  ;;  %5761 = vmatprep.subr.bf16.mxu1 %v8834_v61  ;;  %v8923_v40 = vld [vmem:[%s9595_s12 + $0x1704] ss:$8 sps:$4 sm:$0xff]   ;;  %v10532_v61 = vrot.slane %v10441_v23, %v9662_v50  ;;  %v1311_v23 = vcombine.high %v10463_v39, %v10463_v39 }
 0x34b   : > { %6253 = vmatprep.subr.bf16.mxu0 %v8837_v62  ;;  %v10536_v62 = vrot.slane %v10444_v47, %v9662_v50  ;;  %v8924_v50 = vld [vmem:[%s9595_s12 + $0xb10] ss:$8 sps:$4 sm:$0xff]   ;;  %v8932_v39 = vld [vmem:[%s9595_s12 + $0xb24] ss:$8 sps:$4 sm:$0xff]  }
 0x34c   : > { %v8927_v47 = vld [vmem:[%s9595_s12 + $0x1710] ss:$8 sps:$4 sm:$0xff]  }
 0x34d   : > { %5762 = vmatpush1.bf16.msra.mxu1 %v8832_v63  ;;  %v8917_v63 = vld [vmem:[%s9595_s12 + $0xb00] ss:$8 sps:$4 sm:$0xff]  }
 0x34e   : > { %6254 = vmatpush1.bf16.msra.mxu0 %v8835_v0  ;;  %5763 = vmatprep.subr.bf16.mxu1 %v8840_v41  ;;  %v8921_v0 = vld [vmem:[%s9595_s12 + $0x1700] ss:$8 sps:$4 sm:$0xff]   ;;  %v8926_v41 = vld [vmem:[%s9595_s12 + $0xb14] ss:$8 sps:$4 sm:$0xff]  }
 0x34f   : > { %6255 = vmatprep.subr.bf16.mxu0 %v8843_v1  ;;  %v8929_v1 = vld [vmem:[%s9595_s12 + $0x1714] ss:$8 sps:$4 sm:$0xff]  }
 0x351   : > { %5764 = vmatpush1.bf16.msra.mxu1 %v8838_v56  ;;  %v1458_v56 = vcombine.high %v10466_v18, %v10466_v18  ;;  %v8930_v18 = vld [vmem:[%s9595_s12 + $0xb20] ss:$8 sps:$4 sm:$0xff]  }
 0x352   : > { %6256 = vmatpush1.bf16.msra.mxu0 %v8841_v3  ;;  %5765 = vmatprep.subr.bf16.mxu1 %v8846_v58  ;;  %v8935_v3 = vld [vmem:[%s9595_s12 + $0x1724] ss:$8 sps:$4 sm:$0xff]   ;;  %v8933_v58 = vld [vmem:[%s9595_s12 + $0x1720] ss:$8 sps:$4 sm:$0xff]  }
 0x353   : > { %6257 = vmatprep.subr.bf16.mxu0 %v8849_v4  ;;  %v8938_v4 = vld [vmem:[%s9595_s12 + $0xb34] ss:$8 sps:$4 sm:$0xff]  }
 0x355   : > { %5766 = vmatpush1.bf16.msra.mxu1 %v8844_v5  ;;  %v8941_v5 = vld [vmem:[%s9595_s12 + $0x1734] ss:$8 sps:$4 sm:$0xff]  }
 0x356   : > { %6258 = vmatpush1.bf16.msra.mxu0 %v8847_v6  ;;  %5767 = vmatprep.subr.bf16.mxu1 %v8852_v7  ;;  %v8936_v6 = vld [vmem:[%s9595_s12 + $0xb30] ss:$8 sps:$4 sm:$0xff]  }
 0x357   : > { %6259 = vmatprep.subr.bf16.mxu0 %v8855_v8  ;;  %v8939_v7 = vld [vmem:[%s9595_s12 + $0x1730] ss:$8 sps:$4 sm:$0xff]   ;;  %v8944_v8 = vld [vmem:[%s9595_s12 + $0xb44] ss:$8 sps:$4 sm:$0xff]  }
 0x359   : > { %5768 = vmatpush1.bf16.msra.mxu1 %v8850_v9  ;;  %v8947_v9 = vld [vmem:[%s9595_s12 + $0x1744] ss:$8 sps:$4 sm:$0xff]  }
 0x35a   : > { %6260 = vmatpush1.bf16.msra.mxu0 %v8853_v10  ;;  %5769 = vmatprep.subr.bf16.mxu1 %v8858_v11  ;;  %v8942_v10 = vld [vmem:[%s9595_s12 + $0xb40] ss:$8 sps:$4 sm:$0xff]  }
 0x35b   : > { %6261 = vmatprep.subr.bf16.mxu0 %v8861_v12  ;;  %v8945_v11 = vld [vmem:[%s9595_s12 + $0x1740] ss:$8 sps:$4 sm:$0xff]   ;;  %v8950_v12 = vld [vmem:[%s9595_s12 + $0xb54] ss:$8 sps:$4 sm:$0xff]  }
 0x35d   : > { %5770 = vmatpush1.bf16.msra.mxu1 %v8856_v19  ;;  %v8953_v19 = vld [vmem:[%s9595_s12 + $0x1754] ss:$8 sps:$4 sm:$0xff]  }
 0x35e   : > { %6262 = vmatpush1.bf16.msra.mxu0 %v8859_v20  ;;  %5771 = vmatprep.subr.bf16.mxu1 %v8864_v21  ;;  %v8948_v20 = vld [vmem:[%s9595_s12 + $0xb50] ss:$8 sps:$4 sm:$0xff]  }
 0x35f   : > { %6263 = vmatprep.subr.bf16.mxu0 %v8867_v22  ;;  %v8951_v21 = vld [vmem:[%s9595_s12 + $0x1750] ss:$8 sps:$4 sm:$0xff]   ;;  %v8956_v22 = vld [vmem:[%s9595_s12 + $0xb64] ss:$8 sps:$4 sm:$0xff]  }
 0x361   : > { %5772 = vmatpush1.bf16.msra.mxu1 %v8862_v2  ;;  %v8959_v2 = vld [vmem:[%s9595_s12 + $0x1764] ss:$8 sps:$4 sm:$0xff]  }
 0x362   : > { %6264 = vmatpush1.bf16.msra.mxu0 %v8865_v24  ;;  %5773 = vmatprep.subr.bf16.mxu1 %v8870_v13  ;;  %v8954_v24 = vld [vmem:[%s9595_s12 + $0xb60] ss:$8 sps:$4 sm:$0xff]  }
 0x363   : > { %6265 = vmatprep.subr.bf16.mxu0 %v8873_v53  ;;  %v8957_v13 = vld [vmem:[%s9595_s12 + $0x1760] ss:$8 sps:$4 sm:$0xff]   ;;  %v8962_v53 = vld [vmem:[%s9595_s12 + $0xb74] ss:$8 sps:$4 sm:$0xff]  }
 0x365   : > { %5774 = vmatpush1.bf16.msra.mxu1 %v8868_v59  ;;  %v8965_v59 = vld [vmem:[%s9595_s12 + $0x1774] ss:$8 sps:$4 sm:$0xff]  }
 0x366   : > { %6266 = vmatpush1.bf16.msra.mxu0 %v8871_v57  ;;  %5775 = vmatprep.subr.bf16.mxu1 %v8876_v27  ;;  %v8960_v57 = vld [vmem:[%s9595_s12 + $0xb70] ss:$8 sps:$4 sm:$0xff]  }
 0x367   : > { %6267 = vmatprep.subr.bf16.mxu0 %v8879_v28  ;;  %v8963_v27 = vld [vmem:[%s9595_s12 + $0x1770] ss:$8 sps:$4 sm:$0xff]   ;;  %v8968_v28 = vld [vmem:[%s9595_s12 + $0xb84] ss:$8 sps:$4 sm:$0xff]  }
 0x369   : > { %5776 = vmatpush1.bf16.msra.mxu1 %v8874_v29  ;;  %v8971_v29 = vld [vmem:[%s9595_s12 + $0x1784] ss:$8 sps:$4 sm:$0xff]  }
 0x36a   : > { %6268 = vmatpush1.bf16.msra.mxu0 %v8877_v30  ;;  %5777 = vmatprep.subr.bf16.mxu1 %v8882_v31  ;;  %v8966_v30 = vld [vmem:[%s9595_s12 + $0xb80] ss:$8 sps:$4 sm:$0xff]  }
 0x36b   : > { %6269 = vmatprep.subr.bf16.mxu0 %v8885_v32  ;;  %v8969_v31 = vld [vmem:[%s9595_s12 + $0x1780] ss:$8 sps:$4 sm:$0xff]   ;;  %v8974_v32 = vld [vmem:[%s9595_s12 + $0xb94] ss:$8 sps:$4 sm:$0xff]  }
 0x36d   : > { %5778 = vmatpush1.bf16.msra.mxu1 %v8880_v16  ;;  %v8977_v16 = vld [vmem:[%s9595_s12 + $0x1794] ss:$8 sps:$4 sm:$0xff]  }
 0x36e   : > { %6270 = vmatpush1.bf16.msra.mxu0 %v8883_v34  ;;  %5779 = vmatprep.subr.bf16.mxu1 %v8888_v35  ;;  %v8972_v34 = vld [vmem:[%s9595_s12 + $0xb90] ss:$8 sps:$4 sm:$0xff]  }
 0x36f   : > { %6271 = vmatprep.subr.bf16.mxu0 %v8891_v36  ;;  %v8975_v35 = vld [vmem:[%s9595_s12 + $0x1790] ss:$8 sps:$4 sm:$0xff]   ;;  %v8980_v36 = vld [vmem:[%s9595_s12 + $0xba4] ss:$8 sps:$4 sm:$0xff]  }
 0x371   : > { %5780 = vmatpush1.bf16.msra.mxu1 %v8886_v43  ;;  %v8983_v43 = vld [vmem:[%s9595_s12 + $0x17a4] ss:$8 sps:$4 sm:$0xff]  }
 0x372   : > { %6272 = vmatpush1.bf16.msra.mxu0 %v8889_v45  ;;  %5781 = vmatprep.subr.bf16.mxu1 %v8894_v25  ;;  %v8978_v45 = vld [vmem:[%s9595_s12 + $0xba0] ss:$8 sps:$4 sm:$0xff]  }
 0x373   : > { %6273 = vmatprep.subr.bf16.mxu0 %v8897_v46  ;;  %v8981_v25 = vld [vmem:[%s9595_s12 + $0x17a0] ss:$8 sps:$4 sm:$0xff]   ;;  %v8986_v46 = vld [vmem:[%s9595_s12 + $0xbb4] ss:$8 sps:$4 sm:$0xff]  }
 0x375   : > { %5782 = vmatpush1.bf16.msra.mxu1 %v8892_v42  ;;  %v8989_v42 = vld [vmem:[%s9595_s12 + $0x17b4] ss:$8 sps:$4 sm:$0xff]  }
 0x376   : > { %6274 = vmatpush1.bf16.msra.mxu0 %v8895_v26  ;;  %5783 = vmatprep.subr.bf16.mxu1 %v8900_v60  ;;  %v8984_v26 = vld [vmem:[%s9595_s12 + $0xbb0] ss:$8 sps:$4 sm:$0xff]  }
 0x377   : > { %6275 = vmatprep.subr.bf16.mxu0 %v8903_v14  ;;  %v8987_v60 = vld [vmem:[%s9595_s12 + $0x17b0] ss:$8 sps:$4 sm:$0xff]   ;;  %v8992_v14 = vld [vmem:[%s9595_s12 + $0xbc4] ss:$8 sps:$4 sm:$0xff]  }
 0x379   : > { %5784 = vmatpush1.bf16.msra.mxu1 %v8898_v33  ;;  %v8995_v33 = vld [vmem:[%s9595_s12 + $0x17c4] ss:$8 sps:$4 sm:$0xff]  }
 0x37a   : > { %6276 = vmatpush1.bf16.msra.mxu0 %v8901_v37  ;;  %5785 = vmatprep.subr.bf16.mxu1 %v8906_v15  ;;  %v8990_v37 = vld [vmem:[%s9595_s12 + $0xbc0] ss:$8 sps:$4 sm:$0xff]  }
 0x37b   : > { %6277 = vmatprep.subr.bf16.mxu0 %v8909_v48  ;;  %v8993_v15 = vld [vmem:[%s9595_s12 + $0x17c0] ss:$8 sps:$4 sm:$0xff]   ;;  %v8998_v48 = vld [vmem:[%s9595_s12 + $0xbd4] ss:$8 sps:$4 sm:$0xff]  }
 0x37d   : > { %5786 = vmatpush1.bf16.msra.mxu1 %v8904_v17  ;;  %v9001_v17 = vld [vmem:[%s9595_s12 + $0x17d4] ss:$8 sps:$4 sm:$0xff]  }
 0x37e   : > { %6278 = vmatpush1.bf16.msra.mxu0 %v8907_v49  ;;  %5787 = vmatprep.subr.bf16.mxu1 %v8912_v51  ;;  %v8996_v49 = vld [vmem:[%s9595_s12 + $0xbd0] ss:$8 sps:$4 sm:$0xff]  }
 0x37f   : > { %6279 = vmatprep.subr.bf16.mxu0 %v8915_v52  ;;  %v8999_v51 = vld [vmem:[%s9595_s12 + $0x17d0] ss:$8 sps:$4 sm:$0xff]   ;;  %v9004_v52 = vld [vmem:[%s9595_s12 + $0xbe4] ss:$8 sps:$4 sm:$0xff]  }
 0x381   : > { %5788 = vmatpush1.bf16.msra.mxu1 %v8910_v54  ;;  %v9007_v54 = vld [vmem:[%s9595_s12 + $0x17e4] ss:$8 sps:$4 sm:$0xff]  }
 0x382   : > { %6280 = vmatpush1.bf16.msra.mxu0 %v8913_v55  ;;  %5798 = vmatprep.subr.bf16.mxu1 %v8919_v38  ;;  %v9002_v55 = vld [vmem:[%s9595_s12 + $0xbe0] ss:$8 sps:$4 sm:$0xff]  }
 0x383   : > { %6290 = vmatprep.subr.bf16.mxu0 %v8923_v40  ;;  %v9005_v38 = vld [vmem:[%s9595_s12 + $0x17e0] ss:$8 sps:$4 sm:$0xff]   ;;  %v9010_v40 = vld [vmem:[%s9595_s12 + $0xbf4] ss:$8 sps:$4 sm:$0xff]  }
 0x384   : > { %5790 = vmatmul.mubr.bf16.vlgmr.msra.gmra.mrb[0].mxu1 %v10532_v61 }
 0x385   : > { %6282 = vmatmul.mubr.bf16.vlgmr.msra.gmra.mrb[0].mxu0 %v10536_v62  ;;  %5799 = vmatpush1.bf16.msra.mxu1 %v8917_v63  ;;  %v9013_v63 = vld [vmem:[%s9595_s12 + $0x17f4] ss:$8 sps:$4 sm:$0xff]  }
 0x386   : > { %6291 = vmatpush1.bf16.msra.mxu0 %v8921_v0  ;;  %5800 = vmatprep.subr.bf16.mxu1 %v8926_v41  ;;  %v9008_v0 = vld [vmem:[%s9595_s12 + $0xbf0] ss:$8 sps:$4 sm:$0xff]  }
 0x387   : > { %6292 = vmatprep.subr.bf16.mxu0 %v8929_v1  ;;  %5830 = vmatprep.mubr.bf16.mxu1 %v1311_v23  ;;  %v9011_v41 = vld [vmem:[%s9595_s12 + $0x17f0] ss:$8 sps:$4 sm:$0xff]   ;;  %v1309_v1 = vcombine.high %v10532_v61, %v10532_v61  ;;  %v1456_v23 = vcombine.high %v10536_v62, %v10536_v62 }
 0x388   : > { %6322 = vmatprep.mubr.bf16.mxu0 %v1458_v56  ;;  %v9308_v56 = vmov 1983009808  }
 0x389   : > { %5801 = vmatpush1.bf16.msra.mxu1 %v8924_v50  ;;  %v6335_v50 = vunpack.c.l.s4 %v9308_v56 }
 0x38a   : > { %6293 = vmatpush1.bf16.msra.mxu0 %v8927_v47  ;;  %5802 = vmatprep.subr.bf16.mxu1 %v8932_v39 }
 0x38b   : > { %6294 = vmatprep.subr.bf16.mxu0 %v8935_v3  ;;  %v6336_v47 = vunpack.c.0.s8 %v6335_v50 }
 0x38d   : > { %5803 = vmatpush1.bf16.msra.mxu1 %v8930_v18 }
 0x38e   : > { %6295 = vmatpush1.bf16.msra.mxu0 %v8933_v58  ;;  %5804 = vmatprep.subr.bf16.mxu1 %v8938_v4 }
 0x38f   : > { %6296 = vmatprep.subr.bf16.mxu0 %v8941_v5 }
 0x391   : > { %5805 = vmatpush1.bf16.msra.mxu1 %v8936_v6  ;;  %v6339_v6 = vsub.s32 %v6336_v47, %v9654_v44  ;;  %v7593_v47 = vld [vmem:[#allocation12] ss:$0 sm:$0xff] (!%p7575_p7) }
 0x392   : > { %6297 = vmatpush1.bf16.msra.mxu0 %v8939_v7  ;;  %5806 = vmatprep.subr.bf16.mxu1 %v8944_v8 }
 0x393   : > { %6298 = vmatprep.subr.bf16.mxu0 %v8947_v9 }
 0x395   : > { %5807 = vmatpush1.bf16.msra.mxu1 %v8942_v10  ;;  %v384_v10 = vld [vmem:[#allocation2] sm:$0xf] }
 0x396   : > { %6299 = vmatpush1.bf16.msra.mxu0 %v8945_v11  ;;  %5808 = vmatprep.subr.bf16.mxu1 %v8950_v12 }
 0x397   : > { %6300 = vmatprep.subr.bf16.mxu0 %v8953_v19  ;;  %v9016_v19 = vld [vmem:[#allocation9 + $0x40] sm:$0xff] (!%p7575_p7)  }
 0x399   : > { %5809 = vmatpush1.bf16.msra.mxu1 %v8948_v20  ;;  %v9017_v20 = vld [vmem:[#allocation9] sm:$0xff] (!%p7575_p7)  }
 0x39a   : > { %6301 = vmatpush1.bf16.msra.mxu0 %v8951_v21  ;;  %5810 = vmatprep.subr.bf16.mxu1 %v8956_v22  ;;  %v9018_v21 = vld [vmem:[#allocation9 + $0x48] sm:$0xff] (!%p7575_p7)  }
 0x39b   : > { %6302 = vmatprep.subr.bf16.mxu0 %v8959_v2  ;;  %v9019_v22 = vld [vmem:[#allocation9 + $0x8] sm:$0xff] (!%p7575_p7)   ;;  %v9309_v2 = vmov (!%p7575_p7), 0.0  }
 0x39d   : > { %5811 = vmatpush1.bf16.msra.mxu1 %v8954_v24  ;;  %v9020_v24 = vld [vmem:[#allocation9 + $0x50] sm:$0xff] (!%p7575_p7)  }
 0x39e   : > { %6303 = vmatpush1.bf16.msra.mxu0 %v8957_v13  ;;  %5812 = vmatprep.subr.bf16.mxu1 %v8962_v53  ;;  %v9021_v13 = vld [vmem:[#allocation9 + $0x10] sm:$0xff] (!%p7575_p7)   ;;  %v9022_v53 = vld [vmem:[#allocation9 + $0x58] sm:$0xff] (!%p7575_p7)  }
 0x39f   : > { %6304 = vmatprep.subr.bf16.mxu0 %v8965_v59  ;;  %v9023_v59 = vld [vmem:[#allocation9 + $0x18] sm:$0xff] (!%p7575_p7)  }
 0x3a1   : > { %5813 = vmatpush1.bf16.msra.mxu1 %v8960_v57  ;;  %v9024_v57 = vld [vmem:[#allocation9 + $0x60] sm:$0xff] (!%p7575_p7)  }
 0x3a2   : > { %6305 = vmatpush1.bf16.msra.mxu0 %v8963_v27  ;;  %5814 = vmatprep.subr.bf16.mxu1 %v8968_v28  ;;  %v6353_v27 = vsub.s32 (!%p7575_p7), 0, %v9654_v44  ;;  %v6357_v28 = vsub.s32 (!%p7575_p7), 1, %v9654_v44  ;;  %v9033_v44 = vld [vmem:[%s10688_s5 + $0x8] sm:$0xff] (!%p7575_p7)  }
 0x3a3   : > { %6306 = vmatprep.subr.bf16.mxu0 %v8971_v29  ;;  %v9025_v29 = vld [vmem:[#allocation9 + $0x20] sm:$0xff] (!%p7575_p7)  }
 0x3a5   : > { %5815 = vmatpush1.bf16.msra.mxu1 %v8966_v30  ;;  %v9026_v30 = vld [vmem:[#allocation9 + $0x68] sm:$0xff] (!%p7575_p7)  }
 0x3a6   : > { %6307 = vmatpush1.bf16.msra.mxu0 %v8969_v31  ;;  %5816 = vmatprep.subr.bf16.mxu1 %v8974_v32  ;;  %v6349_v31 = vld [vmem:[#allocation8] sm:$0x3] (!%p7575_p7)  ;;  %v9027_v32 = vld [vmem:[#allocation9 + $0x28] sm:$0xff] (!%p7575_p7)  }
 0x3a7   : > { %6308 = vmatprep.subr.bf16.mxu0 %v8977_v16  ;;  %v6354_v16 = vrot.slane (!%p7575_p7), %v6349_v31, %v6353_v27 }
 0x3a9   : > { %5817 = vmatpush1.bf16.msra.mxu1 %v8972_v34  ;;  %v6358_v34 = vrot.slane (!%p7575_p7), %v6349_v31, %v6357_v28 }
 0x3aa   : > { %6309 = vmatpush1.bf16.msra.mxu0 %v8975_v35  ;;  %5818 = vmatprep.subr.bf16.mxu1 %v8980_v36  ;;  %v9032_v35 = vld [vmem:[%s10688_s5] sm:$0xff] (!%p7575_p7)   ;;  %v9028_v36 = vld [vmem:[#allocation9 + $0x70] sm:$0xff] (!%p7575_p7)  }
 0x3ab   : > { %6310 = vmatprep.subr.bf16.mxu0 %v8983_v43  ;;  %v6359_v43 = vcombine.low (!%p7575_p7), %v6354_v16, %v6358_v34 }
 0x3ad   : > { %5819 = vmatpush1.bf16.msra.mxu1 %v8978_v45 }
 0x3ae   : > { %6311 = vmatpush1.bf16.msra.mxu0 %v8981_v25  ;;  %5820 = vmatprep.subr.bf16.mxu1 %v8986_v46  ;;  %v9029_v25 = vld [vmem:[#allocation9 + $0x30] sm:$0xff] (!%p7575_p7)   ;;  %v6366_v46 = vrot.slane (!%p7575_p7), %v6359_v43, %v6339_v6 }
 0x3af   : > { %6312 = vmatprep.subr.bf16.mxu0 %v8989_v42  ;;  %v9034_v42 = vld [vmem:[%s10688_s5 + $0x10] sm:$0xff] (!%p7575_p7)  }
 0x3b1   : > { %5821 = vmatpush1.bf16.msra.mxu1 %v8984_v26 }
 0x3b2   : > { %6313 = vmatpush1.bf16.msra.mxu0 %v8987_v60  ;;  %5822 = vmatprep.subr.bf16.mxu1 %v8992_v14  ;;  %v9030_v60 = vld [vmem:[#allocation9 + $0x78] sm:$0xff] (!%p7575_p7)  }
 0x3b3   : > { %6314 = vmatprep.subr.bf16.mxu0 %v8995_v33  ;;  %v9031_v33 = vld [vmem:[#allocation9 + $0x38] sm:$0xff] (!%p7575_p7)  }
 0x3b5   : > { %5823 = vmatpush1.bf16.msra.mxu1 %v8990_v37 }
 0x3b6   : > { %6315 = vmatpush1.bf16.msra.mxu0 %v8993_v15  ;;  %5824 = vmatprep.subr.bf16.mxu1 %v8998_v48  ;;  %v9035_v15 = vld [vmem:[%s10688_s5 + $0x18] sm:$0xff] (!%p7575_p7)  }
 0x3b7   : > { %6316 = vmatprep.subr.bf16.mxu0 %v9001_v17 }
 0x3b9   : > { %5825 = vmatpush1.bf16.msra.mxu1 %v8996_v49 }
 0x3ba   : > { %6317 = vmatpush1.bf16.msra.mxu0 %v8999_v51  ;;  %5826 = vmatprep.subr.bf16.mxu1 %v9004_v52  ;;  %v9036_v51 = vld [vmem:[%s10688_s5 + $0x20] sm:$0xff] (!%p7575_p7)   ;;  %v9037_v52 = vld [vmem:[%s10688_s5 + $0x28] sm:$0xff] (!%p7575_p7)  }
 0x3bb   : > { %6318 = vmatprep.subr.bf16.mxu0 %v9007_v54  ;;  %v9038_v54 = vld [vmem:[%s10688_s5 + $0x30] sm:$0xff] (!%p7575_p7)  }
 0x3bd   : > { %5827 = vmatpush1.bf16.msra.mxu1 %v9002_v55  ;;  %v9039_v55 = vld [vmem:[%s10688_s5 + $0x38] sm:$0xff] (!%p7575_p7)  }
 0x3be   : > { %6319 = vmatpush1.bf16.msra.mxu0 %v9005_v38  ;;  %5828 = vmatprep.subr.bf16.mxu1 %v9010_v40  ;;  %v7576_v40 = vld [vmem:[#allocation11] ss:$0 sm:$0xff] (!%p7575_p7) }
 0x3bf   : > { %6320 = vmatprep.subr.bf16.mxu0 %v9013_v63 }
 0x3c1   : > { %5829 = vmatpush1.bf16.msra.mxu1 %v9008_v0 }
 0x3c2   : > { %6321 = vmatpush1.bf16.msra.mxu0 %v9011_v41  ;;  %7641 = vmatprep.subr.bf16.mxu1 (!%p7575_p7), %v9309_v2 }
 0x3c3   : > { %7610 = vmatprep.subr.bf16.mxu0 (!%p7575_p7), %v9016_v19 }
 0x3c4   : > { %5831 = vmatmul.mubr.bf16.vlgmr.msra.gmra.mrb[0].mxu1 %v1309_v1 }
 0x3c5   : > { %6323 = vmatmul.mubr.bf16.vlgmr.msra.gmra.mrb[0].mxu0 %v1456_v23  ;;  %7642 = vmatpush3.bf16.msra.mxu1 (!%p7575_p7), %v9032_v35 }
 0x3c6   : > { %7611 = vmatpush3.bf16.msra.mxu0 (!%p7575_p7), %v9017_v20  ;;  %7643 = vmatprep.subr.bf16.mxu1 (!%p7575_p7), %v9309_v2 }
 0x3c7   : > { %7612 = vmatprep.subr.bf16.mxu0 (!%p7575_p7), %v9018_v21  ;;  %7657 = vmatprep.mubr.msk.bf16.mxu1 (!%p7575_p7), %vm9310_vm0, %v9309_v2 }
 0x3c9   : > { %7644 = vmatpush3.bf16.msra.mxu1 (!%p7575_p7), %v9033_v44 }
 0x3ca   : > { %7613 = vmatpush3.bf16.msra.mxu0 (!%p7575_p7), %v9019_v22  ;;  %7645 = vmatprep.subr.bf16.mxu1 (!%p7575_p7), %v9309_v2 }
 0x3cb   : > { %7614 = vmatprep.subr.bf16.mxu0 (!%p7575_p7), %v9020_v24 }
 0x3cd   : > { %7646 = vmatpush3.bf16.msra.mxu1 (!%p7575_p7), %v9034_v42 }
 0x3ce   : > { %7615 = vmatpush3.bf16.msra.mxu0 (!%p7575_p7), %v9021_v13  ;;  %7647 = vmatprep.subr.bf16.mxu1 (!%p7575_p7), %v9309_v2 }
 0x3cf   : > { %7616 = vmatprep.subr.bf16.mxu0 (!%p7575_p7), %v9022_v53 }
 0x3d1   : > { %7648 = vmatpush3.bf16.msra.mxu1 (!%p7575_p7), %v9035_v15 }
 0x3d2   : > { %7617 = vmatpush3.bf16.msra.mxu0 (!%p7575_p7), %v9023_v59  ;;  %7649 = vmatprep.subr.bf16.mxu1 (!%p7575_p7), %v9309_v2 }
 0x3d3   : > { %7618 = vmatprep.subr.bf16.mxu0 (!%p7575_p7), %v9024_v57 }
 0x3d5   : > { %7650 = vmatpush3.bf16.msra.mxu1 (!%p7575_p7), %v9036_v51 }
 0x3d6   : > { %7619 = vmatpush3.bf16.msra.mxu0 (!%p7575_p7), %v9025_v29  ;;  %7651 = vmatprep.subr.bf16.mxu1 (!%p7575_p7), %v9309_v2 }
 0x3d7   : > { %7620 = vmatprep.subr.bf16.mxu0 (!%p7575_p7), %v9026_v30 }
 0x3d9   : > { %7652 = vmatpush3.bf16.msra.mxu1 (!%p7575_p7), %v9037_v52 }
 0x3da   : > { %7621 = vmatpush3.bf16.msra.mxu0 (!%p7575_p7), %v9027_v32  ;;  %7653 = vmatprep.subr.bf16.mxu1 (!%p7575_p7), %v9309_v2 }
 0x3db   : > { %7622 = vmatprep.subr.bf16.mxu0 (!%p7575_p7), %v9028_v36 }
 0x3dd   : > { %7654 = vmatpush3.bf16.msra.mxu1 (!%p7575_p7), %v9038_v54 }
 0x3de   : > { %7623 = vmatpush3.bf16.msra.mxu0 (!%p7575_p7), %v9029_v25  ;;  %7655 = vmatprep.subr.bf16.mxu1 (!%p7575_p7), %v9309_v2 }
 0x3df   : > { %7624 = vmatprep.subr.bf16.mxu0 (!%p7575_p7), %v9030_v60 }
 0x3e1   : > { %7656 = vmatpush3.bf16.msra.mxu1 (!%p7575_p7), %v9039_v55 }
 0x3e2   : > { %7625 = vmatpush3.bf16.msra.mxu0 (!%p7575_p7), %v9031_v33 }
 0x497   : > { %v5832_v39 = vpop.f32.mrb[0].mxu1 }
 0x498   : > { %v6324_v3 = vpop.f32.mrb[0].mxu0  ;;  %v5834_v58 = vpop.f32.mrb[1].mxu1 }
 0x499   : > { %v7661_v18 = vadd.f32 %v6324_v3, %v5832_v39  ;;  %v6326_v4 = vpop.f32.mrb[1].mxu0  ;;  %v5836_v7 = vpop.f32.mrb[2].mxu1 }
 0x49a   : > { %v7662_v5 = vadd.f32 %v6326_v4, %v5834_v58  ;;  %v6328_v61 = vpop.f32.mrb[2].mxu0  ;;  %v5837_v8 = vpop.f32.mrb[3].mxu1 }
 0x49b   : > { %v6329_v9 = vpop.f32.mrb[3].mxu0 }
 0x49c   : > { %v6333_v62 = vcombine.low %v7661_v18, %v7662_v5  ;;  %6347 = sbr.rel (%p7575_p7) target bundleno = 1641 (0x669), region = 80 }
 0x49e   : > { %v6340_v11 = vrot.slane %v6333_v62, %v6339_v6 }
 0x4a0   : > { %v6342_v12 = vadd.f32 %v6340_v11, %v384_v10 }
 0x4a2   : > { %6343 = vst [vmem:[#allocation2] sm:$0xf] %v6342_v12 }
 0x4a9   : > { %v6348_v45 = vld [vmem:[#allocation2] sm:$0xf] }
 0x4aa   : > { %v6368_v26 = vadd.f32 %v6366_v46, %v6348_v45 }
 0x4ac   : > { %v6369_v14 = vmax.f32 %v6368_v26, 0.0 }
 0x4ae   : > { %v6377_v37 = vrot.slane %v6369_v14, %v6339_v6 }
 0x4b0   : > { %v6378_v48 = vcombine.high %v6377_v37, %v6377_v37  ;;  %v6381_v17 = vpack.c.bf16 %v6377_v37, %v6377_v37 }
 0x4b2   : > { %v6382_v49 = vpack.c.bf16 %v6378_v48, %v6378_v48 }
 0x4b4   : > { %6550 = vmatprep.mubr.bf16.mxu0 %v6382_v49 }
 0x4b5   : > { %6551 = vmatmul.mubr.bf16.vlgmr.msra.gmra.mrb[0].mxu0 %v6381_v17 }
 0x588   : > { %v7626_v38 = vpop.f32.mrb[0].mxu0 }
 0x589   : > { %v7627_v63 = vpop.f32.mrb[1].mxu0 }
 0x58a   : > { %v7628_v0 = vadd.f32 %v7627_v63, %v7626_v38  ;;  %v7629_v41 = vpop.f32.mrb[2].mxu0 }
 0x58b   : > { %v7630_v1 = vpop.f32.mrb[3].mxu0 }
 0x58c   : > { %v6553_v23 = vadd.f32 %v7628_v0, %v7576_v40 }
 0x58e   : > { %v6558_v56 = vmax.f32 %v6553_v23, 0.0 }
 0x590   : > { %v6559_v50 = vpack.c.bf16 %v6558_v56, %v6558_v56 }
 0x592   : > { %7658 = vmatmul.mubr.bf16.vlgmr.msra.gmra.mrb[0].mxu1 %v6559_v50 }
 0x665   : > { %v6665_v39 = vpop.f32.mrb[0].mxu1 }
 0x666   : > { %v6666_v3 = vadd.f32 %v7593_v47, %v6665_v39  ;;  %v7659_v18 = vpop.f32.mrb[1].mxu1 }
 0x667   : > { %v6668_v58 = vpop.f32.mrb[2].mxu1 }
 0x668   : > { %6672 = vst.msk [vmem:[#allocation14] sm:$0x3] %vm6671_vm1, %v6666_v3  ;;  %v7660_v4 = vpop.f32.mrb[3].mxu1 }
 0x669 PF: > { %p7808_p2 = scmp.eq.s32.totalorder %s9373_s30, 1  ;;  %s9311_s11 = smov [#allocation14]  }
 0x66a   : > { %s6680_s12 = sshll.u32 %s9311_s11, 4  ;;  %s6681_s12 = int_to_ptr.vmem [resolvable:$true] %s6680_s12 }
 0x66b   : > { %s9214_s8 = scalar_lea.vmem %s6681_s12, 32  ;;  %p9221_p10 = scmp.lt.s32.totalorder %s6681_s12, %s6681_s12 }
 0x66c   : > { %p9215_p9 = scmp.ne.s32.totalorder %s6681_s12, %s9214_s8  ;;  %p9222_p13 = scmp.lt.s32.totalorder %s9214_s8, %s9214_s8 }
 0x66e   : > { %p9216_p1 = pnand %p9215_p9, %p7808_p2  ;;  %p9223_p6 = por %p9222_p13, %p9221_p10 }
 0x670   : > { %p9217_p4 = pneg %p9216_p1 }
 0x672   : > { %p9224_p3 = pnand %p9223_p6, %p9217_p4 }
 0x674   : > { %9227 = shalt.err (!%p9224_p3)
}
 0x675   : > { %s9228_s13 = scalar_lea.hbm %s10690_s7, 32 }
 0x676   : > { %p9229_p12 = scmp.ne.s32.totalorder %s10690_s7, %s9228_s13  ;;  %p9234_p8 = scmp.lt.u32.totalorder %s9228_s13, %s10690_s7 }
 0x678   : > { %p9230_p0 = pnand %p9229_p12, %p7808_p2 }
 0x67a   : > { %p9231_p5 = pneg %p9230_p0 }
 0x67c   : > { %p9236_p11 = pnand %p9234_p8, %p9231_p5 }
 0x67e   : > { %9239 = shalt.err (!%p9236_p11)
}
 0x67f   : > { %7776 = dma.vmem_to_hbm [thread:$0]  (%p7808_p2), %s6681_s12, 32, %s10690_s7, [#allocation5]  }
 0x680   : > { %9277 = dma.done.wait (%p7808_p2), [#allocation5], 32  }
 0x681   : > { %9279 = vsyncadd (%p7808_p2), [#allocation5], 4294967264 }
 0x682 PF: > { %p23_p7 = scmp.ge.s32.totalorder %s9485_s19, 4   ;;  %s10707_s24 = smov %s9286_s25 }
 0x683   : > { %s10708_s25 = smov %s9290_s26  ;;  %s10709_s26 = smov %s9497_s20 }
 0x684   : > { %s10710_s27 = smov %s9485_s19  ;;  %25 = sbr.rel (!%p23_p7) target bundleno = 8 (0x8), region = 122 }
 0x68b   :  { %6693 = vsyncpa [#allocation4], 1 }
 0x68c   :  { %6695 = vsyncpa [#allocation4 + $0x1], 1 }
 0x68d   :  { %6696 = vsyncpa [#allocation7], 1 }
 0x68e   :  { %6698 = vsyncpa [#allocation7 + $0x1], 1 }
 0x68f   :  { %6699 = vsyncpa [#allocation10], 1 }
 0x690   :  { %6700 = vsyncpa [#allocation13], 1 }
 0x691   :  { %6701 = vsyncpa [#allocation5], 1 }
 0x692   :  { %6703 = vsyncpa [#allocation5 + $0x1], 1 }

</bundles_post_ra>
